<compile_context>
chip_gen: v7x
topology: tpu7x:2x2x1
jax: 0.10.0
libtpu: 0.0.40
codegen_flags: <defaults>
</compile_context>

<pallas_src>
import jax
import jax.numpy as jnp
from jax.experimental import pallas as pl
from jax.experimental.pallas import tpu as pltpu

N_LAYERS = 4
N_HIDDEN = 128
DILATIONS = [2 ** i for i in range(N_LAYERS)]  # [1, 2, 4, 8]
DP = 128        # padded per-layer feature width (TPU lane width)
UNROLL = 8      # LCM of the dilations -> all state-slot indices static


def _round_up(n, m):
    return ((n + m - 1) // m) * m


def _sigmoid(x):
    # 1 / (1 + exp(-x)) with the divide on the EUP approximate-reciprocal path.
    return pl.reciprocal(1.0 + jnp.exp(-x), approx=True)


def drnn_kernel(x_ref, wih_ref, whh_ref, b_ref, h0_ref, c0_ref, out_ref,
                h_s, c_s, win_s):
    """One grid step = a chunk of timesteps of the full 4-layer dilated LSTM.

    x_ref:   (CHUNK, DP)        padded input timesteps (f32)
    wih_ref: (4, DP, 4*DP)      per-layer input->gates weights (bf16, i/f/g/o)
    whh_ref: (4, DP, 4*DP)      per-layer hidden->gates weights (bf16)
    b_ref:   (4, 1, 4*DP)       per-layer fused bias b_ih + b_hh (f32)
    h0/c0:   (4, 8, DP)         packed initial state banks (f32)
    out_ref: (CHUNK, DP)        padded outputs (last layer hidden, f32)
    h_s/c_s: (4, 8, DP) VMEM    persistent state banks (row k = dilation slot)
    win_s:   (8, DP)    VMEM    current layer's 8-step output window
    """
    chunk_id = pl.program_id(0)

    @pl.when(chunk_id == 0)
    def _():
        h_s[...] = h0_ref[...]
        c_s[...] = c0_ref[...]

    n_macro = x_ref.shape[0] // UNROLL

    @pl.loop(0, n_macro)
    def _(m):
        base = pl.multiple_of(m * UNROLL, UNROLL)
        for layer in range(N_LAYERS):
            d = DILATIONS[layer]
            n_phase = UNROLL // d
            # Whole-window input-path term (+bias): one dense matmul, off the
            # sequential critical path (replaces half of every per-step matmul).
            if layer == 0:
                win = x_ref[pl.ds(base, UNROLL), :]            # (8, DP)
            else:
                win = win_s[...]                               # (8, DP)
            pre_x = jnp.dot(win.astype(jnp.bfloat16), wih_ref[layer],
                            preferred_element_type=jnp.float32) + b_ref[layer]
            # Dilation-batched recurrence: the d slots of this layer are
            # independent within a phase -> one (d,128)@(128,512) matmul.
            for p in range(n_phase):
                h = h_s[layer, pl.ds(0, d), :]                 # (d, DP)
                c = c_s[layer, pl.ds(0, d), :]                 # (d, DP)
                pre = pre_x[p * d:(p + 1) * d, :] + jnp.dot(
                    h.astype(jnp.bfloat16), whh_ref[layer],
                    preferred_element_type=jnp.float32)        # (d, 4*DP)
                i_g = _sigmoid(pre[:, 0 * DP:1 * DP])
                f_g = _sigmoid(pre[:, 1 * DP:2 * DP])
                g_g = jnp.tanh(pre[:, 2 * DP:3 * DP])
                o_g = _sigmoid(pre[:, 3 * DP:4 * DP])
                c_new = f_g * c + i_g * g_g
                h_new = o_g * jnp.tanh(c_new)
                h_s[layer, pl.ds(0, d), :] = h_new
                c_s[layer, pl.ds(0, d), :] = c_new
                if layer == N_LAYERS - 1:
                    # d == UNROLL here: one dense (8,128) unmasked store.
                    out_ref[pl.ds(base, UNROLL), :] = h_new
                else:
                    win_s[pl.ds(p * d, d), :] = h_new


# ----------------------------- parameter setup ------------------------------

def init_params(key, feat):
    """Per-layer LSTM weights (gate order i,f,g,o), random like nn.LSTM init."""
    dims = []
    n_inp = feat
    for i in range(N_LAYERS):
        n_out = feat if i == N_LAYERS - 1 else N_HIDDEN
        dims.append((n_inp, n_out))
        n_inp = N_HIDDEN
    weights = []
    for (din, dout) in dims:
        key, k1, k2, k3, k4 = jax.random.split(key, 5)
        s = 1.0 / float(dout) ** 0.5
        wih = jax.random.uniform(k1, (4, din, dout), jnp.float32, -s, s)
        whh = jax.random.uniform(k2, (4, dout, dout), jnp.float32, -s, s)
        b_ih = jax.random.uniform(k3, (4, 1, dout), jnp.float32, -s, s)
        b_hh = jax.random.uniform(k4, (4, 1, dout), jnp.float32, -s, s)
        weights.append((wih, whh, b_ih + b_hh))
    return key, weights, dims


def init_hidden(key, dims):
    # Mirrors torch.rand(...) for h0 and torch.randn(...) for c0.
    # TODO(synk): reference uses float64 hidden init; TPU Pallas vector path is
    # float32, so states are kept in float32 here.
    inits = []
    for (din, dout), dil in zip(dims, DILATIONS):
        key, k1, k2 = jax.random.split(key, 3)
        inits.append((jax.random.uniform(k1, (dil, dout), jnp.float32),
                      jax.random.normal(k2, (dil, dout), jnp.float32)))
    return inits


def pack_params(weights, inits, dims):
    """Pad every layer to DP lanes; split Wih / Whh; weights cast to bf16."""
    Wih = jnp.zeros((N_LAYERS, DP, 4 * DP), jnp.float32)
    Whh = jnp.zeros((N_LAYERS, DP, 4 * DP), jnp.float32)
    B = jnp.zeros((N_LAYERS, 1, 4 * DP), jnp.float32)
    H0 = jnp.zeros((N_LAYERS, UNROLL, DP), jnp.float32)
    C0 = jnp.zeros((N_LAYERS, UNROLL, DP), jnp.float32)
    for i, ((din, dout), (wih, whh, b), (h0, c0), dil) in enumerate(
            zip(dims, weights, inits, DILATIONS)):
        for g in range(4):
            Wih = Wih.at[i, :din, g * DP:g * DP + dout].set(wih[g])
            Whh = Whh.at[i, :dout, g * DP:g * DP + dout].set(whh[g])
            B = B.at[i, 0, g * DP:g * DP + dout].set(b[g, 0])
        H0 = H0.at[i, :dil, :dout].set(h0)
        C0 = C0.at[i, :dil, :dout].set(c0)
    return Wih.astype(jnp.bfloat16), Whh.astype(jnp.bfloat16), B, H0, C0


# --------------------------------- wrapper -----------------------------------

def drnn_forward(x, Wih, Whh, B, H0, C0, feat, max_chunk=512):
    assert max_chunk % UNROLL == 0
    T = x.shape[0]
    T8 = _round_up(T, UNROLL)
    chunk = T8 if T8 <= max_chunk else max_chunk   # timesteps per grid step
    T_pad = _round_up(T8, chunk)
    x_pad = jnp.zeros((T_pad, DP), jnp.float32).at[:T, :feat].set(x)
    n_chunks = T_pad // chunk

    out = pl.pallas_call(
        drnn_kernel,
        out_shape=jax.ShapeDtypeStruct((T_pad, DP), jnp.float32),
        grid_spec=pltpu.PrefetchScalarGridSpec(
            num_scalar_prefetch=0,
            grid=(n_chunks,),
            in_specs=[
                pl.BlockSpec((chunk, DP), lambda s: (s, 0)),
                # TODO(synk): on v7x (64 MiB VMEM) these constant-index inputs
                # could be single-buffered (pipeline_mode=pl.Buffered(1)) to
                # reclaim the default double-buffer headroom.
                pl.BlockSpec((N_LAYERS, DP, 4 * DP), lambda s: (0, 0, 0)),
                pl.BlockSpec((N_LAYERS, DP, 4 * DP), lambda s: (0, 0, 0)),
                pl.BlockSpec((N_LAYERS, 1, 4 * DP), lambda s: (0, 0, 0)),
                pl.BlockSpec((N_LAYERS, UNROLL, DP), lambda s: (0, 0, 0)),
                pl.BlockSpec((N_LAYERS, UNROLL, DP), lambda s: (0, 0, 0)),
            ],
            out_specs=pl.BlockSpec((chunk, DP), lambda s: (s, 0)),
            scratch_shapes=[pltpu.VMEM((N_LAYERS, UNROLL, DP), jnp.float32),
                            pltpu.VMEM((N_LAYERS, UNROLL, DP), jnp.float32),
                            pltpu.VMEM((UNROLL, DP), jnp.float32)],
        ),
        # Sequential grid: state carried in scratch across chunks.
        # TODO(synk): with a batch of independent sequences, add a leading
        # "parallel" batch axis to use the second TensorCore on v7x.
        compiler_params=pltpu.CompilerParams(
            dimension_semantics=("arbitrary",)),
    )(x_pad, Wih, Whh, B, H0, C0)
    return out[:T, :feat]


# ------------------------------ JAX reference ---------------------------------

def drnn_reference(x, weights, inits, dims):
    """Pure-JAX f32 reference reproducing the PyTorch forward semantics."""
    T, feat = x.shape
    states = [[h0, c0] for (h0, c0) in inits]
    outs = []
    for j in range(T):
        inp = x[j][None, :]
        for i, (din, dout) in enumerate(dims):
            wih, whh, b = weights[i]
            k = j % DILATIONS[i]
            h = states[i][0][k][None, :]
            c = states[i][1][k][None, :]
            pre = [inp @ wih[g] + h @ whh[g] + b[g] for g in range(4)]
            i_g = jax.nn.sigmoid(pre[0])
            f_g = jax.nn.sigmoid(pre[1])
            g_g = jnp.tanh(pre[2])
            o_g = jax.nn.sigmoid(pre[3])
            c_new = f_g * c + i_g * g_g
            h_new = o_g * jnp.tanh(c_new)
            states[i][0] = states[i][0].at[k].set(h_new[0])
            states[i][1] = states[i][1].at[k].set(c_new[0])
            inp = h_new
        outs.append(inp[0])
    return jnp.stack(outs)


if __name__ == "__main__":
    feat, T = 16, 16  # small shapes: feat features, T timesteps
    key = jax.random.PRNGKey(0)
    key, kx = jax.random.split(key)
    x = jax.random.normal(kx, (T, feat), jnp.float32)

    key, weights, dims = init_params(key, feat)
    inits = init_hidden(key, dims)
    Wih, Whh, B, H0, C0 = pack_params(weights, inits, dims)

    ref = drnn_reference(x, weights, inits, dims)

    # Single-chunk path (whole sequence in one grid step).
    out = jax.block_until_ready(drnn_forward(x, Wih, Whh, B, H0, C0, feat))
    assert out.shape == (T, feat), out.shape
    if not jnp.allclose(out, ref, atol=3e-2, rtol=3e-2):
        err = float(jnp.max(jnp.abs(out - ref)))
        raise AssertionError(f"Pallas DRNN mismatch (max abs err {err})")

    # Multi-chunk path (persistent state banks across grid steps).
    out2 = jax.block_until_ready(
        drnn_forward(x, Wih, Whh, B, H0, C0, feat, max_chunk=8))
    if not jnp.allclose(out2, ref, atol=3e-2, rtol=3e-2):
        err = float(jnp.max(jnp.abs(out2 - ref)))
        raise AssertionError(f"Pallas DRNN multi-chunk mismatch (max abs err {err})")

    print("KERNEL_OK")
</pallas_src>

<mosaic_0001>
module attributes {stable_mosaic.version = 11 : i64} {
  func.func @drnn_kernel(%arg0: i32, %arg1: memref<16x128xf32, #tpu.memory_space<vmem>>, %arg2: memref<4x128x512xbf16, #tpu.memory_space<vmem>>, %arg3: memref<4x128x512xbf16, #tpu.memory_space<vmem>>, %arg4: memref<4x1x512xf32, #tpu.memory_space<vmem>>, %arg5: memref<4x8x128xf32, #tpu.memory_space<vmem>>, %arg6: memref<4x8x128xf32, #tpu.memory_space<vmem>>, %arg7: memref<16x128xf32, #tpu.memory_space<vmem>>, %arg8: memref<4x8x128xf32, #tpu.memory_space<vmem>>, %arg9: memref<4x8x128xf32, #tpu.memory_space<vmem>>, %arg10: memref<8x128xf32, #tpu.memory_space<vmem>>) attributes {dimension_semantics = [#tpu.dimension_semantics<arbitrary>], iteration_bounds = array<i64: 1>, scalar_prefetch = 0 : i64, scratch_operands = 3 : i64, tpu.core_type = #tpu.core_type<tc>, window_params = [{transform_indices = @transform_0, window_bounds = array<i64: 16, 128>}, {pipeline_mode = #tpu.pipeline_mode<synchronous>, transform_indices = @transform_1, window_bounds = array<i64: 4, 128, 512>}, {pipeline_mode = #tpu.pipeline_mode<synchronous>, transform_indices = @transform_2, window_bounds = array<i64: 4, 128, 512>}, {pipeline_mode = #tpu.pipeline_mode<synchronous>, transform_indices = @transform_3, window_bounds = array<i64: 4, 1, 512>}, {pipeline_mode = #tpu.pipeline_mode<synchronous>, transform_indices = @transform_4, window_bounds = array<i64: 4, 8, 128>}, {pipeline_mode = #tpu.pipeline_mode<synchronous>, transform_indices = @transform_5, window_bounds = array<i64: 4, 8, 128>}, {transform_indices = @transform_6, window_bounds = array<i64: 16, 128>}]} {
    %c0_i32 = arith.constant 0 : i32
    %0 = arith.cmpi eq, %arg0, %c0_i32 : i32
    %1 = arith.extui %0 : i1 to i32
    %c0_i32_0 = arith.constant 0 : i32
    %2 = arith.cmpi ne, %1, %c0_i32_0 : i32
    scf.if %2 {
      %c0 = arith.constant 0 : index
      %c0_3 = arith.constant 0 : index
      %c0_4 = arith.constant 0 : index
      %4 = vector.load %arg5[%c0, %c0_3, %c0_4] : memref<4x8x128xf32, #tpu.memory_space<vmem>>, vector<4x8x128xf32>
      %c0_5 = arith.constant 0 : index
      %c0_6 = arith.constant 0 : index
      %c0_7 = arith.constant 0 : index
      %5 = vector.load %arg8[%c0_5, %c0_6, %c0_7] : memref<4x8x128xf32, #tpu.memory_space<vmem>>, vector<4x8x128xf32>
      tpu.vector_store %arg8[%c0_5, %c0_6, %c0_7], %4 {strides = array<i32>} : memref<4x8x128xf32, #tpu.memory_space<vmem>>, vector<4x8x128xf32>,
      %c0_8 = arith.constant 0 : index
      %c0_9 = arith.constant 0 : index
      %c0_10 = arith.constant 0 : index
      %6 = vector.load %arg6[%c0_8, %c0_9, %c0_10] : memref<4x8x128xf32, #tpu.memory_space<vmem>>, vector<4x8x128xf32>
      %c0_11 = arith.constant 0 : index
      %c0_12 = arith.constant 0 : index
      %c0_13 = arith.constant 0 : index
      %7 = vector.load %arg9[%c0_11, %c0_12, %c0_13] : memref<4x8x128xf32, #tpu.memory_space<vmem>>, vector<4x8x128xf32>
      tpu.vector_store %arg9[%c0_11, %c0_12, %c0_13], %6 {strides = array<i32>} : memref<4x8x128xf32, #tpu.memory_space<vmem>>, vector<4x8x128xf32>,
    } else {
    }
    %c0_i32_1 = arith.constant 0 : i32
    %c2_i32 = arith.constant 2 : i32
    %3 = arith.addi %c0_i32_1, %c2_i32 : i32
    %c1_i32 = arith.constant 1 : i32
    scf.for %arg11 = %c0_i32_1 to %3 step %c1_i32  : i32 {
      %c1_i32_3 = arith.constant 1 : i32
      %4 = arith.muli %arg11, %c1_i32_3 : i32
      %c0_i32_4 = arith.constant 0 : i32
      %5 = arith.addi %c0_i32_4, %4 : i32
      %c8_i32 = arith.constant 8 : i32
      %6 = arith.muli %5, %c8_i32 : i32
      %7 = tpu.assume_multiple %6, 8 : i32
      %8 = arith.index_cast %7 : i32 to index
      %c0 = arith.constant 0 : index
      %9 = vector.load %arg1[%8, %c0] : memref<16x128xf32, #tpu.memory_space<vmem>>, vector<8x128xf32>
      %10 = arith.truncf %9 : vector<8x128xf32> to vector<8x128xbf16>
      %c0_5 = arith.constant 0 : index
      %c0_6 = arith.constant 0 : index
      %c0_7 = arith.constant 0 : index
      %11 = vector.load %arg2[%c0_5, %c0_6, %c0_7] : memref<4x128x512xbf16, #tpu.memory_space<vmem>>, vector<1x128x512xbf16>
      %12 = vector.shape_cast %11 : vector<1x128x512xbf16> to vector<128x512xbf16>
      %cst = arith.constant dense<0.000000e+00> : vector<8x512xf32>
      %13 = tpu.matmul %10, %12, %cst {dimension_numbers = #tpu.dot_dimension_numbers<[1], [0], [0], [1], [0, 0, 1, 1], [], []>} : vector<8x128xbf16>, vector<128x512xbf16>, vector<8x512xf32> -> vector<8x512xf32>
      %c0_8 = arith.constant 0 : index
      %c0_9 = arith.constant 0 : index
      %c0_10 = arith.constant 0 : index
      %14 = vector.load %arg4[%c0_8, %c0_9, %c0_10] : memref<4x1x512xf32, #tpu.memory_space<vmem>>, vector<1x1x512xf32>
      %15 = vector.shape_cast %14 : vector<1x1x512xf32> to vector<1x512xf32>
      %16 = vector.broadcast %15 : vector<1x512xf32> to vector<8x512xf32>
      %17 = arith.addf %13, %16 : vector<8x512xf32>
      %c0_11 = arith.constant 0 : index
      %c0_12 = arith.constant 0 : index
      %c0_13 = arith.constant 0 : index
      %18 = vector.load %arg8[%c0_11, %c0_12, %c0_13] : memref<4x8x128xf32, #tpu.memory_space<vmem>>, vector<1x1x128xf32>
      %19 = vector.shape_cast %18 : vector<1x1x128xf32> to vector<1x128xf32>
      %c0_14 = arith.constant 0 : index
      %c0_15 = arith.constant 0 : index
      %c0_16 = arith.constant 0 : index
      %20 = vector.load %arg9[%c0_14, %c0_15, %c0_16] : memref<4x8x128xf32, #tpu.memory_space<vmem>>, vector<1x1x128xf32>
      %21 = vector.shape_cast %20 : vector<1x1x128xf32> to vector<1x128xf32>
      %22 = vector.extract_strided_slice %17 {offsets = [0, 0], sizes = [1, 512], strides = [1, 1]} : vector<8x512xf32> to vector<1x512xf32>
      %23 = arith.truncf %19 : vector<1x128xf32> to vector<1x128xbf16>
      %c0_17 = arith.constant 0 : index
      %c0_18 = arith.constant 0 : index
      %c0_19 = arith.constant 0 : index
      %24 = vector.load %arg3[%c0_17, %c0_18, %c0_19] : memref<4x128x512xbf16, #tpu.memory_space<vmem>>, vector<1x128x512xbf16>
      %25 = vector.shape_cast %24 : vector<1x128x512xbf16> to vector<128x512xbf16>
      %cst_20 = arith.constant dense<0.000000e+00> : vector<1x512xf32>
      %26 = tpu.matmul %23, %25, %cst_20 {dimension_numbers = #tpu.dot_dimension_numbers<[1], [0], [0], [1], [0, 0, 1, 1], [], []>} : vector<1x128xbf16>, vector<128x512xbf16>, vector<1x512xf32> -> vector<1x512xf32>
      %27 = arith.addf %22, %26 : vector<1x512xf32>
      %28 = vector.extract_strided_slice %27 {offsets = [0, 0], sizes = [1, 128], strides = [1, 1]} : vector<1x512xf32> to vector<1x128xf32>
      %cst_21 = arith.constant 0.000000e+00 : f32
      %29 = vector.broadcast %cst_21 : f32 to vector<1x128xf32>
      %30 = arith.subf %29, %28 : vector<1x128xf32>
      %31 = math.exp %30 : vector<1x128xf32>
      %cst_22 = arith.constant 1.000000e+00 : f32
      %32 = vector.broadcast %cst_22 : f32 to vector<1x128xf32>
      %33 = arith.addf %32, %31 : vector<1x128xf32>
      %34 = tpu.reciprocal %33 {approx = true} : vector<1x128xf32> -> vector<1x128xf32>
      %35 = vector.extract_strided_slice %27 {offsets = [0, 128], sizes = [1, 128], strides = [1, 1]} : vector<1x512xf32> to vector<1x128xf32>
      %cst_23 = arith.constant 0.000000e+00 : f32
      %36 = vector.broadcast %cst_23 : f32 to vector<1x128xf32>
      %37 = arith.subf %36, %35 : vector<1x128xf32>
      %38 = math.exp %37 : vector<1x128xf32>
      %cst_24 = arith.constant 1.000000e+00 : f32
      %39 = vector.broadcast %cst_24 : f32 to vector<1x128xf32>
      %40 = arith.addf %39, %38 : vector<1x128xf32>
      %41 = tpu.reciprocal %40 {approx = true} : vector<1x128xf32> -> vector<1x128xf32>
      %42 = vector.extract_strided_slice %27 {offsets = [0, 256], sizes = [1, 128], strides = [1, 1]} : vector<1x512xf32> to vector<1x128xf32>
      %43 = math.tanh %42 : vector<1x128xf32>
      %44 = vector.extract_strided_slice %27 {offsets = [0, 384], sizes = [1, 128], strides = [1, 1]} : vector<1x512xf32> to vector<1x128xf32>
      %cst_25 = arith.constant 0.000000e+00 : f32
      %45 = vector.broadcast %cst_25 : f32 to vector<1x128xf32>
      %46 = arith.subf %45, %44 : vector<1x128xf32>
      %47 = math.exp %46 : vector<1x128xf32>
      %cst_26 = arith.constant 1.000000e+00 : f32
      %48 = vector.broadcast %cst_26 : f32 to vector<1x128xf32>
      %49 = arith.addf %48, %47 : vector<1x128xf32>
      %50 = tpu.reciprocal %49 {approx = true} : vector<1x128xf32> -> vector<1x128xf32>
      %51 = arith.mulf %41, %21 : vector<1x128xf32>
      %52 = arith.mulf %34, %43 : vector<1x128xf32>
      %53 = arith.addf %51, %52 : vector<1x128xf32>
      %54 = math.tanh %53 : vector<1x128xf32>
      %55 = arith.mulf %50, %54 : vector<1x128xf32>
      %c0_27 = arith.constant 0 : index
      %c0_28 = arith.constant 0 : index
      %c0_29 = arith.constant 0 : index
      %56 = vector.load %arg8[%c0_27, %c0_28, %c0_29] : memref<4x8x128xf32, #tpu.memory_space<vmem>>, vector<1x1x128xf32>
      %57 = vector.shape_cast %56 : vector<1x1x128xf32> to vector<1x128xf32>
      %58 = vector.shape_cast %55 : vector<1x128xf32> to vector<1x1x128xf32>
      tpu.vector_store %arg8[%c0_27, %c0_28, %c0_29], %58 {strides = array<i32>} : memref<4x8x128xf32, #tpu.memory_space<vmem>>, vector<1x1x128xf32>,
      %c0_30 = arith.constant 0 : index
      %c0_31 = arith.constant 0 : index
      %c0_32 = arith.constant 0 : index
      %59 = vector.load %arg9[%c0_30, %c0_31, %c0_32] : memref<4x8x128xf32, #tpu.memory_space<vmem>>, vector<1x1x128xf32>
      %60 = vector.shape_cast %59 : vector<1x1x128xf32> to vector<1x128xf32>
      %61 = vector.shape_cast %53 : vector<1x128xf32> to vector<1x1x128xf32>
      tpu.vector_store %arg9[%c0_30, %c0_31, %c0_32], %61 {strides = array<i32>} : memref<4x8x128xf32, #tpu.memory_space<vmem>>, vector<1x1x128xf32>,
      %c0_33 = arith.constant 0 : index
      %c0_34 = arith.constant 0 : index
      %62 = vector.load %arg10[%c0_33, %c0_34] : memref<8x128xf32, #tpu.memory_space<vmem>>, vector<1x128xf32>
      tpu.vector_store %arg10[%c0_33, %c0_34], %55 {strides = array<i32>} : memref<8x128xf32, #tpu.memory_space<vmem>>, vector<1x128xf32>,
      %c0_35 = arith.constant 0 : index
      %c0_36 = arith.constant 0 : index
      %c0_37 = arith.constant 0 : index
      %63 = vector.load %arg8[%c0_35, %c0_36, %c0_37] : memref<4x8x128xf32, #tpu.memory_space<vmem>>, vector<1x1x128xf32>
      %64 = vector.shape_cast %63 : vector<1x1x128xf32> to vector<1x128xf32>
      %c0_38 = arith.constant 0 : index
      %c0_39 = arith.constant 0 : index
      %c0_40 = arith.constant 0 : index
      %65 = vector.load %arg9[%c0_38, %c0_39, %c0_40] : memref<4x8x128xf32, #tpu.memory_space<vmem>>, vector<1x1x128xf32>
      %66 = vector.shape_cast %65 : vector<1x1x128xf32> to vector<1x128xf32>
      %67 = vector.extract_strided_slice %17 {offsets = [1, 0], sizes = [1, 512], strides = [1, 1]} : vector<8x512xf32> to vector<1x512xf32>
      %68 = arith.truncf %64 : vector<1x128xf32> to vector<1x128xbf16>
      %c0_41 = arith.constant 0 : index
      %c0_42 = arith.constant 0 : index
      %c0_43 = arith.constant 0 : index
      %69 = vector.load %arg3[%c0_41, %c0_42, %c0_43] : memref<4x128x512xbf16, #tpu.memory_space<vmem>>, vector<1x128x512xbf16>
      %70 = vector.shape_cast %69 : vector<1x128x512xbf16> to vector<128x512xbf16>
      %cst_44 = arith.constant dense<0.000000e+00> : vector<1x512xf32>
      %71 = tpu.matmul %68, %70, %cst_44 {dimension_numbers = #tpu.dot_dimension_numbers<[1], [0], [0], [1], [0, 0, 1, 1], [], []>} : vector<1x128xbf16>, vector<128x512xbf16>, vector<1x512xf32> -> vector<1x512xf32>
      %72 = arith.addf %67, %71 : vector<1x512xf32>
      %73 = vector.extract_strided_slice %72 {offsets = [0, 0], sizes = [1, 128], strides = [1, 1]} : vector<1x512xf32> to vector<1x128xf32>
      %cst_45 = arith.constant 0.000000e+00 : f32
      %74 = vector.broadcast %cst_45 : f32 to vector<1x128xf32>
      %75 = arith.subf %74, %73 : vector<1x128xf32>
      %76 = math.exp %75 : vector<1x128xf32>
      %cst_46 = arith.constant 1.000000e+00 : f32
      %77 = vector.broadcast %cst_46 : f32 to vector<1x128xf32>
      %78 = arith.addf %77, %76 : vector<1x128xf32>
      %79 = tpu.reciprocal %78 {approx = true} : vector<1x128xf32> -> vector<1x128xf32>
      %80 = vector.extract_strided_slice %72 {offsets = [0, 128], sizes = [1, 128], strides = [1, 1]} : vector<1x512xf32> to vector<1x128xf32>
      %cst_47 = arith.constant 0.000000e+00 : f32
      %81 = vector.broadcast %cst_47 : f32 to vector<1x128xf32>
      %82 = arith.subf %81, %80 : vector<1x128xf32>
      %83 = math.exp %82 : vector<1x128xf32>
      %cst_48 = arith.constant 1.000000e+00 : f32
      %84 = vector.broadcast %cst_48 : f32 to vector<1x128xf32>
      %85 = arith.addf %84, %83 : vector<1x128xf32>
      %86 = tpu.reciprocal %85 {approx = true} : vector<1x128xf32> -> vector<1x128xf32>
      %87 = vector.extract_strided_slice %72 {offsets = [0, 256], sizes = [1, 128], strides = [1, 1]} : vector<1x512xf32> to vector<1x128xf32>
      %88 = math.tanh %87 : vector<1x128xf32>
      %89 = vector.extract_strided_slice %72 {offsets = [0, 384], sizes = [1, 128], strides = [1, 1]} : vector<1x512xf32> to vector<1x128xf32>
      %cst_49 = arith.constant 0.000000e+00 : f32
      %90 = vector.broadcast %cst_49 : f32 to vector<1x128xf32>
      %91 = arith.subf %90, %89 : vector<1x128xf32>
      %92 = math.exp %91 : vector<1x128xf32>
      %cst_50 = arith.constant 1.000000e+00 : f32
      %93 = vector.broadcast %cst_50 : f32 to vector<1x128xf32>
      %94 = arith.addf %93, %92 : vector<1x128xf32>
      %95 = tpu.reciprocal %94 {approx = true} : vector<1x128xf32> -> vector<1x128xf32>
      %96 = arith.mulf %86, %66 : vector<1x128xf32>
      %97 = arith.mulf %79, %88 : vector<1x128xf32>
      %98 = arith.addf %96, %97 : vector<1x128xf32>
      %99 = math.tanh %98 : vector<1x128xf32>
      %100 = arith.mulf %95, %99 : vector<1x128xf32>
      %c0_51 = arith.constant 0 : index
      %c0_52 = arith.constant 0 : index
      %c0_53 = arith.constant 0 : index
      %101 = vector.load %arg8[%c0_51, %c0_52, %c0_53] : memref<4x8x128xf32, #tpu.memory_space<vmem>>, vector<1x1x128xf32>
      %102 = vector.shape_cast %101 : vector<1x1x128xf32> to vector<1x128xf32>
      %103 = vector.shape_cast %100 : vector<1x128xf32> to vector<1x1x128xf32>
      tpu.vector_store %arg8[%c0_51, %c0_52, %c0_53], %103 {strides = array<i32>} : memref<4x8x128xf32, #tpu.memory_space<vmem>>, vector<1x1x128xf32>,
      %c0_54 = arith.constant 0 : index
      %c0_55 = arith.constant 0 : index
      %c0_56 = arith.constant 0 : index
      %104 = vector.load %arg9[%c0_54, %c0_55, %c0_56] : memref<4x8x128xf32, #tpu.memory_space<vmem>>, vector<1x1x128xf32>
      %105 = vector.shape_cast %104 : vector<1x1x128xf32> to vector<1x128xf32>
      %106 = vector.shape_cast %98 : vector<1x128xf32> to vector<1x1x128xf32>
      tpu.vector_store %arg9[%c0_54, %c0_55, %c0_56], %106 {strides = array<i32>} : memref<4x8x128xf32, #tpu.memory_space<vmem>>, vector<1x1x128xf32>,
      %c1 = arith.constant 1 : index
      %c0_57 = arith.constant 0 : index
      %107 = vector.load %arg10[%c1, %c0_57] : memref<8x128xf32, #tpu.memory_space<vmem>>, vector<1x128xf32>
      tpu.vector_store %arg10[%c1, %c0_57], %100 {strides = array<i32>} : memref<8x128xf32, #tpu.memory_space<vmem>>, vector<1x128xf32>,
      %c0_58 = arith.constant 0 : index
      %c0_59 = arith.constant 0 : index
      %c0_60 = arith.constant 0 : index
      %108 = vector.load %arg8[%c0_58, %c0_59, %c0_60] : memref<4x8x128xf32, #tpu.memory_space<vmem>>, vector<1x1x128xf32>
      %109 = vector.shape_cast %108 : vector<1x1x128xf32> to vector<1x128xf32>
      %c0_61 = arith.constant 0 : index
      %c0_62 = arith.constant 0 : index
      %c0_63 = arith.constant 0 : index
      %110 = vector.load %arg9[%c0_61, %c0_62, %c0_63] : memref<4x8x128xf32, #tpu.memory_space<vmem>>, vector<1x1x128xf32>
      %111 = vector.shape_cast %110 : vector<1x1x128xf32> to vector<1x128xf32>
      %112 = vector.extract_strided_slice %17 {offsets = [2, 0], sizes = [1, 512], strides = [1, 1]} : vector<8x512xf32> to vector<1x512xf32>
      %113 = arith.truncf %109 : vector<1x128xf32> to vector<1x128xbf16>
      %c0_64 = arith.constant 0 : index
      %c0_65 = arith.constant 0 : index
      %c0_66 = arith.constant 0 : index
      %114 = vector.load %arg3[%c0_64, %c0_65, %c0_66] : memref<4x128x512xbf16, #tpu.memory_space<vmem>>, vector<1x128x512xbf16>
      %115 = vector.shape_cast %114 : vector<1x128x512xbf16> to vector<128x512xbf16>
      %cst_67 = arith.constant dense<0.000000e+00> : vector<1x512xf32>
      %116 = tpu.matmul %113, %115, %cst_67 {dimension_numbers = #tpu.dot_dimension_numbers<[1], [0], [0], [1], [0, 0, 1, 1], [], []>} : vector<1x128xbf16>, vector<128x512xbf16>, vector<1x512xf32> -> vector<1x512xf32>
      %117 = arith.addf %112, %116 : vector<1x512xf32>
      %118 = vector.extract_strided_slice %117 {offsets = [0, 0], sizes = [1, 128], strides = [1, 1]} : vector<1x512xf32> to vector<1x128xf32>
      %cst_68 = arith.constant 0.000000e+00 : f32
      %119 = vector.broadcast %cst_68 : f32 to vector<1x128xf32>
      %120 = arith.subf %119, %118 : vector<1x128xf32>
      %121 = math.exp %120 : vector<1x128xf32>
      %cst_69 = arith.constant 1.000000e+00 : f32
      %122 = vector.broadcast %cst_69 : f32 to vector<1x128xf32>
      %123 = arith.addf %122, %121 : vector<1x128xf32>
      %124 = tpu.reciprocal %123 {approx = true} : vector<1x128xf32> -> vector<1x128xf32>
      %125 = vector.extract_strided_slice %117 {offsets = [0, 128], sizes = [1, 128], strides = [1, 1]} : vector<1x512xf32> to vector<1x128xf32>
      %cst_70 = arith.constant 0.000000e+00 : f32
      %126 = vector.broadcast %cst_70 : f32 to vector<1x128xf32>
      %127 = arith.subf %126, %125 : vector<1x128xf32>
      %128 = math.exp %127 : vector<1x128xf32>
      %cst_71 = arith.constant 1.000000e+00 : f32
      %129 = vector.broadcast %cst_71 : f32 to vector<1x128xf32>
      %130 = arith.addf %129, %128 : vector<1x128xf32>
      %131 = tpu.reciprocal %130 {approx = true} : vector<1x128xf32> -> vector<1x128xf32>
      %132 = vector.extract_strided_slice %117 {offsets = [0, 256], sizes = [1, 128], strides = [1, 1]} : vector<1x512xf32> to vector<1x128xf32>
      %133 = math.tanh %132 : vector<1x128xf32>
      %134 = vector.extract_strided_slice %117 {offsets = [0, 384], sizes = [1, 128], strides = [1, 1]} : vector<1x512xf32> to vector<1x128xf32>
      %cst_72 = arith.constant 0.000000e+00 : f32
      %135 = vector.broadcast %cst_72 : f32 to vector<1x128xf32>
      %136 = arith.subf %135, %134 : vector<1x128xf32>
      %137 = math.exp %136 : vector<1x128xf32>
      %cst_73 = arith.constant 1.000000e+00 : f32
      %138 = vector.broadcast %cst_73 : f32 to vector<1x128xf32>
      %139 = arith.addf %138, %137 : vector<1x128xf32>
      %140 = tpu.reciprocal %139 {approx = true} : vector<1x128xf32> -> vector<1x128xf32>
      %141 = arith.mulf %131, %111 : vector<1x128xf32>
      %142 = arith.mulf %124, %133 : vector<1x128xf32>
      %143 = arith.addf %141, %142 : vector<1x128xf32>
      %144 = math.tanh %143 : vector<1x128xf32>
      %145 = arith.mulf %140, %144 : vector<1x128xf32>
      %c0_74 = arith.constant 0 : index
      %c0_75 = arith.constant 0 : index
      %c0_76 = arith.constant 0 : index
      %146 = vector.load %arg8[%c0_74, %c0_75, %c0_76] : memref<4x8x128xf32, #tpu.memory_space<vmem>>, vector<1x1x128xf32>
      %147 = vector.shape_cast %146 : vector<1x1x128xf32> to vector<1x128xf32>
      %148 = vector.shape_cast %145 : vector<1x128xf32> to vector<1x1x128xf32>
      tpu.vector_store %arg8[%c0_74, %c0_75, %c0_76], %148 {strides = array<i32>} : memref<4x8x128xf32, #tpu.memory_space<vmem>>, vector<1x1x128xf32>,
      %c0_77 = arith.constant 0 : index
      %c0_78 = arith.constant 0 : index
      %c0_79 = arith.constant 0 : index
      %149 = vector.load %arg9[%c0_77, %c0_78, %c0_79] : memref<4x8x128xf32, #tpu.memory_space<vmem>>, vector<1x1x128xf32>
      %150 = vector.shape_cast %149 : vector<1x1x128xf32> to vector<1x128xf32>
      %151 = vector.shape_cast %143 : vector<1x128xf32> to vector<1x1x128xf32>
      tpu.vector_store %arg9[%c0_77, %c0_78, %c0_79], %151 {strides = array<i32>} : memref<4x8x128xf32, #tpu.memory_space<vmem>>, vector<1x1x128xf32>,
      %c2 = arith.constant 2 : index
      %c0_80 = arith.constant 0 : index
      %152 = vector.load %arg10[%c2, %c0_80] : memref<8x128xf32, #tpu.memory_space<vmem>>, vector<1x128xf32>
      tpu.vector_store %arg10[%c2, %c0_80], %145 {strides = array<i32>} : memref<8x128xf32, #tpu.memory_space<vmem>>, vector<1x128xf32>,
      %c0_81 = arith.constant 0 : index
      %c0_82 = arith.constant 0 : index
      %c0_83 = arith.constant 0 : index
      %153 = vector.load %arg8[%c0_81, %c0_82, %c0_83] : memref<4x8x128xf32, #tpu.memory_space<vmem>>, vector<1x1x128xf32>
      %154 = vector.shape_cast %153 : vector<1x1x128xf32> to vector<1x128xf32>
      %c0_84 = arith.constant 0 : index
      %c0_85 = arith.constant 0 : index
      %c0_86 = arith.constant 0 : index
      %155 = vector.load %arg9[%c0_84, %c0_85, %c0_86] : memref<4x8x128xf32, #tpu.memory_space<vmem>>, vector<1x1x128xf32>
      %156 = vector.shape_cast %155 : vector<1x1x128xf32> to vector<1x128xf32>
      %157 = vector.extract_strided_slice %17 {offsets = [3, 0], sizes = [1, 512], strides = [1, 1]} : vector<8x512xf32> to vector<1x512xf32>
      %158 = arith.truncf %154 : vector<1x128xf32> to vector<1x128xbf16>
      %c0_87 = arith.constant 0 : index
      %c0_88 = arith.constant 0 : index
      %c0_89 = arith.constant 0 : index
      %159 = vector.load %arg3[%c0_87, %c0_88, %c0_89] : memref<4x128x512xbf16, #tpu.memory_space<vmem>>, vector<1x128x512xbf16>
      %160 = vector.shape_cast %159 : vector<1x128x512xbf16> to vector<128x512xbf16>
      %cst_90 = arith.constant dense<0.000000e+00> : vector<1x512xf32>
      %161 = tpu.matmul %158, %160, %cst_90 {dimension_numbers = #tpu.dot_dimension_numbers<[1], [0], [0], [1], [0, 0, 1, 1], [], []>} : vector<1x128xbf16>, vector<128x512xbf16>, vector<1x512xf32> -> vector<1x512xf32>
      %162 = arith.addf %157, %161 : vector<1x512xf32>
      %163 = vector.extract_strided_slice %162 {offsets = [0, 0], sizes = [1, 128], strides = [1, 1]} : vector<1x512xf32> to vector<1x128xf32>
      %cst_91 = arith.constant 0.000000e+00 : f32
      %164 = vector.broadcast %cst_91 : f32 to vector<1x128xf32>
      %165 = arith.subf %164, %163 : vector<1x128xf32>
      %166 = math.exp %165 : vector<1x128xf32>
      %cst_92 = arith.constant 1.000000e+00 : f32
      %167 = vector.broadcast %cst_92 : f32 to vector<1x128xf32>
      %168 = arith.addf %167, %166 : vector<1x128xf32>
      %169 = tpu.reciprocal %168 {approx = true} : vector<1x128xf32> -> vector<1x128xf32>
      %170 = vector.extract_strided_slice %162 {offsets = [0, 128], sizes = [1, 128], strides = [1, 1]} : vector<1x512xf32> to vector<1x128xf32>
      %cst_93 = arith.constant 0.000000e+00 : f32
      %171 = vector.broadcast %cst_93 : f32 to vector<1x128xf32>
      %172 = arith.subf %171, %170 : vector<1x128xf32>
      %173 = math.exp %172 : vector<1x128xf32>
      %cst_94 = arith.constant 1.000000e+00 : f32
      %174 = vector.broadcast %cst_94 : f32 to vector<1x128xf32>
      %175 = arith.addf %174, %173 : vector<1x128xf32>
      %176 = tpu.reciprocal %175 {approx = true} : vector<1x128xf32> -> vector<1x128xf32>
      %177 = vector.extract_strided_slice %162 {offsets = [0, 256], sizes = [1, 128], strides = [1, 1]} : vector<1x512xf32> to vector<1x128xf32>
      %178 = math.tanh %177 : vector<1x128xf32>
      %179 = vector.extract_strided_slice %162 {offsets = [0, 384], sizes = [1, 128], strides = [1, 1]} : vector<1x512xf32> to vector<1x128xf32>
      %cst_95 = arith.constant 0.000000e+00 : f32
      %180 = vector.broadcast %cst_95 : f32 to vector<1x128xf32>
      %181 = arith.subf %180, %179 : vector<1x128xf32>
      %182 = math.exp %181 : vector<1x128xf32>
      %cst_96 = arith.constant 1.000000e+00 : f32
      %183 = vector.broadcast %cst_96 : f32 to vector<1x128xf32>
      %184 = arith.addf %183, %182 : vector<1x128xf32>
      %185 = tpu.reciprocal %184 {approx = true} : vector<1x128xf32> -> vector<1x128xf32>
      %186 = arith.mulf %176, %156 : vector<1x128xf32>
      %187 = arith.mulf %169, %178 : vector<1x128xf32>
      %188 = arith.addf %186, %187 : vector<1x128xf32>
      %189 = math.tanh %188 : vector<1x128xf32>
      %190 = arith.mulf %185, %189 : vector<1x128xf32>
      %c0_97 = arith.constant 0 : index
      %c0_98 = arith.constant 0 : index
      %c0_99 = arith.constant 0 : index
      %191 = vector.load %arg8[%c0_97, %c0_98, %c0_99] : memref<4x8x128xf32, #tpu.memory_space<vmem>>, vector<1x1x128xf32>
      %192 = vector.shape_cast %191 : vector<1x1x128xf32> to vector<1x128xf32>
      %193 = vector.shape_cast %190 : vector<1x128xf32> to vector<1x1x128xf32>
      tpu.vector_store %arg8[%c0_97, %c0_98, %c0_99], %193 {strides = array<i32>} : memref<4x8x128xf32, #tpu.memory_space<vmem>>, vector<1x1x128xf32>,
      %c0_100 = arith.constant 0 : index
      %c0_101 = arith.constant 0 : index
      %c0_102 = arith.constant 0 : index
      %194 = vector.load %arg9[%c0_100, %c0_101, %c0_102] : memref<4x8x128xf32, #tpu.memory_space<vmem>>, vector<1x1x128xf32>
      %195 = vector.shape_cast %194 : vector<1x1x128xf32> to vector<1x128xf32>
      %196 = vector.shape_cast %188 : vector<1x128xf32> to vector<1x1x128xf32>
      tpu.vector_store %arg9[%c0_100, %c0_101, %c0_102], %196 {strides = array<i32>} : memref<4x8x128xf32, #tpu.memory_space<vmem>>, vector<1x1x128xf32>,
      %c3 = arith.constant 3 : index
      %c0_103 = arith.constant 0 : index
      %197 = vector.load %arg10[%c3, %c0_103] : memref<8x128xf32, #tpu.memory_space<vmem>>, vector<1x128xf32>
      tpu.vector_store %arg10[%c3, %c0_103], %190 {strides = array<i32>} : memref<8x128xf32, #tpu.memory_space<vmem>>, vector<1x128xf32>,
      %c0_104 = arith.constant 0 : index
      %c0_105 = arith.constant 0 : index
      %c0_106 = arith.constant 0 : index
      %198 = vector.load %arg8[%c0_104, %c0_105, %c0_106] : memref<4x8x128xf32, #tpu.memory_space<vmem>>, vector<1x1x128xf32>
      %199 = vector.shape_cast %198 : vector<1x1x128xf32> to vector<1x128xf32>
      %c0_107 = arith.constant 0 : index
      %c0_108 = arith.constant 0 : index
      %c0_109 = arith.constant 0 : index
      %200 = vector.load %arg9[%c0_107, %c0_108, %c0_109] : memref<4x8x128xf32, #tpu.memory_space<vmem>>, vector<1x1x128xf32>
      %201 = vector.shape_cast %200 : vector<1x1x128xf32> to vector<1x128xf32>
      %202 = vector.extract_strided_slice %17 {offsets = [4, 0], sizes = [1, 512], strides = [1, 1]} : vector<8x512xf32> to vector<1x512xf32>
      %203 = arith.truncf %199 : vector<1x128xf32> to vector<1x128xbf16>
      %c0_110 = arith.constant 0 : index
      %c0_111 = arith.constant 0 : index
      %c0_112 = arith.constant 0 : index
      %204 = vector.load %arg3[%c0_110, %c0_111, %c0_112] : memref<4x128x512xbf16, #tpu.memory_space<vmem>>, vector<1x128x512xbf16>
      %205 = vector.shape_cast %204 : vector<1x128x512xbf16> to vector<128x512xbf16>
      %cst_113 = arith.constant dense<0.000000e+00> : vector<1x512xf32>
      %206 = tpu.matmul %203, %205, %cst_113 {dimension_numbers = #tpu.dot_dimension_numbers<[1], [0], [0], [1], [0, 0, 1, 1], [], []>} : vector<1x128xbf16>, vector<128x512xbf16>, vector<1x512xf32> -> vector<1x512xf32>
      %207 = arith.addf %202, %206 : vector<1x512xf32>
      %208 = vector.extract_strided_slice %207 {offsets = [0, 0], sizes = [1, 128], strides = [1, 1]} : vector<1x512xf32> to vector<1x128xf32>
      %cst_114 = arith.constant 0.000000e+00 : f32
      %209 = vector.broadcast %cst_114 : f32 to vector<1x128xf32>
      %210 = arith.subf %209, %208 : vector<1x128xf32>
      %211 = math.exp %210 : vector<1x128xf32>
      %cst_115 = arith.constant 1.000000e+00 : f32
      %212 = vector.broadcast %cst_115 : f32 to vector<1x128xf32>
      %213 = arith.addf %212, %211 : vector<1x128xf32>
      %214 = tpu.reciprocal %213 {approx = true} : vector<1x128xf32> -> vector<1x128xf32>
      %215 = vector.extract_strided_slice %207 {offsets = [0, 128], sizes = [1, 128], strides = [1, 1]} : vector<1x512xf32> to vector<1x128xf32>
      %cst_116 = arith.constant 0.000000e+00 : f32
      %216 = vector.broadcast %cst_116 : f32 to vector<1x128xf32>
      %217 = arith.subf %216, %215 : vector<1x128xf32>
      %218 = math.exp %217 : vector<1x128xf32>
      %cst_117 = arith.constant 1.000000e+00 : f32
      %219 = vector.broadcast %cst_117 : f32 to vector<1x128xf32>
      %220 = arith.addf %219, %218 : vector<1x128xf32>
      %221 = tpu.reciprocal %220 {approx = true} : vector<1x128xf32> -> vector<1x128xf32>
      %222 = vector.extract_strided_slice %207 {offsets = [0, 256], sizes = [1, 128], strides = [1, 1]} : vector<1x512xf32> to vector<1x128xf32>
      %223 = math.tanh %222 : vector<1x128xf32>
      %224 = vector.extract_strided_slice %207 {offsets = [0, 384], sizes = [1, 128], strides = [1, 1]} : vector<1x512xf32> to vector<1x128xf32>
      %cst_118 = arith.constant 0.000000e+00 : f32
      %225 = vector.broadcast %cst_118 : f32 to vector<1x128xf32>
      %226 = arith.subf %225, %224 : vector<1x128xf32>
      %227 = math.exp %226 : vector<1x128xf32>
      %cst_119 = arith.constant 1.000000e+00 : f32
      %228 = vector.broadcast %cst_119 : f32 to vector<1x128xf32>
      %229 = arith.addf %228, %227 : vector<1x128xf32>
      %230 = tpu.reciprocal %229 {approx = true} : vector<1x128xf32> -> vector<1x128xf32>
      %231 = arith.mulf %221, %201 : vector<1x128xf32>
      %232 = arith.mulf %214, %223 : vector<1x128xf32>
      %233 = arith.addf %231, %232 : vector<1x128xf32>
      %234 = math.tanh %233 : vector<1x128xf32>
      %235 = arith.mulf %230, %234 : vector<1x128xf32>
      %c0_120 = arith.constant 0 : index
      %c0_121 = arith.constant 0 : index
      %c0_122 = arith.constant 0 : index
      %236 = vector.load %arg8[%c0_120, %c0_121, %c0_122] : memref<4x8x128xf32, #tpu.memory_space<vmem>>, vector<1x1x128xf32>
      %237 = vector.shape_cast %236 : vector<1x1x128xf32> to vector<1x128xf32>
      %238 = vector.shape_cast %235 : vector<1x128xf32> to vector<1x1x128xf32>
      tpu.vector_store %arg8[%c0_120, %c0_121, %c0_122], %238 {strides = array<i32>} : memref<4x8x128xf32, #tpu.memory_space<vmem>>, vector<1x1x128xf32>,
      %c0_123 = arith.constant 0 : index
      %c0_124 = arith.constant 0 : index
      %c0_125 = arith.constant 0 : index
      %239 = vector.load %arg9[%c0_123, %c0_124, %c0_125] : memref<4x8x128xf32, #tpu.memory_space<vmem>>, vector<1x1x128xf32>
      %240 = vector.shape_cast %239 : vector<1x1x128xf32> to vector<1x128xf32>
      %241 = vector.shape_cast %233 : vector<1x128xf32> to vector<1x1x128xf32>
      tpu.vector_store %arg9[%c0_123, %c0_124, %c0_125], %241 {strides = array<i32>} : memref<4x8x128xf32, #tpu.memory_space<vmem>>, vector<1x1x128xf32>,
      %c4 = arith.constant 4 : index
      %c0_126 = arith.constant 0 : index
      %242 = vector.load %arg10[%c4, %c0_126] : memref<8x128xf32, #tpu.memory_space<vmem>>, vector<1x128xf32>
      tpu.vector_store %arg10[%c4, %c0_126], %235 {strides = array<i32>} : memref<8x128xf32, #tpu.memory_space<vmem>>, vector<1x128xf32>,
      %c0_127 = arith.constant 0 : index
      %c0_128 = arith.constant 0 : index
      %c0_129 = arith.constant 0 : index
      %243 = vector.load %arg8[%c0_127, %c0_128, %c0_129] : memref<4x8x128xf32, #tpu.memory_space<vmem>>, vector<1x1x128xf32>
      %244 = vector.shape_cast %243 : vector<1x1x128xf32> to vector<1x128xf32>
      %c0_130 = arith.constant 0 : index
      %c0_131 = arith.constant 0 : index
      %c0_132 = arith.constant 0 : index
      %245 = vector.load %arg9[%c0_130, %c0_131, %c0_132] : memref<4x8x128xf32, #tpu.memory_space<vmem>>, vector<1x1x128xf32>
      %246 = vector.shape_cast %245 : vector<1x1x128xf32> to vector<1x128xf32>
      %247 = vector.extract_strided_slice %17 {offsets = [5, 0], sizes = [1, 512], strides = [1, 1]} : vector<8x512xf32> to vector<1x512xf32>
      %248 = arith.truncf %244 : vector<1x128xf32> to vector<1x128xbf16>
      %c0_133 = arith.constant 0 : index
      %c0_134 = arith.constant 0 : index
      %c0_135 = arith.constant 0 : index
      %249 = vector.load %arg3[%c0_133, %c0_134, %c0_135] : memref<4x128x512xbf16, #tpu.memory_space<vmem>>, vector<1x128x512xbf16>
      %250 = vector.shape_cast %249 : vector<1x128x512xbf16> to vector<128x512xbf16>
      %cst_136 = arith.constant dense<0.000000e+00> : vector<1x512xf32>
      %251 = tpu.matmul %248, %250, %cst_136 {dimension_numbers = #tpu.dot_dimension_numbers<[1], [0], [0], [1], [0, 0, 1, 1], [], []>} : vector<1x128xbf16>, vector<128x512xbf16>, vector<1x512xf32> -> vector<1x512xf32>
      %252 = arith.addf %247, %251 : vector<1x512xf32>
      %253 = vector.extract_strided_slice %252 {offsets = [0, 0], sizes = [1, 128], strides = [1, 1]} : vector<1x512xf32> to vector<1x128xf32>
      %cst_137 = arith.constant 0.000000e+00 : f32
      %254 = vector.broadcast %cst_137 : f32 to vector<1x128xf32>
      %255 = arith.subf %254, %253 : vector<1x128xf32>
      %256 = math.exp %255 : vector<1x128xf32>
      %cst_138 = arith.constant 1.000000e+00 : f32
      %257 = vector.broadcast %cst_138 : f32 to vector<1x128xf32>
      %258 = arith.addf %257, %256 : vector<1x128xf32>
      %259 = tpu.reciprocal %258 {approx = true} : vector<1x128xf32> -> vector<1x128xf32>
      %260 = vector.extract_strided_slice %252 {offsets = [0, 128], sizes = [1, 128], strides = [1, 1]} : vector<1x512xf32> to vector<1x128xf32>
      %cst_139 = arith.constant 0.000000e+00 : f32
      %261 = vector.broadcast %cst_139 : f32 to vector<1x128xf32>
      %262 = arith.subf %261, %260 : vector<1x128xf32>
      %263 = math.exp %262 : vector<1x128xf32>
      %cst_140 = arith.constant 1.000000e+00 : f32
      %264 = vector.broadcast %cst_140 : f32 to vector<1x128xf32>
      %265 = arith.addf %264, %263 : vector<1x128xf32>
      %266 = tpu.reciprocal %265 {approx = true} : vector<1x128xf32> -> vector<1x128xf32>
      %267 = vector.extract_strided_slice %252 {offsets = [0, 256], sizes = [1, 128], strides = [1, 1]} : vector<1x512xf32> to vector<1x128xf32>
      %268 = math.tanh %267 : vector<1x128xf32>
      %269 = vector.extract_strided_slice %252 {offsets = [0, 384], sizes = [1, 128], strides = [1, 1]} : vector<1x512xf32> to vector<1x128xf32>
      %cst_141 = arith.constant 0.000000e+00 : f32
      %270 = vector.broadcast %cst_141 : f32 to vector<1x128xf32>
      %271 = arith.subf %270, %269 : vector<1x128xf32>
      %272 = math.exp %271 : vector<1x128xf32>
      %cst_142 = arith.constant 1.000000e+00 : f32
      %273 = vector.broadcast %cst_142 : f32 to vector<1x128xf32>
      %274 = arith.addf %273, %272 : vector<1x128xf32>
      %275 = tpu.reciprocal %274 {approx = true} : vector<1x128xf32> -> vector<1x128xf32>
      %276 = arith.mulf %266, %246 : vector<1x128xf32>
      %277 = arith.mulf %259, %268 : vector<1x128xf32>
      %278 = arith.addf %276, %277 : vector<1x128xf32>
      %279 = math.tanh %278 : vector<1x128xf32>
      %280 = arith.mulf %275, %279 : vector<1x128xf32>
      %c0_143 = arith.constant 0 : index
      %c0_144 = arith.constant 0 : index
      %c0_145 = arith.constant 0 : index
      %281 = vector.load %arg8[%c0_143, %c0_144, %c0_145] : memref<4x8x128xf32, #tpu.memory_space<vmem>>, vector<1x1x128xf32>
      %282 = vector.shape_cast %281 : vector<1x1x128xf32> to vector<1x128xf32>
      %283 = vector.shape_cast %280 : vector<1x128xf32> to vector<1x1x128xf32>
      tpu.vector_store %arg8[%c0_143, %c0_144, %c0_145], %283 {strides = array<i32>} : memref<4x8x128xf32, #tpu.memory_space<vmem>>, vector<1x1x128xf32>,
      %c0_146 = arith.constant 0 : index
      %c0_147 = arith.constant 0 : index
      %c0_148 = arith.constant 0 : index
      %284 = vector.load %arg9[%c0_146, %c0_147, %c0_148] : memref<4x8x128xf32, #tpu.memory_space<vmem>>, vector<1x1x128xf32>
      %285 = vector.shape_cast %284 : vector<1x1x128xf32> to vector<1x128xf32>
      %286 = vector.shape_cast %278 : vector<1x128xf32> to vector<1x1x128xf32>
      tpu.vector_store %arg9[%c0_146, %c0_147, %c0_148], %286 {strides = array<i32>} : memref<4x8x128xf32, #tpu.memory_space<vmem>>, vector<1x1x128xf32>,
      %c5 = arith.constant 5 : index
      %c0_149 = arith.constant 0 : index
      %287 = vector.load %arg10[%c5, %c0_149] : memref<8x128xf32, #tpu.memory_space<vmem>>, vector<1x128xf32>
      tpu.vector_store %arg10[%c5, %c0_149], %280 {strides = array<i32>} : memref<8x128xf32, #tpu.memory_space<vmem>>, vector<1x128xf32>,
      %c0_150 = arith.constant 0 : index
      %c0_151 = arith.constant 0 : index
      %c0_152 = arith.constant 0 : index
      %288 = vector.load %arg8[%c0_150, %c0_151, %c0_152] : memref<4x8x128xf32, #tpu.memory_space<vmem>>, vector<1x1x128xf32>
      %289 = vector.shape_cast %288 : vector<1x1x128xf32> to vector<1x128xf32>
      %c0_153 = arith.constant 0 : index
      %c0_154 = arith.constant 0 : index
      %c0_155 = arith.constant 0 : index
      %290 = vector.load %arg9[%c0_153, %c0_154, %c0_155] : memref<4x8x128xf32, #tpu.memory_space<vmem>>, vector<1x1x128xf32>
      %291 = vector.shape_cast %290 : vector<1x1x128xf32> to vector<1x128xf32>
      %292 = vector.extract_strided_slice %17 {offsets = [6, 0], sizes = [1, 512], strides = [1, 1]} : vector<8x512xf32> to vector<1x512xf32>
      %293 = arith.truncf %289 : vector<1x128xf32> to vector<1x128xbf16>
      %c0_156 = arith.constant 0 : index
      %c0_157 = arith.constant 0 : index
      %c0_158 = arith.constant 0 : index
      %294 = vector.load %arg3[%c0_156, %c0_157, %c0_158] : memref<4x128x512xbf16, #tpu.memory_space<vmem>>, vector<1x128x512xbf16>
      %295 = vector.shape_cast %294 : vector<1x128x512xbf16> to vector<128x512xbf16>
      %cst_159 = arith.constant dense<0.000000e+00> : vector<1x512xf32>
      %296 = tpu.matmul %293, %295, %cst_159 {dimension_numbers = #tpu.dot_dimension_numbers<[1], [0], [0], [1], [0, 0, 1, 1], [], []>} : vector<1x128xbf16>, vector<128x512xbf16>, vector<1x512xf32> -> vector<1x512xf32>
      %297 = arith.addf %292, %296 : vector<1x512xf32>
      %298 = vector.extract_strided_slice %297 {offsets = [0, 0], sizes = [1, 128], strides = [1, 1]} : vector<1x512xf32> to vector<1x128xf32>
      %cst_160 = arith.constant 0.000000e+00 : f32
      %299 = vector.broadcast %cst_160 : f32 to vector<1x128xf32>
      %300 = arith.subf %299, %298 : vector<1x128xf32>
      %301 = math.exp %300 : vector<1x128xf32>
      %cst_161 = arith.constant 1.000000e+00 : f32
      %302 = vector.broadcast %cst_161 : f32 to vector<1x128xf32>
      %303 = arith.addf %302, %301 : vector<1x128xf32>
      %304 = tpu.reciprocal %303 {approx = true} : vector<1x128xf32> -> vector<1x128xf32>
      %305 = vector.extract_strided_slice %297 {offsets = [0, 128], sizes = [1, 128], strides = [1, 1]} : vector<1x512xf32> to vector<1x128xf32>
      %cst_162 = arith.constant 0.000000e+00 : f32
      %306 = vector.broadcast %cst_162 : f32 to vector<1x128xf32>
      %307 = arith.subf %306, %305 : vector<1x128xf32>
      %308 = math.exp %307 : vector<1x128xf32>
      %cst_163 = arith.constant 1.000000e+00 : f32
      %309 = vector.broadcast %cst_163 : f32 to vector<1x128xf32>
      %310 = arith.addf %309, %308 : vector<1x128xf32>
      %311 = tpu.reciprocal %310 {approx = true} : vector<1x128xf32> -> vector<1x128xf32>
      %312 = vector.extract_strided_slice %297 {offsets = [0, 256], sizes = [1, 128], strides = [1, 1]} : vector<1x512xf32> to vector<1x128xf32>
      %313 = math.tanh %312 : vector<1x128xf32>
      %314 = vector.extract_strided_slice %297 {offsets = [0, 384], sizes = [1, 128], strides = [1, 1]} : vector<1x512xf32> to vector<1x128xf32>
      %cst_164 = arith.constant 0.000000e+00 : f32
      %315 = vector.broadcast %cst_164 : f32 to vector<1x128xf32>
      %316 = arith.subf %315, %314 : vector<1x128xf32>
      %317 = math.exp %316 : vector<1x128xf32>
      %cst_165 = arith.constant 1.000000e+00 : f32
      %318 = vector.broadcast %cst_165 : f32 to vector<1x128xf32>
      %319 = arith.addf %318, %317 : vector<1x128xf32>
      %320 = tpu.reciprocal %319 {approx = true} : vector<1x128xf32> -> vector<1x128xf32>
      %321 = arith.mulf %311, %291 : vector<1x128xf32>
      %322 = arith.mulf %304, %313 : vector<1x128xf32>
      %323 = arith.addf %321, %322 : vector<1x128xf32>
      %324 = math.tanh %323 : vector<1x128xf32>
      %325 = arith.mulf %320, %324 : vector<1x128xf32>
      %c0_166 = arith.constant 0 : index
      %c0_167 = arith.constant 0 : index
      %c0_168 = arith.constant 0 : index
      %326 = vector.load %arg8[%c0_166, %c0_167, %c0_168] : memref<4x8x128xf32, #tpu.memory_space<vmem>>, vector<1x1x128xf32>
      %327 = vector.shape_cast %326 : vector<1x1x128xf32> to vector<1x128xf32>
      %328 = vector.shape_cast %325 : vector<1x128xf32> to vector<1x1x128xf32>
      tpu.vector_store %arg8[%c0_166, %c0_167, %c0_168], %328 {strides = array<i32>} : memref<4x8x128xf32, #tpu.memory_space<vmem>>, vector<1x1x128xf32>,
      %c0_169 = arith.constant 0 : index
      %c0_170 = arith.constant 0 : index
      %c0_171 = arith.constant 0 : index
      %329 = vector.load %arg9[%c0_169, %c0_170, %c0_171] : memref<4x8x128xf32, #tpu.memory_space<vmem>>, vector<1x1x128xf32>
      %330 = vector.shape_cast %329 : vector<1x1x128xf32> to vector<1x128xf32>
      %331 = vector.shape_cast %323 : vector<1x128xf32> to vector<1x1x128xf32>
      tpu.vector_store %arg9[%c0_169, %c0_170, %c0_171], %331 {strides = array<i32>} : memref<4x8x128xf32, #tpu.memory_space<vmem>>, vector<1x1x128xf32>,
      %c6 = arith.constant 6 : index
      %c0_172 = arith.constant 0 : index
      %332 = vector.load %arg10[%c6, %c0_172] : memref<8x128xf32, #tpu.memory_space<vmem>>, vector<1x128xf32>
      tpu.vector_store %arg10[%c6, %c0_172], %325 {strides = array<i32>} : memref<8x128xf32, #tpu.memory_space<vmem>>, vector<1x128xf32>,
      %c0_173 = arith.constant 0 : index
      %c0_174 = arith.constant 0 : index
      %c0_175 = arith.constant 0 : index
      %333 = vector.load %arg8[%c0_173, %c0_174, %c0_175] : memref<4x8x128xf32, #tpu.memory_space<vmem>>, vector<1x1x128xf32>
      %334 = vector.shape_cast %333 : vector<1x1x128xf32> to vector<1x128xf32>
      %c0_176 = arith.constant 0 : index
      %c0_177 = arith.constant 0 : index
      %c0_178 = arith.constant 0 : index
      %335 = vector.load %arg9[%c0_176, %c0_177, %c0_178] : memref<4x8x128xf32, #tpu.memory_space<vmem>>, vector<1x1x128xf32>
      %336 = vector.shape_cast %335 : vector<1x1x128xf32> to vector<1x128xf32>
      %337 = vector.extract_strided_slice %17 {offsets = [7, 0], sizes = [1, 512], strides = [1, 1]} : vector<8x512xf32> to vector<1x512xf32>
      %338 = arith.truncf %334 : vector<1x128xf32> to vector<1x128xbf16>
      %c0_179 = arith.constant 0 : index
      %c0_180 = arith.constant 0 : index
      %c0_181 = arith.constant 0 : index
      %339 = vector.load %arg3[%c0_179, %c0_180, %c0_181] : memref<4x128x512xbf16, #tpu.memory_space<vmem>>, vector<1x128x512xbf16>
      %340 = vector.shape_cast %339 : vector<1x128x512xbf16> to vector<128x512xbf16>
      %cst_182 = arith.constant dense<0.000000e+00> : vector<1x512xf32>
      %341 = tpu.matmul %338, %340, %cst_182 {dimension_numbers = #tpu.dot_dimension_numbers<[1], [0], [0], [1], [0, 0, 1, 1], [], []>} : vector<1x128xbf16>, vector<128x512xbf16>, vector<1x512xf32> -> vector<1x512xf32>
      %342 = arith.addf %337, %341 : vector<1x512xf32>
      %343 = vector.extract_strided_slice %342 {offsets = [0, 0], sizes = [1, 128], strides = [1, 1]} : vector<1x512xf32> to vector<1x128xf32>
      %cst_183 = arith.constant 0.000000e+00 : f32
      %344 = vector.broadcast %cst_183 : f32 to vector<1x128xf32>
      %345 = arith.subf %344, %343 : vector<1x128xf32>
      %346 = math.exp %345 : vector<1x128xf32>
      %cst_184 = arith.constant 1.000000e+00 : f32
      %347 = vector.broadcast %cst_184 : f32 to vector<1x128xf32>
      %348 = arith.addf %347, %346 : vector<1x128xf32>
      %349 = tpu.reciprocal %348 {approx = true} : vector<1x128xf32> -> vector<1x128xf32>
      %350 = vector.extract_strided_slice %342 {offsets = [0, 128], sizes = [1, 128], strides = [1, 1]} : vector<1x512xf32> to vector<1x128xf32>
      %cst_185 = arith.constant 0.000000e+00 : f32
      %351 = vector.broadcast %cst_185 : f32 to vector<1x128xf32>
      %352 = arith.subf %351, %350 : vector<1x128xf32>
      %353 = math.exp %352 : vector<1x128xf32>
      %cst_186 = arith.constant 1.000000e+00 : f32
      %354 = vector.broadcast %cst_186 : f32 to vector<1x128xf32>
      %355 = arith.addf %354, %353 : vector<1x128xf32>
      %356 = tpu.reciprocal %355 {approx = true} : vector<1x128xf32> -> vector<1x128xf32>
      %357 = vector.extract_strided_slice %342 {offsets = [0, 256], sizes = [1, 128], strides = [1, 1]} : vector<1x512xf32> to vector<1x128xf32>
      %358 = math.tanh %357 : vector<1x128xf32>
      %359 = vector.extract_strided_slice %342 {offsets = [0, 384], sizes = [1, 128], strides = [1, 1]} : vector<1x512xf32> to vector<1x128xf32>
      %cst_187 = arith.constant 0.000000e+00 : f32
      %360 = vector.broadcast %cst_187 : f32 to vector<1x128xf32>
      %361 = arith.subf %360, %359 : vector<1x128xf32>
      %362 = math.exp %361 : vector<1x128xf32>
      %cst_188 = arith.constant 1.000000e+00 : f32
      %363 = vector.broadcast %cst_188 : f32 to vector<1x128xf32>
      %364 = arith.addf %363, %362 : vector<1x128xf32>
      %365 = tpu.reciprocal %364 {approx = true} : vector<1x128xf32> -> vector<1x128xf32>
      %366 = arith.mulf %356, %336 : vector<1x128xf32>
      %367 = arith.mulf %349, %358 : vector<1x128xf32>
      %368 = arith.addf %366, %367 : vector<1x128xf32>
      %369 = math.tanh %368 : vector<1x128xf32>
      %370 = arith.mulf %365, %369 : vector<1x128xf32>
      %c0_189 = arith.constant 0 : index
      %c0_190 = arith.constant 0 : index
      %c0_191 = arith.constant 0 : index
      %371 = vector.load %arg8[%c0_189, %c0_190, %c0_191] : memref<4x8x128xf32, #tpu.memory_space<vmem>>, vector<1x1x128xf32>
      %372 = vector.shape_cast %371 : vector<1x1x128xf32> to vector<1x128xf32>
      %373 = vector.shape_cast %370 : vector<1x128xf32> to vector<1x1x128xf32>
      tpu.vector_store %arg8[%c0_189, %c0_190, %c0_191], %373 {strides = array<i32>} : memref<4x8x128xf32, #tpu.memory_space<vmem>>, vector<1x1x128xf32>,
      %c0_192 = arith.constant 0 : index
      %c0_193 = arith.constant 0 : index
      %c0_194 = arith.constant 0 : index
      %374 = vector.load %arg9[%c0_192, %c0_193, %c0_194] : memref<4x8x128xf32, #tpu.memory_space<vmem>>, vector<1x1x128xf32>
      %375 = vector.shape_cast %374 : vector<1x1x128xf32> to vector<1x128xf32>
      %376 = vector.shape_cast %368 : vector<1x128xf32> to vector<1x1x128xf32>
      tpu.vector_store %arg9[%c0_192, %c0_193, %c0_194], %376 {strides = array<i32>} : memref<4x8x128xf32, #tpu.memory_space<vmem>>, vector<1x1x128xf32>,
      %c7 = arith.constant 7 : index
      %c0_195 = arith.constant 0 : index
      %377 = vector.load %arg10[%c7, %c0_195] : memref<8x128xf32, #tpu.memory_space<vmem>>, vector<1x128xf32>
      tpu.vector_store %arg10[%c7, %c0_195], %370 {strides = array<i32>} : memref<8x128xf32, #tpu.memory_space<vmem>>, vector<1x128xf32>,
      %c0_196 = arith.constant 0 : index
      %c0_197 = arith.constant 0 : index
      %378 = vector.load %arg10[%c0_196, %c0_197] : memref<8x128xf32, #tpu.memory_space<vmem>>, vector<8x128xf32>
      %379 = arith.truncf %378 : vector<8x128xf32> to vector<8x128xbf16>
      %c1_198 = arith.constant 1 : index
      %c0_199 = arith.constant 0 : index
      %c0_200 = arith.constant 0 : index
      %380 = vector.load %arg2[%c1_198, %c0_199, %c0_200] : memref<4x128x512xbf16, #tpu.memory_space<vmem>>, vector<1x128x512xbf16>
      %381 = vector.shape_cast %380 : vector<1x128x512xbf16> to vector<128x512xbf16>
      %cst_201 = arith.constant dense<0.000000e+00> : vector<8x512xf32>
      %382 = tpu.matmul %379, %381, %cst_201 {dimension_numbers = #tpu.dot_dimension_numbers<[1], [0], [0], [1], [0, 0, 1, 1], [], []>} : vector<8x128xbf16>, vector<128x512xbf16>, vector<8x512xf32> -> vector<8x512xf32>
      %c1_202 = arith.constant 1 : index
      %c0_203 = arith.constant 0 : index
      %c0_204 = arith.constant 0 : index
      %383 = vector.load %arg4[%c1_202, %c0_203, %c0_204] : memref<4x1x512xf32, #tpu.memory_space<vmem>>, vector<1x1x512xf32>
      %384 = vector.shape_cast %383 : vector<1x1x512xf32> to vector<1x512xf32>
      %385 = vector.broadcast %384 : vector<1x512xf32> to vector<8x512xf32>
      %386 = arith.addf %382, %385 : vector<8x512xf32>
      %c1_205 = arith.constant 1 : index
      %c0_206 = arith.constant 0 : index
      %c0_207 = arith.constant 0 : index
      %387 = vector.load %arg8[%c1_205, %c0_206, %c0_207] : memref<4x8x128xf32, #tpu.memory_space<vmem>>, vector<1x2x128xf32>
      %388 = vector.shape_cast %387 : vector<1x2x128xf32> to vector<2x128xf32>
      %c1_208 = arith.constant 1 : index
      %c0_209 = arith.constant 0 : index
      %c0_210 = arith.constant 0 : index
      %389 = vector.load %arg9[%c1_208, %c0_209, %c0_210] : memref<4x8x128xf32, #tpu.memory_space<vmem>>, vector<1x2x128xf32>
      %390 = vector.shape_cast %389 : vector<1x2x128xf32> to vector<2x128xf32>
      %391 = vector.extract_strided_slice %386 {offsets = [0, 0], sizes = [2, 512], strides = [1, 1]} : vector<8x512xf32> to vector<2x512xf32>
      %392 = arith.truncf %388 : vector<2x128xf32> to vector<2x128xbf16>
      %c1_211 = arith.constant 1 : index
      %c0_212 = arith.constant 0 : index
      %c0_213 = arith.constant 0 : index
      %393 = vector.load %arg3[%c1_211, %c0_212, %c0_213] : memref<4x128x512xbf16, #tpu.memory_space<vmem>>, vector<1x128x512xbf16>
      %394 = vector.shape_cast %393 : vector<1x128x512xbf16> to vector<128x512xbf16>
      %cst_214 = arith.constant dense<0.000000e+00> : vector<2x512xf32>
      %395 = tpu.matmul %392, %394, %cst_214 {dimension_numbers = #tpu.dot_dimension_numbers<[1], [0], [0], [1], [0, 0, 1, 1], [], []>} : vector<2x128xbf16>, vector<128x512xbf16>, vector<2x512xf32> -> vector<2x512xf32>
      %396 = arith.addf %391, %395 : vector<2x512xf32>
      %397 = vector.extract_strided_slice %396 {offsets = [0, 0], sizes = [2, 128], strides = [1, 1]} : vector<2x512xf32> to vector<2x128xf32>
      %cst_215 = arith.constant 0.000000e+00 : f32
      %398 = vector.broadcast %cst_215 : f32 to vector<2x128xf32>
      %399 = arith.subf %398, %397 : vector<2x128xf32>
      %400 = math.exp %399 : vector<2x128xf32>
      %cst_216 = arith.constant 1.000000e+00 : f32
      %401 = vector.broadcast %cst_216 : f32 to vector<2x128xf32>
      %402 = arith.addf %401, %400 : vector<2x128xf32>
      %403 = tpu.reciprocal %402 {approx = true} : vector<2x128xf32> -> vector<2x128xf32>
      %404 = vector.extract_strided_slice %396 {offsets = [0, 128], sizes = [2, 128], strides = [1, 1]} : vector<2x512xf32> to vector<2x128xf32>
      %cst_217 = arith.constant 0.000000e+00 : f32
      %405 = vector.broadcast %cst_217 : f32 to vector<2x128xf32>
      %406 = arith.subf %405, %404 : vector<2x128xf32>
      %407 = math.exp %406 : vector<2x128xf32>
      %cst_218 = arith.constant 1.000000e+00 : f32
      %408 = vector.broadcast %cst_218 : f32 to vector<2x128xf32>
      %409 = arith.addf %408, %407 : vector<2x128xf32>
      %410 = tpu.reciprocal %409 {approx = true} : vector<2x128xf32> -> vector<2x128xf32>
      %411 = vector.extract_strided_slice %396 {offsets = [0, 256], sizes = [2, 128], strides = [1, 1]} : vector<2x512xf32> to vector<2x128xf32>
      %412 = math.tanh %411 : vector<2x128xf32>
      %413 = vector.extract_strided_slice %396 {offsets = [0, 384], sizes = [2, 128], strides = [1, 1]} : vector<2x512xf32> to vector<2x128xf32>
      %cst_219 = arith.constant 0.000000e+00 : f32
      %414 = vector.broadcast %cst_219 : f32 to vector<2x128xf32>
      %415 = arith.subf %414, %413 : vector<2x128xf32>
      %416 = math.exp %415 : vector<2x128xf32>
      %cst_220 = arith.constant 1.000000e+00 : f32
      %417 = vector.broadcast %cst_220 : f32 to vector<2x128xf32>
      %418 = arith.addf %417, %416 : vector<2x128xf32>
      %419 = tpu.reciprocal %418 {approx = true} : vector<2x128xf32> -> vector<2x128xf32>
      %420 = arith.mulf %410, %390 : vector<2x128xf32>
      %421 = arith.mulf %403, %412 : vector<2x128xf32>
      %422 = arith.addf %420, %421 : vector<2x128xf32>
      %423 = math.tanh %422 : vector<2x128xf32>
      %424 = arith.mulf %419, %423 : vector<2x128xf32>
      %c1_221 = arith.constant 1 : index
      %c0_222 = arith.constant 0 : index
      %c0_223 = arith.constant 0 : index
      %425 = vector.load %arg8[%c1_221, %c0_222, %c0_223] : memref<4x8x128xf32, #tpu.memory_space<vmem>>, vector<1x2x128xf32>
      %426 = vector.shape_cast %425 : vector<1x2x128xf32> to vector<2x128xf32>
      %427 = vector.shape_cast %424 : vector<2x128xf32> to vector<1x2x128xf32>
      tpu.vector_store %arg8[%c1_221, %c0_222, %c0_223], %427 {strides = array<i32>} : memref<4x8x128xf32, #tpu.memory_space<vmem>>, vector<1x2x128xf32>,
      %c1_224 = arith.constant 1 : index
      %c0_225 = arith.constant 0 : index
      %c0_226 = arith.constant 0 : index
      %428 = vector.load %arg9[%c1_224, %c0_225, %c0_226] : memref<4x8x128xf32, #tpu.memory_space<vmem>>, vector<1x2x128xf32>
      %429 = vector.shape_cast %428 : vector<1x2x128xf32> to vector<2x128xf32>
      %430 = vector.shape_cast %422 : vector<2x128xf32> to vector<1x2x128xf32>
      tpu.vector_store %arg9[%c1_224, %c0_225, %c0_226], %430 {strides = array<i32>} : memref<4x8x128xf32, #tpu.memory_space<vmem>>, vector<1x2x128xf32>,
      %c0_227 = arith.constant 0 : index
      %c0_228 = arith.constant 0 : index
      %431 = vector.load %arg10[%c0_227, %c0_228] : memref<8x128xf32, #tpu.memory_space<vmem>>, vector<2x128xf32>
      tpu.vector_store %arg10[%c0_227, %c0_228], %424 {strides = array<i32>} : memref<8x128xf32, #tpu.memory_space<vmem>>, vector<2x128xf32>,
      %c1_229 = arith.constant 1 : index
      %c0_230 = arith.constant 0 : index
      %c0_231 = arith.constant 0 : index
      %432 = vector.load %arg8[%c1_229, %c0_230, %c0_231] : memref<4x8x128xf32, #tpu.memory_space<vmem>>, vector<1x2x128xf32>
      %433 = vector.shape_cast %432 : vector<1x2x128xf32> to vector<2x128xf32>
      %c1_232 = arith.constant 1 : index
      %c0_233 = arith.constant 0 : index
      %c0_234 = arith.constant 0 : index
      %434 = vector.load %arg9[%c1_232, %c0_233, %c0_234] : memref<4x8x128xf32, #tpu.memory_space<vmem>>, vector<1x2x128xf32>
      %435 = vector.shape_cast %434 : vector<1x2x128xf32> to vector<2x128xf32>
      %436 = vector.extract_strided_slice %386 {offsets = [2, 0], sizes = [2, 512], strides = [1, 1]} : vector<8x512xf32> to vector<2x512xf32>
      %437 = arith.truncf %433 : vector<2x128xf32> to vector<2x128xbf16>
      %c1_235 = arith.constant 1 : index
      %c0_236 = arith.constant 0 : index
      %c0_237 = arith.constant 0 : index
      %438 = vector.load %arg3[%c1_235, %c0_236, %c0_237] : memref<4x128x512xbf16, #tpu.memory_space<vmem>>, vector<1x128x512xbf16>
      %439 = vector.shape_cast %438 : vector<1x128x512xbf16> to vector<128x512xbf16>
      %cst_238 = arith.constant dense<0.000000e+00> : vector<2x512xf32>
      %440 = tpu.matmul %437, %439, %cst_238 {dimension_numbers = #tpu.dot_dimension_numbers<[1], [0], [0], [1], [0, 0, 1, 1], [], []>} : vector<2x128xbf16>, vector<128x512xbf16>, vector<2x512xf32> -> vector<2x512xf32>
      %441 = arith.addf %436, %440 : vector<2x512xf32>
      %442 = vector.extract_strided_slice %441 {offsets = [0, 0], sizes = [2, 128], strides = [1, 1]} : vector<2x512xf32> to vector<2x128xf32>
      %cst_239 = arith.constant 0.000000e+00 : f32
      %443 = vector.broadcast %cst_239 : f32 to vector<2x128xf32>
      %444 = arith.subf %443, %442 : vector<2x128xf32>
      %445 = math.exp %444 : vector<2x128xf32>
      %cst_240 = arith.constant 1.000000e+00 : f32
      %446 = vector.broadcast %cst_240 : f32 to vector<2x128xf32>
      %447 = arith.addf %446, %445 : vector<2x128xf32>
      %448 = tpu.reciprocal %447 {approx = true} : vector<2x128xf32> -> vector<2x128xf32>
      %449 = vector.extract_strided_slice %441 {offsets = [0, 128], sizes = [2, 128], strides = [1, 1]} : vector<2x512xf32> to vector<2x128xf32>
      %cst_241 = arith.constant 0.000000e+00 : f32
      %450 = vector.broadcast %cst_241 : f32 to vector<2x128xf32>
      %451 = arith.subf %450, %449 : vector<2x128xf32>
      %452 = math.exp %451 : vector<2x128xf32>
      %cst_242 = arith.constant 1.000000e+00 : f32
      %453 = vector.broadcast %cst_242 : f32 to vector<2x128xf32>
      %454 = arith.addf %453, %452 : vector<2x128xf32>
      %455 = tpu.reciprocal %454 {approx = true} : vector<2x128xf32> -> vector<2x128xf32>
      %456 = vector.extract_strided_slice %441 {offsets = [0, 256], sizes = [2, 128], strides = [1, 1]} : vector<2x512xf32> to vector<2x128xf32>
      %457 = math.tanh %456 : vector<2x128xf32>
      %458 = vector.extract_strided_slice %441 {offsets = [0, 384], sizes = [2, 128], strides = [1, 1]} : vector<2x512xf32> to vector<2x128xf32>
      %cst_243 = arith.constant 0.000000e+00 : f32
      %459 = vector.broadcast %cst_243 : f32 to vector<2x128xf32>
      %460 = arith.subf %459, %458 : vector<2x128xf32>
      %461 = math.exp %460 : vector<2x128xf32>
      %cst_244 = arith.constant 1.000000e+00 : f32
      %462 = vector.broadcast %cst_244 : f32 to vector<2x128xf32>
      %463 = arith.addf %462, %461 : vector<2x128xf32>
      %464 = tpu.reciprocal %463 {approx = true} : vector<2x128xf32> -> vector<2x128xf32>
      %465 = arith.mulf %455, %435 : vector<2x128xf32>
      %466 = arith.mulf %448, %457 : vector<2x128xf32>
      %467 = arith.addf %465, %466 : vector<2x128xf32>
      %468 = math.tanh %467 : vector<2x128xf32>
      %469 = arith.mulf %464, %468 : vector<2x128xf32>
      %c1_245 = arith.constant 1 : index
      %c0_246 = arith.constant 0 : index
      %c0_247 = arith.constant 0 : index
      %470 = vector.load %arg8[%c1_245, %c0_246, %c0_247] : memref<4x8x128xf32, #tpu.memory_space<vmem>>, vector<1x2x128xf32>
      %471 = vector.shape_cast %470 : vector<1x2x128xf32> to vector<2x128xf32>
      %472 = vector.shape_cast %469 : vector<2x128xf32> to vector<1x2x128xf32>
      tpu.vector_store %arg8[%c1_245, %c0_246, %c0_247], %472 {strides = array<i32>} : memref<4x8x128xf32, #tpu.memory_space<vmem>>, vector<1x2x128xf32>,
      %c1_248 = arith.constant 1 : index
      %c0_249 = arith.constant 0 : index
      %c0_250 = arith.constant 0 : index
      %473 = vector.load %arg9[%c1_248, %c0_249, %c0_250] : memref<4x8x128xf32, #tpu.memory_space<vmem>>, vector<1x2x128xf32>
      %474 = vector.shape_cast %473 : vector<1x2x128xf32> to vector<2x128xf32>
      %475 = vector.shape_cast %467 : vector<2x128xf32> to vector<1x2x128xf32>
      tpu.vector_store %arg9[%c1_248, %c0_249, %c0_250], %475 {strides = array<i32>} : memref<4x8x128xf32, #tpu.memory_space<vmem>>, vector<1x2x128xf32>,
      %c2_251 = arith.constant 2 : index
      %c0_252 = arith.constant 0 : index
      %476 = vector.load %arg10[%c2_251, %c0_252] : memref<8x128xf32, #tpu.memory_space<vmem>>, vector<2x128xf32>
      tpu.vector_store %arg10[%c2_251, %c0_252], %469 {strides = array<i32>} : memref<8x128xf32, #tpu.memory_space<vmem>>, vector<2x128xf32>,
      %c1_253 = arith.constant 1 : index
      %c0_254 = arith.constant 0 : index
      %c0_255 = arith.constant 0 : index
      %477 = vector.load %arg8[%c1_253, %c0_254, %c0_255] : memref<4x8x128xf32, #tpu.memory_space<vmem>>, vector<1x2x128xf32>
      %478 = vector.shape_cast %477 : vector<1x2x128xf32> to vector<2x128xf32>
      %c1_256 = arith.constant 1 : index
      %c0_257 = arith.constant 0 : index
      %c0_258 = arith.constant 0 : index
      %479 = vector.load %arg9[%c1_256, %c0_257, %c0_258] : memref<4x8x128xf32, #tpu.memory_space<vmem>>, vector<1x2x128xf32>
      %480 = vector.shape_cast %479 : vector<1x2x128xf32> to vector<2x128xf32>
      %481 = vector.extract_strided_slice %386 {offsets = [4, 0], sizes = [2, 512], strides = [1, 1]} : vector<8x512xf32> to vector<2x512xf32>
      %482 = arith.truncf %478 : vector<2x128xf32> to vector<2x128xbf16>
      %c1_259 = arith.constant 1 : index
      %c0_260 = arith.constant 0 : index
      %c0_261 = arith.constant 0 : index
      %483 = vector.load %arg3[%c1_259, %c0_260, %c0_261] : memref<4x128x512xbf16, #tpu.memory_space<vmem>>, vector<1x128x512xbf16>
      %484 = vector.shape_cast %483 : vector<1x128x512xbf16> to vector<128x512xbf16>
      %cst_262 = arith.constant dense<0.000000e+00> : vector<2x512xf32>
      %485 = tpu.matmul %482, %484, %cst_262 {dimension_numbers = #tpu.dot_dimension_numbers<[1], [0], [0], [1], [0, 0, 1, 1], [], []>} : vector<2x128xbf16>, vector<128x512xbf16>, vector<2x512xf32> -> vector<2x512xf32>
      %486 = arith.addf %481, %485 : vector<2x512xf32>
      %487 = vector.extract_strided_slice %486 {offsets = [0, 0], sizes = [2, 128], strides = [1, 1]} : vector<2x512xf32> to vector<2x128xf32>
      %cst_263 = arith.constant 0.000000e+00 : f32
      %488 = vector.broadcast %cst_263 : f32 to vector<2x128xf32>
      %489 = arith.subf %488, %487 : vector<2x128xf32>
      %490 = math.exp %489 : vector<2x128xf32>
      %cst_264 = arith.constant 1.000000e+00 : f32
      %491 = vector.broadcast %cst_264 : f32 to vector<2x128xf32>
      %492 = arith.addf %491, %490 : vector<2x128xf32>
      %493 = tpu.reciprocal %492 {approx = true} : vector<2x128xf32> -> vector<2x128xf32>
      %494 = vector.extract_strided_slice %486 {offsets = [0, 128], sizes = [2, 128], strides = [1, 1]} : vector<2x512xf32> to vector<2x128xf32>
      %cst_265 = arith.constant 0.000000e+00 : f32
      %495 = vector.broadcast %cst_265 : f32 to vector<2x128xf32>
      %496 = arith.subf %495, %494 : vector<2x128xf32>
      %497 = math.exp %496 : vector<2x128xf32>
      %cst_266 = arith.constant 1.000000e+00 : f32
      %498 = vector.broadcast %cst_266 : f32 to vector<2x128xf32>
      %499 = arith.addf %498, %497 : vector<2x128xf32>
      %500 = tpu.reciprocal %499 {approx = true} : vector<2x128xf32> -> vector<2x128xf32>
      %501 = vector.extract_strided_slice %486 {offsets = [0, 256], sizes = [2, 128], strides = [1, 1]} : vector<2x512xf32> to vector<2x128xf32>
      %502 = math.tanh %501 : vector<2x128xf32>
      %503 = vector.extract_strided_slice %486 {offsets = [0, 384], sizes = [2, 128], strides = [1, 1]} : vector<2x512xf32> to vector<2x128xf32>
      %cst_267 = arith.constant 0.000000e+00 : f32
      %504 = vector.broadcast %cst_267 : f32 to vector<2x128xf32>
      %505 = arith.subf %504, %503 : vector<2x128xf32>
      %506 = math.exp %505 : vector<2x128xf32>
      %cst_268 = arith.constant 1.000000e+00 : f32
      %507 = vector.broadcast %cst_268 : f32 to vector<2x128xf32>
      %508 = arith.addf %507, %506 : vector<2x128xf32>
      %509 = tpu.reciprocal %508 {approx = true} : vector<2x128xf32> -> vector<2x128xf32>
      %510 = arith.mulf %500, %480 : vector<2x128xf32>
      %511 = arith.mulf %493, %502 : vector<2x128xf32>
      %512 = arith.addf %510, %511 : vector<2x128xf32>
      %513 = math.tanh %512 : vector<2x128xf32>
      %514 = arith.mulf %509, %513 : vector<2x128xf32>
      %c1_269 = arith.constant 1 : index
      %c0_270 = arith.constant 0 : index
      %c0_271 = arith.constant 0 : index
      %515 = vector.load %arg8[%c1_269, %c0_270, %c0_271] : memref<4x8x128xf32, #tpu.memory_space<vmem>>, vector<1x2x128xf32>
      %516 = vector.shape_cast %515 : vector<1x2x128xf32> to vector<2x128xf32>
      %517 = vector.shape_cast %514 : vector<2x128xf32> to vector<1x2x128xf32>
      tpu.vector_store %arg8[%c1_269, %c0_270, %c0_271], %517 {strides = array<i32>} : memref<4x8x128xf32, #tpu.memory_space<vmem>>, vector<1x2x128xf32>,
      %c1_272 = arith.constant 1 : index
      %c0_273 = arith.constant 0 : index
      %c0_274 = arith.constant 0 : index
      %518 = vector.load %arg9[%c1_272, %c0_273, %c0_274] : memref<4x8x128xf32, #tpu.memory_space<vmem>>, vector<1x2x128xf32>
      %519 = vector.shape_cast %518 : vector<1x2x128xf32> to vector<2x128xf32>
      %520 = vector.shape_cast %512 : vector<2x128xf32> to vector<1x2x128xf32>
      tpu.vector_store %arg9[%c1_272, %c0_273, %c0_274], %520 {strides = array<i32>} : memref<4x8x128xf32, #tpu.memory_space<vmem>>, vector<1x2x128xf32>,
      %c4_275 = arith.constant 4 : index
      %c0_276 = arith.constant 0 : index
      %521 = vector.load %arg10[%c4_275, %c0_276] : memref<8x128xf32, #tpu.memory_space<vmem>>, vector<2x128xf32>
      tpu.vector_store %arg10[%c4_275, %c0_276], %514 {strides = array<i32>} : memref<8x128xf32, #tpu.memory_space<vmem>>, vector<2x128xf32>,
      %c1_277 = arith.constant 1 : index
      %c0_278 = arith.constant 0 : index
      %c0_279 = arith.constant 0 : index
      %522 = vector.load %arg8[%c1_277, %c0_278, %c0_279] : memref<4x8x128xf32, #tpu.memory_space<vmem>>, vector<1x2x128xf32>
      %523 = vector.shape_cast %522 : vector<1x2x128xf32> to vector<2x128xf32>
      %c1_280 = arith.constant 1 : index
      %c0_281 = arith.constant 0 : index
      %c0_282 = arith.constant 0 : index
      %524 = vector.load %arg9[%c1_280, %c0_281, %c0_282] : memref<4x8x128xf32, #tpu.memory_space<vmem>>, vector<1x2x128xf32>
      %525 = vector.shape_cast %524 : vector<1x2x128xf32> to vector<2x128xf32>
      %526 = vector.extract_strided_slice %386 {offsets = [6, 0], sizes = [2, 512], strides = [1, 1]} : vector<8x512xf32> to vector<2x512xf32>
      %527 = arith.truncf %523 : vector<2x128xf32> to vector<2x128xbf16>
      %c1_283 = arith.constant 1 : index
      %c0_284 = arith.constant 0 : index
      %c0_285 = arith.constant 0 : index
      %528 = vector.load %arg3[%c1_283, %c0_284, %c0_285] : memref<4x128x512xbf16, #tpu.memory_space<vmem>>, vector<1x128x512xbf16>
      %529 = vector.shape_cast %528 : vector<1x128x512xbf16> to vector<128x512xbf16>
      %cst_286 = arith.constant dense<0.000000e+00> : vector<2x512xf32>
      %530 = tpu.matmul %527, %529, %cst_286 {dimension_numbers = #tpu.dot_dimension_numbers<[1], [0], [0], [1], [0, 0, 1, 1], [], []>} : vector<2x128xbf16>, vector<128x512xbf16>, vector<2x512xf32> -> vector<2x512xf32>
      %531 = arith.addf %526, %530 : vector<2x512xf32>
      %532 = vector.extract_strided_slice %531 {offsets = [0, 0], sizes = [2, 128], strides = [1, 1]} : vector<2x512xf32> to vector<2x128xf32>
      %cst_287 = arith.constant 0.000000e+00 : f32
      %533 = vector.broadcast %cst_287 : f32 to vector<2x128xf32>
      %534 = arith.subf %533, %532 : vector<2x128xf32>
      %535 = math.exp %534 : vector<2x128xf32>
      %cst_288 = arith.constant 1.000000e+00 : f32
      %536 = vector.broadcast %cst_288 : f32 to vector<2x128xf32>
      %537 = arith.addf %536, %535 : vector<2x128xf32>
      %538 = tpu.reciprocal %537 {approx = true} : vector<2x128xf32> -> vector<2x128xf32>
      %539 = vector.extract_strided_slice %531 {offsets = [0, 128], sizes = [2, 128], strides = [1, 1]} : vector<2x512xf32> to vector<2x128xf32>
      %cst_289 = arith.constant 0.000000e+00 : f32
      %540 = vector.broadcast %cst_289 : f32 to vector<2x128xf32>
      %541 = arith.subf %540, %539 : vector<2x128xf32>
      %542 = math.exp %541 : vector<2x128xf32>
      %cst_290 = arith.constant 1.000000e+00 : f32
      %543 = vector.broadcast %cst_290 : f32 to vector<2x128xf32>
      %544 = arith.addf %543, %542 : vector<2x128xf32>
      %545 = tpu.reciprocal %544 {approx = true} : vector<2x128xf32> -> vector<2x128xf32>
      %546 = vector.extract_strided_slice %531 {offsets = [0, 256], sizes = [2, 128], strides = [1, 1]} : vector<2x512xf32> to vector<2x128xf32>
      %547 = math.tanh %546 : vector<2x128xf32>
      %548 = vector.extract_strided_slice %531 {offsets = [0, 384], sizes = [2, 128], strides = [1, 1]} : vector<2x512xf32> to vector<2x128xf32>
      %cst_291 = arith.constant 0.000000e+00 : f32
      %549 = vector.broadcast %cst_291 : f32 to vector<2x128xf32>
      %550 = arith.subf %549, %548 : vector<2x128xf32>
      %551 = math.exp %550 : vector<2x128xf32>
      %cst_292 = arith.constant 1.000000e+00 : f32
      %552 = vector.broadcast %cst_292 : f32 to vector<2x128xf32>
      %553 = arith.addf %552, %551 : vector<2x128xf32>
      %554 = tpu.reciprocal %553 {approx = true} : vector<2x128xf32> -> vector<2x128xf32>
      %555 = arith.mulf %545, %525 : vector<2x128xf32>
      %556 = arith.mulf %538, %547 : vector<2x128xf32>
      %557 = arith.addf %555, %556 : vector<2x128xf32>
      %558 = math.tanh %557 : vector<2x128xf32>
      %559 = arith.mulf %554, %558 : vector<2x128xf32>
      %c1_293 = arith.constant 1 : index
      %c0_294 = arith.constant 0 : index
      %c0_295 = arith.constant 0 : index
      %560 = vector.load %arg8[%c1_293, %c0_294, %c0_295] : memref<4x8x128xf32, #tpu.memory_space<vmem>>, vector<1x2x128xf32>
      %561 = vector.shape_cast %560 : vector<1x2x128xf32> to vector<2x128xf32>
      %562 = vector.shape_cast %559 : vector<2x128xf32> to vector<1x2x128xf32>
      tpu.vector_store %arg8[%c1_293, %c0_294, %c0_295], %562 {strides = array<i32>} : memref<4x8x128xf32, #tpu.memory_space<vmem>>, vector<1x2x128xf32>,
      %c1_296 = arith.constant 1 : index
      %c0_297 = arith.constant 0 : index
      %c0_298 = arith.constant 0 : index
      %563 = vector.load %arg9[%c1_296, %c0_297, %c0_298] : memref<4x8x128xf32, #tpu.memory_space<vmem>>, vector<1x2x128xf32>
      %564 = vector.shape_cast %563 : vector<1x2x128xf32> to vector<2x128xf32>
      %565 = vector.shape_cast %557 : vector<2x128xf32> to vector<1x2x128xf32>
      tpu.vector_store %arg9[%c1_296, %c0_297, %c0_298], %565 {strides = array<i32>} : memref<4x8x128xf32, #tpu.memory_space<vmem>>, vector<1x2x128xf32>,
      %c6_299 = arith.constant 6 : index
      %c0_300 = arith.constant 0 : index
      %566 = vector.load %arg10[%c6_299, %c0_300] : memref<8x128xf32, #tpu.memory_space<vmem>>, vector<2x128xf32>
      tpu.vector_store %arg10[%c6_299, %c0_300], %559 {strides = array<i32>} : memref<8x128xf32, #tpu.memory_space<vmem>>, vector<2x128xf32>,
      %c0_301 = arith.constant 0 : index
      %c0_302 = arith.constant 0 : index
      %567 = vector.load %arg10[%c0_301, %c0_302] : memref<8x128xf32, #tpu.memory_space<vmem>>, vector<8x128xf32>
      %568 = arith.truncf %567 : vector<8x128xf32> to vector<8x128xbf16>
      %c2_303 = arith.constant 2 : index
      %c0_304 = arith.constant 0 : index
      %c0_305 = arith.constant 0 : index
      %569 = vector.load %arg2[%c2_303, %c0_304, %c0_305] : memref<4x128x512xbf16, #tpu.memory_space<vmem>>, vector<1x128x512xbf16>
      %570 = vector.shape_cast %569 : vector<1x128x512xbf16> to vector<128x512xbf16>
      %cst_306 = arith.constant dense<0.000000e+00> : vector<8x512xf32>
      %571 = tpu.matmul %568, %570, %cst_306 {dimension_numbers = #tpu.dot_dimension_numbers<[1], [0], [0], [1], [0, 0, 1, 1], [], []>} : vector<8x128xbf16>, vector<128x512xbf16>, vector<8x512xf32> -> vector<8x512xf32>
      %c2_307 = arith.constant 2 : index
      %c0_308 = arith.constant 0 : index
      %c0_309 = arith.constant 0 : index
      %572 = vector.load %arg4[%c2_307, %c0_308, %c0_309] : memref<4x1x512xf32, #tpu.memory_space<vmem>>, vector<1x1x512xf32>
      %573 = vector.shape_cast %572 : vector<1x1x512xf32> to vector<1x512xf32>
      %574 = vector.broadcast %573 : vector<1x512xf32> to vector<8x512xf32>
      %575 = arith.addf %571, %574 : vector<8x512xf32>
      %c2_310 = arith.constant 2 : index
      %c0_311 = arith.constant 0 : index
      %c0_312 = arith.constant 0 : index
      %576 = vector.load %arg8[%c2_310, %c0_311, %c0_312] : memref<4x8x128xf32, #tpu.memory_space<vmem>>, vector<1x4x128xf32>
      %577 = vector.shape_cast %576 : vector<1x4x128xf32> to vector<4x128xf32>
      %c2_313 = arith.constant 2 : index
      %c0_314 = arith.constant 0 : index
      %c0_315 = arith.constant 0 : index
      %578 = vector.load %arg9[%c2_313, %c0_314, %c0_315] : memref<4x8x128xf32, #tpu.memory_space<vmem>>, vector<1x4x128xf32>
      %579 = vector.shape_cast %578 : vector<1x4x128xf32> to vector<4x128xf32>
      %580 = vector.extract_strided_slice %575 {offsets = [0, 0], sizes = [4, 512], strides = [1, 1]} : vector<8x512xf32> to vector<4x512xf32>
      %581 = arith.truncf %577 : vector<4x128xf32> to vector<4x128xbf16>
      %c2_316 = arith.constant 2 : index
      %c0_317 = arith.constant 0 : index
      %c0_318 = arith.constant 0 : index
      %582 = vector.load %arg3[%c2_316, %c0_317, %c0_318] : memref<4x128x512xbf16, #tpu.memory_space<vmem>>, vector<1x128x512xbf16>
      %583 = vector.shape_cast %582 : vector<1x128x512xbf16> to vector<128x512xbf16>
      %cst_319 = arith.constant dense<0.000000e+00> : vector<4x512xf32>
      %584 = tpu.matmul %581, %583, %cst_319 {dimension_numbers = #tpu.dot_dimension_numbers<[1], [0], [0], [1], [0, 0, 1, 1], [], []>} : vector<4x128xbf16>, vector<128x512xbf16>, vector<4x512xf32> -> vector<4x512xf32>
      %585 = arith.addf %580, %584 : vector<4x512xf32>
      %586 = vector.extract_strided_slice %585 {offsets = [0, 0], sizes = [4, 128], strides = [1, 1]} : vector<4x512xf32> to vector<4x128xf32>
      %cst_320 = arith.constant 0.000000e+00 : f32
      %587 = vector.broadcast %cst_320 : f32 to vector<4x128xf32>
      %588 = arith.subf %587, %586 : vector<4x128xf32>
      %589 = math.exp %588 : vector<4x128xf32>
      %cst_321 = arith.constant 1.000000e+00 : f32
      %590 = vector.broadcast %cst_321 : f32 to vector<4x128xf32>
      %591 = arith.addf %590, %589 : vector<4x128xf32>
      %592 = tpu.reciprocal %591 {approx = true} : vector<4x128xf32> -> vector<4x128xf32>
      %593 = vector.extract_strided_slice %585 {offsets = [0, 128], sizes = [4, 128], strides = [1, 1]} : vector<4x512xf32> to vector<4x128xf32>
      %cst_322 = arith.constant 0.000000e+00 : f32
      %594 = vector.broadcast %cst_322 : f32 to vector<4x128xf32>
      %595 = arith.subf %594, %593 : vector<4x128xf32>
      %596 = math.exp %595 : vector<4x128xf32>
      %cst_323 = arith.constant 1.000000e+00 : f32
      %597 = vector.broadcast %cst_323 : f32 to vector<4x128xf32>
      %598 = arith.addf %597, %596 : vector<4x128xf32>
      %599 = tpu.reciprocal %598 {approx = true} : vector<4x128xf32> -> vector<4x128xf32>
      %600 = vector.extract_strided_slice %585 {offsets = [0, 256], sizes = [4, 128], strides = [1, 1]} : vector<4x512xf32> to vector<4x128xf32>
      %601 = math.tanh %600 : vector<4x128xf32>
      %602 = vector.extract_strided_slice %585 {offsets = [0, 384], sizes = [4, 128], strides = [1, 1]} : vector<4x512xf32> to vector<4x128xf32>
      %cst_324 = arith.constant 0.000000e+00 : f32
      %603 = vector.broadcast %cst_324 : f32 to vector<4x128xf32>
      %604 = arith.subf %603, %602 : vector<4x128xf32>
      %605 = math.exp %604 : vector<4x128xf32>
      %cst_325 = arith.constant 1.000000e+00 : f32
      %606 = vector.broadcast %cst_325 : f32 to vector<4x128xf32>
      %607 = arith.addf %606, %605 : vector<4x128xf32>
      %608 = tpu.reciprocal %607 {approx = true} : vector<4x128xf32> -> vector<4x128xf32>
      %609 = arith.mulf %599, %579 : vector<4x128xf32>
      %610 = arith.mulf %592, %601 : vector<4x128xf32>
      %611 = arith.addf %609, %610 : vector<4x128xf32>
      %612 = math.tanh %611 : vector<4x128xf32>
      %613 = arith.mulf %608, %612 : vector<4x128xf32>
      %c2_326 = arith.constant 2 : index
      %c0_327 = arith.constant 0 : index
      %c0_328 = arith.constant 0 : index
      %614 = vector.load %arg8[%c2_326, %c0_327, %c0_328] : memref<4x8x128xf32, #tpu.memory_space<vmem>>, vector<1x4x128xf32>
      %615 = vector.shape_cast %614 : vector<1x4x128xf32> to vector<4x128xf32>
      %616 = vector.shape_cast %613 : vector<4x128xf32> to vector<1x4x128xf32>
      tpu.vector_store %arg8[%c2_326, %c0_327, %c0_328], %616 {strides = array<i32>} : memref<4x8x128xf32, #tpu.memory_space<vmem>>, vector<1x4x128xf32>,
      %c2_329 = arith.constant 2 : index
      %c0_330 = arith.constant 0 : index
      %c0_331 = arith.constant 0 : index
      %617 = vector.load %arg9[%c2_329, %c0_330, %c0_331] : memref<4x8x128xf32, #tpu.memory_space<vmem>>, vector<1x4x128xf32>
      %618 = vector.shape_cast %617 : vector<1x4x128xf32> to vector<4x128xf32>
      %619 = vector.shape_cast %611 : vector<4x128xf32> to vector<1x4x128xf32>
      tpu.vector_store %arg9[%c2_329, %c0_330, %c0_331], %619 {strides = array<i32>} : memref<4x8x128xf32, #tpu.memory_space<vmem>>, vector<1x4x128xf32>,
      %c0_332 = arith.constant 0 : index
      %c0_333 = arith.constant 0 : index
      %620 = vector.load %arg10[%c0_332, %c0_333] : memref<8x128xf32, #tpu.memory_space<vmem>>, vector<4x128xf32>
      tpu.vector_store %arg10[%c0_332, %c0_333], %613 {strides = array<i32>} : memref<8x128xf32, #tpu.memory_space<vmem>>, vector<4x128xf32>,
      %c2_334 = arith.constant 2 : index
      %c0_335 = arith.constant 0 : index
      %c0_336 = arith.constant 0 : index
      %621 = vector.load %arg8[%c2_334, %c0_335, %c0_336] : memref<4x8x128xf32, #tpu.memory_space<vmem>>, vector<1x4x128xf32>
      %622 = vector.shape_cast %621 : vector<1x4x128xf32> to vector<4x128xf32>
      %c2_337 = arith.constant 2 : index
      %c0_338 = arith.constant 0 : index
      %c0_339 = arith.constant 0 : index
      %623 = vector.load %arg9[%c2_337, %c0_338, %c0_339] : memref<4x8x128xf32, #tpu.memory_space<vmem>>, vector<1x4x128xf32>
      %624 = vector.shape_cast %623 : vector<1x4x128xf32> to vector<4x128xf32>
      %625 = vector.extract_strided_slice %575 {offsets = [4, 0], sizes = [4, 512], strides = [1, 1]} : vector<8x512xf32> to vector<4x512xf32>
      %626 = arith.truncf %622 : vector<4x128xf32> to vector<4x128xbf16>
      %c2_340 = arith.constant 2 : index
      %c0_341 = arith.constant 0 : index
      %c0_342 = arith.constant 0 : index
      %627 = vector.load %arg3[%c2_340, %c0_341, %c0_342] : memref<4x128x512xbf16, #tpu.memory_space<vmem>>, vector<1x128x512xbf16>
      %628 = vector.shape_cast %627 : vector<1x128x512xbf16> to vector<128x512xbf16>
      %cst_343 = arith.constant dense<0.000000e+00> : vector<4x512xf32>
      %629 = tpu.matmul %626, %628, %cst_343 {dimension_numbers = #tpu.dot_dimension_numbers<[1], [0], [0], [1], [0, 0, 1, 1], [], []>} : vector<4x128xbf16>, vector<128x512xbf16>, vector<4x512xf32> -> vector<4x512xf32>
      %630 = arith.addf %625, %629 : vector<4x512xf32>
      %631 = vector.extract_strided_slice %630 {offsets = [0, 0], sizes = [4, 128], strides = [1, 1]} : vector<4x512xf32> to vector<4x128xf32>
      %cst_344 = arith.constant 0.000000e+00 : f32
      %632 = vector.broadcast %cst_344 : f32 to vector<4x128xf32>
      %633 = arith.subf %632, %631 : vector<4x128xf32>
      %634 = math.exp %633 : vector<4x128xf32>
      %cst_345 = arith.constant 1.000000e+00 : f32
      %635 = vector.broadcast %cst_345 : f32 to vector<4x128xf32>
      %636 = arith.addf %635, %634 : vector<4x128xf32>
      %637 = tpu.reciprocal %636 {approx = true} : vector<4x128xf32> -> vector<4x128xf32>
      %638 = vector.extract_strided_slice %630 {offsets = [0, 128], sizes = [4, 128], strides = [1, 1]} : vector<4x512xf32> to vector<4x128xf32>
      %cst_346 = arith.constant 0.000000e+00 : f32
      %639 = vector.broadcast %cst_346 : f32 to vector<4x128xf32>
      %640 = arith.subf %639, %638 : vector<4x128xf32>
      %641 = math.exp %640 : vector<4x128xf32>
      %cst_347 = arith.constant 1.000000e+00 : f32
      %642 = vector.broadcast %cst_347 : f32 to vector<4x128xf32>
      %643 = arith.addf %642, %641 : vector<4x128xf32>
      %644 = tpu.reciprocal %643 {approx = true} : vector<4x128xf32> -> vector<4x128xf32>
      %645 = vector.extract_strided_slice %630 {offsets = [0, 256], sizes = [4, 128], strides = [1, 1]} : vector<4x512xf32> to vector<4x128xf32>
      %646 = math.tanh %645 : vector<4x128xf32>
      %647 = vector.extract_strided_slice %630 {offsets = [0, 384], sizes = [4, 128], strides = [1, 1]} : vector<4x512xf32> to vector<4x128xf32>
      %cst_348 = arith.constant 0.000000e+00 : f32
      %648 = vector.broadcast %cst_348 : f32 to vector<4x128xf32>
      %649 = arith.subf %648, %647 : vector<4x128xf32>
      %650 = math.exp %649 : vector<4x128xf32>
      %cst_349 = arith.constant 1.000000e+00 : f32
      %651 = vector.broadcast %cst_349 : f32 to vector<4x128xf32>
      %652 = arith.addf %651, %650 : vector<4x128xf32>
      %653 = tpu.reciprocal %652 {approx = true} : vector<4x128xf32> -> vector<4x128xf32>
      %654 = arith.mulf %644, %624 : vector<4x128xf32>
      %655 = arith.mulf %637, %646 : vector<4x128xf32>
      %656 = arith.addf %654, %655 : vector<4x128xf32>
      %657 = math.tanh %656 : vector<4x128xf32>
      %658 = arith.mulf %653, %657 : vector<4x128xf32>
      %c2_350 = arith.constant 2 : index
      %c0_351 = arith.constant 0 : index
      %c0_352 = arith.constant 0 : index
      %659 = vector.load %arg8[%c2_350, %c0_351, %c0_352] : memref<4x8x128xf32, #tpu.memory_space<vmem>>, vector<1x4x128xf32>
      %660 = vector.shape_cast %659 : vector<1x4x128xf32> to vector<4x128xf32>
      %661 = vector.shape_cast %658 : vector<4x128xf32> to vector<1x4x128xf32>
      tpu.vector_store %arg8[%c2_350, %c0_351, %c0_352], %661 {strides = array<i32>} : memref<4x8x128xf32, #tpu.memory_space<vmem>>, vector<1x4x128xf32>,
      %c2_353 = arith.constant 2 : index
      %c0_354 = arith.constant 0 : index
      %c0_355 = arith.constant 0 : index
      %662 = vector.load %arg9[%c2_353, %c0_354, %c0_355] : memref<4x8x128xf32, #tpu.memory_space<vmem>>, vector<1x4x128xf32>
      %663 = vector.shape_cast %662 : vector<1x4x128xf32> to vector<4x128xf32>
      %664 = vector.shape_cast %656 : vector<4x128xf32> to vector<1x4x128xf32>
      tpu.vector_store %arg9[%c2_353, %c0_354, %c0_355], %664 {strides = array<i32>} : memref<4x8x128xf32, #tpu.memory_space<vmem>>, vector<1x4x128xf32>,
      %c4_356 = arith.constant 4 : index
      %c0_357 = arith.constant 0 : index
      %665 = vector.load %arg10[%c4_356, %c0_357] : memref<8x128xf32, #tpu.memory_space<vmem>>, vector<4x128xf32>
      tpu.vector_store %arg10[%c4_356, %c0_357], %658 {strides = array<i32>} : memref<8x128xf32, #tpu.memory_space<vmem>>, vector<4x128xf32>,
      %c0_358 = arith.constant 0 : index
      %c0_359 = arith.constant 0 : index
      %666 = vector.load %arg10[%c0_358, %c0_359] : memref<8x128xf32, #tpu.memory_space<vmem>>, vector<8x128xf32>
      %667 = arith.truncf %666 : vector<8x128xf32> to vector<8x128xbf16>
      %c3_360 = arith.constant 3 : index
      %c0_361 = arith.constant 0 : index
      %c0_362 = arith.constant 0 : index
      %668 = vector.load %arg2[%c3_360, %c0_361, %c0_362] : memref<4x128x512xbf16, #tpu.memory_space<vmem>>, vector<1x128x512xbf16>
      %669 = vector.shape_cast %668 : vector<1x128x512xbf16> to vector<128x512xbf16>
      %cst_363 = arith.constant dense<0.000000e+00> : vector<8x512xf32>
      %670 = tpu.matmul %667, %669, %cst_363 {dimension_numbers = #tpu.dot_dimension_numbers<[1], [0], [0], [1], [0, 0, 1, 1], [], []>} : vector<8x128xbf16>, vector<128x512xbf16>, vector<8x512xf32> -> vector<8x512xf32>
      %c3_364 = arith.constant 3 : index
      %c0_365 = arith.constant 0 : index
      %c0_366 = arith.constant 0 : index
      %671 = vector.load %arg4[%c3_364, %c0_365, %c0_366] : memref<4x1x512xf32, #tpu.memory_space<vmem>>, vector<1x1x512xf32>
      %672 = vector.shape_cast %671 : vector<1x1x512xf32> to vector<1x512xf32>
      %673 = vector.broadcast %672 : vector<1x512xf32> to vector<8x512xf32>
      %674 = arith.addf %670, %673 : vector<8x512xf32>
      %c3_367 = arith.constant 3 : index
      %c0_368 = arith.constant 0 : index
      %c0_369 = arith.constant 0 : index
      %675 = vector.load %arg8[%c3_367, %c0_368, %c0_369] : memref<4x8x128xf32, #tpu.memory_space<vmem>>, vector<1x8x128xf32>
      %676 = vector.shape_cast %675 : vector<1x8x128xf32> to vector<8x128xf32>
      %c3_370 = arith.constant 3 : index
      %c0_371 = arith.constant 0 : index
      %c0_372 = arith.constant 0 : index
      %677 = vector.load %arg9[%c3_370, %c0_371, %c0_372] : memref<4x8x128xf32, #tpu.memory_space<vmem>>, vector<1x8x128xf32>
      %678 = vector.shape_cast %677 : vector<1x8x128xf32> to vector<8x128xf32>
      %679 = arith.truncf %676 : vector<8x128xf32> to vector<8x128xbf16>
      %c3_373 = arith.constant 3 : index
      %c0_374 = arith.constant 0 : index
      %c0_375 = arith.constant 0 : index
      %680 = vector.load %arg3[%c3_373, %c0_374, %c0_375] : memref<4x128x512xbf16, #tpu.memory_space<vmem>>, vector<1x128x512xbf16>
      %681 = vector.shape_cast %680 : vector<1x128x512xbf16> to vector<128x512xbf16>
      %cst_376 = arith.constant dense<0.000000e+00> : vector<8x512xf32>
      %682 = tpu.matmul %679, %681, %cst_376 {dimension_numbers = #tpu.dot_dimension_numbers<[1], [0], [0], [1], [0, 0, 1, 1], [], []>} : vector<8x128xbf16>, vector<128x512xbf16>, vector<8x512xf32> -> vector<8x512xf32>
      %683 = arith.addf %674, %682 : vector<8x512xf32>
      %684 = vector.extract_strided_slice %683 {offsets = [0, 0], sizes = [8, 128], strides = [1, 1]} : vector<8x512xf32> to vector<8x128xf32>
      %cst_377 = arith.constant 0.000000e+00 : f32
      %685 = vector.broadcast %cst_377 : f32 to vector<8x128xf32>
      %686 = arith.subf %685, %684 : vector<8x128xf32>
      %687 = math.exp %686 : vector<8x128xf32>
      %cst_378 = arith.constant 1.000000e+00 : f32
      %688 = vector.broadcast %cst_378 : f32 to vector<8x128xf32>
      %689 = arith.addf %688, %687 : vector<8x128xf32>
      %690 = tpu.reciprocal %689 {approx = true} : vector<8x128xf32> -> vector<8x128xf32>
      %691 = vector.extract_strided_slice %683 {offsets = [0, 128], sizes = [8, 128], strides = [1, 1]} : vector<8x512xf32> to vector<8x128xf32>
      %cst_379 = arith.constant 0.000000e+00 : f32
      %692 = vector.broadcast %cst_379 : f32 to vector<8x128xf32>
      %693 = arith.subf %692, %691 : vector<8x128xf32>
      %694 = math.exp %693 : vector<8x128xf32>
      %cst_380 = arith.constant 1.000000e+00 : f32
      %695 = vector.broadcast %cst_380 : f32 to vector<8x128xf32>
      %696 = arith.addf %695, %694 : vector<8x128xf32>
      %697 = tpu.reciprocal %696 {approx = true} : vector<8x128xf32> -> vector<8x128xf32>
      %698 = vector.extract_strided_slice %683 {offsets = [0, 256], sizes = [8, 128], strides = [1, 1]} : vector<8x512xf32> to vector<8x128xf32>
      %699 = math.tanh %698 : vector<8x128xf32>
      %700 = vector.extract_strided_slice %683 {offsets = [0, 384], sizes = [8, 128], strides = [1, 1]} : vector<8x512xf32> to vector<8x128xf32>
      %cst_381 = arith.constant 0.000000e+00 : f32
      %701 = vector.broadcast %cst_381 : f32 to vector<8x128xf32>
      %702 = arith.subf %701, %700 : vector<8x128xf32>
      %703 = math.exp %702 : vector<8x128xf32>
      %cst_382 = arith.constant 1.000000e+00 : f32
      %704 = vector.broadcast %cst_382 : f32 to vector<8x128xf32>
      %705 = arith.addf %704, %703 : vector<8x128xf32>
      %706 = tpu.reciprocal %705 {approx = true} : vector<8x128xf32> -> vector<8x128xf32>
      %707 = arith.mulf %697, %678 : vector<8x128xf32>
      %708 = arith.mulf %690, %699 : vector<8x128xf32>
      %709 = arith.addf %707, %708 : vector<8x128xf32>
      %710 = math.tanh %709 : vector<8x128xf32>
      %711 = arith.mulf %706, %710 : vector<8x128xf32>
      %c3_383 = arith.constant 3 : index
      %c0_384 = arith.constant 0 : index
      %c0_385 = arith.constant 0 : index
      %712 = vector.load %arg8[%c3_383, %c0_384, %c0_385] : memref<4x8x128xf32, #tpu.memory_space<vmem>>, vector<1x8x128xf32>
      %713 = vector.shape_cast %712 : vector<1x8x128xf32> to vector<8x128xf32>
      %714 = vector.shape_cast %711 : vector<8x128xf32> to vector<1x8x128xf32>
      tpu.vector_store %arg8[%c3_383, %c0_384, %c0_385], %714 {strides = array<i32>} : memref<4x8x128xf32, #tpu.memory_space<vmem>>, vector<1x8x128xf32>,
      %c3_386 = arith.constant 3 : index
      %c0_387 = arith.constant 0 : index
      %c0_388 = arith.constant 0 : index
      %715 = vector.load %arg9[%c3_386, %c0_387, %c0_388] : memref<4x8x128xf32, #tpu.memory_space<vmem>>, vector<1x8x128xf32>
      %716 = vector.shape_cast %715 : vector<1x8x128xf32> to vector<8x128xf32>
      %717 = vector.shape_cast %709 : vector<8x128xf32> to vector<1x8x128xf32>
      tpu.vector_store %arg9[%c3_386, %c0_387, %c0_388], %717 {strides = array<i32>} : memref<4x8x128xf32, #tpu.memory_space<vmem>>, vector<1x8x128xf32>,
      %718 = arith.index_cast %7 : i32 to index
      %c0_389 = arith.constant 0 : index
      %719 = vector.load %arg7[%718, %c0_389] : memref<16x128xf32, #tpu.memory_space<vmem>>, vector<8x128xf32>
      tpu.vector_store %arg7[%718, %c0_389], %711 {strides = array<i32>} : memref<16x128xf32, #tpu.memory_space<vmem>>, vector<8x128xf32>,
    }
    %c2_i32_2 = arith.constant 2 : i32
    return
  }
  func.func @transform_0(%arg0: i32) -> (i32, i32) {
    %c0_i32 = arith.constant 0 : i32
    %c0_i32_0 = arith.constant 0 : i32
    return %arg0, %c0_i32 : i32, i32
  }
  func.func @transform_1(%arg0: i32) -> (i32, i32, i32) {
    %c0_i32 = arith.constant 0 : i32
    %c0_i32_0 = arith.constant 0 : i32
    %c0_i32_1 = arith.constant 0 : i32
    %c0_i32_2 = arith.constant 0 : i32
    return %c0_i32, %c0_i32_0, %c0_i32_1 : i32, i32, i32
  }
  func.func @transform_2(%arg0: i32) -> (i32, i32, i32) {
    %c0_i32 = arith.constant 0 : i32
    %c0_i32_0 = arith.constant 0 : i32
    %c0_i32_1 = arith.constant 0 : i32
    %c0_i32_2 = arith.constant 0 : i32
    return %c0_i32, %c0_i32_0, %c0_i32_1 : i32, i32, i32
  }
  func.func @transform_3(%arg0: i32) -> (i32, i32, i32) {
    %c0_i32 = arith.constant 0 : i32
    %c0_i32_0 = arith.constant 0 : i32
    %c0_i32_1 = arith.constant 0 : i32
    %c0_i32_2 = arith.constant 0 : i32
    return %c0_i32, %c0_i32_0, %c0_i32_1 : i32, i32, i32
  }
  func.func @transform_4(%arg0: i32) -> (i32, i32, i32) {
    %c0_i32 = arith.constant 0 : i32
    %c0_i32_0 = arith.constant 0 : i32
    %c0_i32_1 = arith.constant 0 : i32
    %c0_i32_2 = arith.constant 0 : i32
    return %c0_i32, %c0_i32_0, %c0_i32_1 : i32, i32, i32
  }
  func.func @transform_5(%arg0: i32) -> (i32, i32, i32) {
    %c0_i32 = arith.constant 0 : i32
    %c0_i32_0 = arith.constant 0 : i32
    %c0_i32_1 = arith.constant 0 : i32
    %c0_i32_2 = arith.constant 0 : i32
    return %c0_i32, %c0_i32_0, %c0_i32_1 : i32, i32, i32
  }
  func.func @transform_6(%arg0: i32) -> (i32, i32) {
    %c0_i32 = arith.constant 0 : i32
    %c0_i32_0 = arith.constant 0 : i32
    return %arg0, %c0_i32 : i32, i32
  }
}

</mosaic_0001>

<bundles_post_ra>
// kernel: tpu_custom_call.1
= control target key start
LH: loop header
LB: loop body
LE: loop exit
PB: predicated region body
PF: predicated region fallthrough
CT: control target
= control target key end

     0   :  { %11 = vsyncpa [#allocation6], 0  ;;  %s8521_s0 = inlined_call_operand.hbm [shape: f32[16,128], index: 0, kind: input, shape index: {}]   ;;  %s8522_s1 = inlined_call_operand.hbm [shape: bf16[4,128,512], index: 1, kind: input, shape index: {}]   ;;  %s8523_s2 = inlined_call_operand.hbm [shape: bf16[4,128,512], index: 2, kind: input, shape index: {}]   ;;  %s8524_s3 = inlined_call_operand.hbm [shape: f32[4,1,512], index: 3, kind: input, shape index: {}]   ;;  %s8525_s4 = inlined_call_operand.hbm [shape: f32[4,8,128], index: 4, kind: input, shape index: {}]   ;;  %s8526_s5 = inlined_call_operand.hbm [shape: f32[4,8,128], index: 5, kind: input, shape index: {}]   ;;  %s8527_s6 = inlined_call_operand.hbm [shape: f32[16,128], index: 6, kind: output, shape index: {}]  }
   0x1   :  { %12 = vsyncpa [#allocation9], 0 }
   0x2   :  { %13 = vsyncpa [#allocation12], 0 }
   0x3   :  { %14 = vsyncpa [#allocation15], 0 }
   0x4   :  { %15 = vsyncpa [#allocation7], 0  ;;  %s7599_s21 = smov [#allocation8]   ;;  %s7427_s25 = scalar_lea.hbm %s8522_s1, 16384 }
   0x5   :  { %s33_s22 = sshll.u32 %s7599_s21, 4  ;;  %p7428_p0 = scmp.ne.s32.totalorder %s8522_s1, %s7427_s25  ;;  %s34_s22 = int_to_ptr.vmem [resolvable:$true] %s33_s22 }
   0x6   :  { %p7431_p1 = scmp.lt.u32.totalorder %s7427_s25, %s8522_s1 }
   0x8   :  { %p7433_p2 = pnand %p7431_p1, %p7428_p0 }
   0xa   :  { %7436 = shalt.err (!%p7433_p2)
}
   0xb   :  { %s7437_s30 = scalar_lea.vmem %s34_s22, 16384  ;;  %p7442_p4 = scmp.lt.s32.totalorder %s34_s22, %s34_s22 }
   0xc   :  { %p7438_p3 = scmp.ne.s32.totalorder %s34_s22, %s7437_s30  ;;  %p7443_p5 = scmp.lt.s32.totalorder %s7437_s30, %s7437_s30 }
   0xe   :  { %p7444_p6 = por %p7443_p5, %p7442_p4 }
  0x10   :  { %p7445_p7 = pnand %p7444_p6, %p7438_p3 }
  0x12   :  { %7448 = shalt.err (!%p7445_p7)
}
  0x13   :  { %s7600_s7 = smov 256   ;;  %s7601_s8 = smov 16  }
  0x14   :  { %39 = dma.hbm_to_vmem [thread:$0]  %s8522_s1, 16384, %s34_s22, [#allocation9], %s7600_s7, %s7600_s7, %s7601_s8  }
  0x15   :  { %s7602_s11 = smov [#allocation11]   ;;  %s7449_s15 = scalar_lea.hbm %s8524_s3, 256 }
  0x16   :  { %s57_s12 = sshll.u32 %s7602_s11, 4  ;;  %p7450_p8 = scmp.ne.s32.totalorder %s8524_s3, %s7449_s15  ;;  %s58_s12 = int_to_ptr.vmem [resolvable:$true] %s57_s12 }
  0x17   :  { %p7453_p9 = scmp.lt.u32.totalorder %s7449_s15, %s8524_s3 }
  0x19   :  { %p7455_p10 = pnand %p7453_p9, %p7450_p8 }
  0x1b   :  { %7458 = shalt.err (!%p7455_p10)
}
  0x1c   :  { %s7459_s20 = scalar_lea.vmem %s58_s12, 256  ;;  %p7464_p12 = scmp.lt.s32.totalorder %s58_s12, %s58_s12 }
  0x1d   :  { %p7460_p11 = scmp.ne.s32.totalorder %s58_s12, %s7459_s20  ;;  %p7465_p13 = scmp.lt.s32.totalorder %s7459_s20, %s7459_s20 }
  0x1f   :  { %p7466_p0 = por %p7465_p13, %p7464_p12 }
  0x21   :  { %p7467_p1 = pnand %p7466_p0, %p7460_p11 }
  0x23   :  { %7470 = shalt.err (!%p7467_p1)
}
  0x24   :  { %s7603_s1 = smov 64   ;;  %s7604_s21 = smov 4  }
  0x25   :  { %63 = dma.hbm_to_vmem [thread:$0]  %s8524_s3, 256, %s58_s12, [#allocation12], %s7603_s1, %s7603_s1, %s7604_s21  }
  0x26   :  { %s7605_s24 = smov [#allocation5]   ;;  %s7471_s28 = scalar_lea.hbm %s8521_s0, 256 }
  0x27   :  { %s21_s25 = sshll.u32 %s7605_s24, 4  ;;  %p7472_p2 = scmp.ne.s32.totalorder %s8521_s0, %s7471_s28  ;;  %s22_s25 = int_to_ptr.vmem [resolvable:$true] %s21_s25 }
  0x28   :  { %p7475_p3 = scmp.lt.u32.totalorder %s7471_s28, %s8521_s0 }
  0x2a   :  { %p7477_p4 = pnand %p7475_p3, %p7472_p2 }
  0x2c   :  { %7480 = shalt.err (!%p7477_p4)
}
  0x2d   :  { %s7481_s11 = scalar_lea.vmem %s22_s25, 256  ;;  %p7486_p6 = scmp.lt.s32.totalorder %s22_s25, %s22_s25 }
  0x2e   :  { %p7482_p5 = scmp.ne.s32.totalorder %s22_s25, %s7481_s11  ;;  %p7487_p7 = scmp.lt.s32.totalorder %s7481_s11, %s7481_s11 }
  0x30   :  { %p7488_p8 = por %p7487_p7, %p7486_p6 }
  0x32   :  { %p7489_p9 = pnand %p7488_p8, %p7482_p5 }
  0x34   :  { %7492 = shalt.err (!%p7489_p9)
}
  0x35   :  { %s7606_s3 = smov 128   ;;  %s7607_s12 = smov 8  }
  0x36   :  { %27 = dma.hbm_to_vmem [thread:$0]  %s8521_s0, 256, %s22_s25, [#allocation6], %s7606_s3, %s7606_s3, %s7607_s12  }
  0x37   :  { %s7608_s15 = smov [#allocation10]   ;;  %s7609_s17 = smov [#allocation13]  }
  0x38   :  { %s45_s16 = sshll.u32 %s7608_s15, 4  ;;  %s69_s18 = sshll.u32 %s7609_s17, 4  ;;  %s46_s16 = int_to_ptr.vmem [resolvable:$true] %s45_s16  ;;  %s70_s18 = int_to_ptr.vmem [resolvable:$true] %s69_s18 }
  0x39   :  { %s7493_s1 = scalar_lea.hbm %s8523_s2, 16384 }
  0x3a   :  { %p7494_p10 = scmp.ne.s32.totalorder %s8523_s2, %s7493_s1  ;;  %p7497_p11 = scmp.lt.u32.totalorder %s7493_s1, %s8523_s2 }
  0x3c   :  { %p7499_p12 = pnand %p7497_p11, %p7494_p10 }
  0x3e   :  { %7502 = shalt.err (!%p7499_p12)
}
  0x3f   :  { %s7503_s0 = scalar_lea.vmem %s46_s16, 16384  ;;  %p7508_p0 = scmp.lt.s32.totalorder %s46_s16, %s46_s16 }
  0x40   :  { %p7504_p13 = scmp.ne.s32.totalorder %s46_s16, %s7503_s0  ;;  %p7509_p1 = scmp.lt.s32.totalorder %s7503_s0, %s7503_s0 }
  0x42   :  { %p7510_p2 = por %p7509_p1, %p7508_p0 }
  0x44   :  { %p7511_p3 = pnand %p7510_p2, %p7504_p13 }
  0x46   :  { %7514 = shalt.err (!%p7511_p3)
}
  0x47   :  { %51 = dma.hbm_to_vmem [thread:$0]  %s8523_s2, 16384, %s46_s16, [#allocation9], %s7600_s7, %s7600_s7, %s7601_s8  }
  0x48   :  { %s7515_s29 = scalar_lea.hbm %s8525_s4, 512 }
  0x49   :  { %p7516_p4 = scmp.ne.s32.totalorder %s8525_s4, %s7515_s29  ;;  %p7519_p5 = scmp.lt.u32.totalorder %s7515_s29, %s8525_s4 }
  0x4b   :  { %p7521_p6 = pnand %p7519_p5, %p7516_p4 }
  0x4d   :  { %7524 = shalt.err (!%p7521_p6)
}
  0x4e   :  { %s7525_s13 = scalar_lea.vmem %s70_s18, 512  ;;  %p7530_p8 = scmp.lt.s32.totalorder %s70_s18, %s70_s18 }
  0x4f   :  { %p7526_p7 = scmp.ne.s32.totalorder %s70_s18, %s7525_s13  ;;  %p7531_p9 = scmp.lt.s32.totalorder %s7525_s13, %s7525_s13 }
  0x51   :  { %p7532_p10 = por %p7531_p9, %p7530_p8 }
  0x53   :  { %p7533_p11 = pnand %p7532_p10, %p7526_p7 }
  0x55   :  { %7536 = shalt.err (!%p7533_p11)
}
  0x56   :  { %75 = dma.hbm_to_vmem [thread:$0]  %s8525_s4, 512, %s70_s18, [#allocation12], %s7606_s3, %s7606_s3, %s7607_s12  }
  0x57   :  { %s7610_s8 = smov [#allocation14]   ;;  %s7537_s17 = scalar_lea.hbm %s8526_s5, 512 }
  0x58   :  { %s81_s14 = sshll.u32 %s7610_s8, 4  ;;  %p7538_p12 = scmp.ne.s32.totalorder %s8526_s5, %s7537_s17  ;;  %s82_s14 = int_to_ptr.vmem [resolvable:$true] %s81_s14 }
  0x59   :  { %p7541_p13 = scmp.lt.u32.totalorder %s7537_s17, %s8526_s5 }
  0x5b   :  { %p7543_p0 = pnand %p7541_p13, %p7538_p12 }
  0x5d   :  { %7546 = shalt.err (!%p7543_p0)
}
  0x5e   :  { %s7547_s22 = scalar_lea.vmem %s82_s14, 512  ;;  %p7552_p2 = scmp.lt.s32.totalorder %s82_s14, %s82_s14 }
  0x5f   :  { %p7548_p1 = scmp.ne.s32.totalorder %s82_s14, %s7547_s22  ;;  %p7553_p3 = scmp.lt.s32.totalorder %s7547_s22, %s7547_s22 }
  0x61   :  { %p7554_p4 = por %p7553_p3, %p7552_p2 }
  0x63   :  { %p7555_p5 = pnand %p7554_p4, %p7548_p1 }
  0x65   :  { %7558 = shalt.err (!%p7555_p5)
}
  0x66   :  { %87 = dma.hbm_to_vmem [thread:$0]  %s8526_s5, 512, %s82_s14, [#allocation15], %s7606_s3, %s7606_s3, %s7607_s12  }
  0x67   :  { %7585 = dma.done.wait [#allocation6], 256  }
  0x68   :  { %7586 = vsyncadd [#allocation6], 4294967040 }
  0x69   :  { %7587 = dma.done.wait [#allocation9], 32768  }
  0x6a   :  { %7588 = vsyncadd [#allocation9], 4294934528 }
  0x6b   :  { %7589 = dma.done.wait [#allocation12], 768  }
  0x6c   :  { %7590 = vsyncadd [#allocation12], 4294966528 }
  0x6d   :  { %7591 = dma.done.wait [#allocation15], 512  }
  0x6e   :  { %7592 = vsyncadd [#allocation15], 4294966784  ;;  %v111_v0 = vld [vmem:[#allocation13] sm:$0xff]  ;;  %v112_v1 = vld [vmem:[#allocation13 + $0x8] sm:$0xff]  ;;  %s7735_s5 = smov 0  }
  0x6f   :  { %v113_v2 = vld [vmem:[#allocation13 + $0x10] sm:$0xff]  ;;  %115 = vst [vmem:[#allocation2] sm:$0xff] %v111_v0  ;;  %116 = vst [vmem:[#allocation2 + $0x8] sm:$0xff] %v112_v1  ;;  %v114_v3 = vld [vmem:[#allocation13 + $0x18] sm:$0xff] }
  0x70   :  { %117 = vst [vmem:[#allocation2 + $0x10] sm:$0xff] %v113_v2  ;;  %v119_v4 = vld [vmem:[#allocation14] sm:$0xff]  ;;  %v120_v5 = vld [vmem:[#allocation14 + $0x8] sm:$0xff]  ;;  %118 = vst [vmem:[#allocation2 + $0x18] sm:$0xff] %v114_v3 }
  0x71   :  { %123 = vst [vmem:[#allocation3] sm:$0xff] %v119_v4  ;;  %124 = vst [vmem:[#allocation3 + $0x8] sm:$0xff] %v120_v5  ;;  %v121_v6 = vld [vmem:[#allocation14 + $0x10] sm:$0xff]  ;;  %v122_v7 = vld [vmem:[#allocation14 + $0x18] sm:$0xff] }
  0x72   :  { %125 = vst [vmem:[#allocation3 + $0x10] sm:$0xff] %v121_v6  ;;  %126 = vst [vmem:[#allocation3 + $0x18] sm:$0xff] %v122_v7 }
  0x73 LB: > { %v6755_v8 = vld [vmem:[#allocation8 + $0x4] ss:$16 sps:$4 sm:$0xff]   ;;  %v6757_v9 = vld [vmem:[#allocation8 + $0xc] ss:$16 sps:$4 sm:$0xff]   ;;  %v7611_v10 = vmov 0   ;;  %s6112_s23 = sshll.u32 %s7597_s5, 3  ;;  %s7597_s5 = sphi %s7735_s5, %s132_s5  }
  0x74   : > { %383 = vmatprep.mubr.bf16.mxu0 %v7611_v10  ;;  %424 = vmatprep.mubr.bf16.mxu1 %v7611_v10  ;;  %v6759_v11 = vld [vmem:[#allocation8] ss:$16 sps:$4 sm:$0xff]   ;;  %v6760_v12 = vld [vmem:[#allocation8 + $0x8] ss:$16 sps:$4 sm:$0xff]   ;;  %v6761_v13 = vld [vmem:[#allocation8 + $0x24] ss:$16 sps:$4 sm:$0xff]  }
  0x75   : > { %351 = vmatprep.subr.bf16.mxu0 %v6755_v8  ;;  %392 = vmatprep.subr.bf16.mxu1 %v6757_v9  ;;  %v6763_v14 = vld [vmem:[#allocation8 + $0x2c] ss:$16 sps:$4 sm:$0xff]   ;;  %v6765_v15 = vld [vmem:[#allocation8 + $0x20] ss:$16 sps:$4 sm:$0xff]   ;;  %v6766_v16 = vld [vmem:[#allocation8 + $0x28] ss:$16 sps:$4 sm:$0xff]  }
  0x76   : > { %352 = vmatpush1.bf16.msra.mxu0 %v6759_v11  ;;  %393 = vmatpush1.bf16.msra.mxu1 %v6760_v12  ;;  %v6767_v17 = vld [vmem:[#allocation8 + $0x44] ss:$16 sps:$4 sm:$0xff]   ;;  %v6769_v18 = vld [vmem:[#allocation8 + $0x4c] ss:$16 sps:$4 sm:$0xff]   ;;  %v6771_v19 = vld [vmem:[#allocation8 + $0x40] ss:$16 sps:$4 sm:$0xff]  }
  0x77   : > { %353 = vmatprep.subr.bf16.mxu0 %v6761_v13  ;;  %394 = vmatprep.subr.bf16.mxu1 %v6763_v14  ;;  %v6772_v20 = vld [vmem:[#allocation8 + $0x48] ss:$16 sps:$4 sm:$0xff]   ;;  %v6773_v21 = vld [vmem:[#allocation8 + $0x64] ss:$16 sps:$4 sm:$0xff]   ;;  %v6775_v22 = vld [vmem:[#allocation8 + $0x6c] ss:$16 sps:$4 sm:$0xff]  }
  0x78   : > { %v6777_v23 = vld [vmem:[#allocation8 + $0x60] ss:$16 sps:$4 sm:$0xff]   ;;  %v6778_v24 = vld [vmem:[#allocation8 + $0x68] ss:$16 sps:$4 sm:$0xff]   ;;  %v6779_v25 = vld [vmem:[#allocation8 + $0x84] ss:$16 sps:$4 sm:$0xff]  }
  0x79   : > { %v6781_v26 = vld [vmem:[#allocation8 + $0x8c] ss:$16 sps:$4 sm:$0xff]   ;;  %v6783_v27 = vld [vmem:[#allocation8 + $0x80] ss:$16 sps:$4 sm:$0xff]   ;;  %v6784_v28 = vld [vmem:[#allocation8 + $0x88] ss:$16 sps:$4 sm:$0xff]  }
  0x7a   : > { %354 = vmatpush1.bf16.msra.mxu0 %v6765_v15  ;;  %395 = vmatpush1.bf16.msra.mxu1 %v6766_v16  ;;  %v6785_v29 = vld [vmem:[#allocation8 + $0xa4] ss:$16 sps:$4 sm:$0xff]   ;;  %v6787_v30 = vld [vmem:[#allocation8 + $0xac] ss:$16 sps:$4 sm:$0xff]   ;;  %v6789_v31 = vld [vmem:[#allocation8 + $0xa0] ss:$16 sps:$4 sm:$0xff]  }
  0x7b   : > { %355 = vmatprep.subr.bf16.mxu0 %v6767_v17  ;;  %396 = vmatprep.subr.bf16.mxu1 %v6769_v18  ;;  %v6790_v32 = vld [vmem:[#allocation8 + $0xa8] ss:$16 sps:$4 sm:$0xff]   ;;  %v6791_v33 = vld [vmem:[#allocation8 + $0xc4] ss:$16 sps:$4 sm:$0xff]   ;;  %v6793_v34 = vld [vmem:[#allocation8 + $0xcc] ss:$16 sps:$4 sm:$0xff]  }
  0x7c   : > { %v6795_v35 = vld [vmem:[#allocation8 + $0xc0] ss:$16 sps:$4 sm:$0xff]   ;;  %v6796_v36 = vld [vmem:[#allocation8 + $0xc8] ss:$16 sps:$4 sm:$0xff]   ;;  %v6797_v37 = vld [vmem:[#allocation8 + $0xe4] ss:$16 sps:$4 sm:$0xff]  }
  0x7d   : > { %v6799_v38 = vld [vmem:[#allocation8 + $0xec] ss:$16 sps:$4 sm:$0xff]   ;;  %v6801_v39 = vld [vmem:[#allocation8 + $0xe0] ss:$16 sps:$4 sm:$0xff]   ;;  %v6802_v40 = vld [vmem:[#allocation8 + $0xe8] ss:$16 sps:$4 sm:$0xff]  }
  0x7e   : > { %356 = vmatpush1.bf16.msra.mxu0 %v6771_v19  ;;  %397 = vmatpush1.bf16.msra.mxu1 %v6772_v20  ;;  %s134_s24 = scalar_lea.vmem [#allocation5], %s6112_s23  ;;  %v7745_v42 = vld [vmem:[#allocation10 + $0x4] ss:$16 sps:$4 sm:$0xff]   ;;  %v7747_v43 = vld [vmem:[#allocation10 + $0xc] ss:$16 sps:$4 sm:$0xff]   ;;  %s6081_s0 = scalar_lea.vmem [#allocation16], %s6112_s23 }
  0x7f   : > { %357 = vmatprep.subr.bf16.mxu0 %v6773_v21  ;;  %398 = vmatprep.subr.bf16.mxu1 %v6775_v22  ;;  %v135_v41 = vld [vmem:[%s134_s24] sm:$0xff]  ;;  %v7749_v45 = vld [vmem:[#allocation10] ss:$16 sps:$4 sm:$0xff]   ;;  %v7755_v47 = vld [vmem:[#allocation10 + $0x24] ss:$16 sps:$4 sm:$0xff]   ;;  %v171_v22 = vlaneseq  ;;  %s132_s5 = sadd.s32 1, %s7597_s5  }
  0x80   : > { %v136_v44 = vpack.c.bf16 %v135_v41, %v135_v41  ;;  %v7751_v46 = vld [vmem:[#allocation10 + $0x8] ss:$16 sps:$4 sm:$0xff]   ;;  %v7757_v48 = vld [vmem:[#allocation10 + $0x2c] ss:$16 sps:$4 sm:$0xff]   ;;  %v7759_v49 = vld [vmem:[#allocation10 + $0x20] ss:$16 sps:$4 sm:$0xff]  }
  0x81   : > { %v7763_v50 = vld [vmem:[#allocation10 + $0x28] ss:$16 sps:$4 sm:$0xff]   ;;  %v7767_v51 = vld [vmem:[#allocation10 + $0x44] ss:$16 sps:$4 sm:$0xff]   ;;  %v7769_v52 = vld [vmem:[#allocation10 + $0x4c] ss:$16 sps:$4 sm:$0xff]  }
  0x82   : > { %358 = vmatpush1.bf16.msra.mxu0 %v6777_v23  ;;  %399 = vmatpush1.bf16.msra.mxu1 %v6778_v24  ;;  %v7773_v53 = vld [vmem:[#allocation10 + $0x40] ss:$16 sps:$4 sm:$0xff]   ;;  %v7777_v54 = vld [vmem:[#allocation10 + $0x48] ss:$16 sps:$4 sm:$0xff]   ;;  %v7781_v55 = vld [vmem:[#allocation10 + $0x64] ss:$16 sps:$4 sm:$0xff]  }
  0x83   : > { %359 = vmatprep.subr.bf16.mxu0 %v6779_v25  ;;  %400 = vmatprep.subr.bf16.mxu1 %v6781_v26  ;;  %v7783_v56 = vld [vmem:[#allocation10 + $0x6c] ss:$16 sps:$4 sm:$0xff]   ;;  %v7785_v57 = vld [vmem:[#allocation10 + $0x60] ss:$16 sps:$4 sm:$0xff]   ;;  %v7787_v58 = vld [vmem:[#allocation10 + $0x68] ss:$16 sps:$4 sm:$0xff]  }
  0x84   : > { %v7789_v59 = vld [vmem:[#allocation10 + $0x84] ss:$16 sps:$4 sm:$0xff]   ;;  %v7791_v60 = vld [vmem:[#allocation10 + $0x8c] ss:$16 sps:$4 sm:$0xff]   ;;  %v7797_v61 = vld [vmem:[#allocation10 + $0x80] ss:$16 sps:$4 sm:$0xff]  }
  0x85   : > { %v7799_v62 = vld [vmem:[#allocation10 + $0x88] ss:$16 sps:$4 sm:$0xff]   ;;  %v7801_v63 = vld [vmem:[#allocation10 + $0xa4] ss:$16 sps:$4 sm:$0xff]   ;;  %v7803_v0 = vld [vmem:[#allocation10 + $0xac] ss:$16 sps:$4 sm:$0xff]  }
  0x86   : > { %360 = vmatpush1.bf16.msra.mxu0 %v6783_v27  ;;  %401 = vmatpush1.bf16.msra.mxu1 %v6784_v28  ;;  %v7809_v1 = vld [vmem:[#allocation10 + $0xa0] ss:$16 sps:$4 sm:$0xff]   ;;  %v7811_v2 = vld [vmem:[#allocation10 + $0xa8] ss:$16 sps:$4 sm:$0xff]   ;;  %v7813_v3 = vld [vmem:[#allocation10 + $0xc4] ss:$16 sps:$4 sm:$0xff]  }
  0x87   : > { %361 = vmatprep.subr.bf16.mxu0 %v6785_v29  ;;  %402 = vmatprep.subr.bf16.mxu1 %v6787_v30  ;;  %v7815_v4 = vld [vmem:[#allocation10 + $0xcc] ss:$16 sps:$4 sm:$0xff]   ;;  %v7821_v5 = vld [vmem:[#allocation10 + $0xc0] ss:$16 sps:$4 sm:$0xff]   ;;  %v7823_v6 = vld [vmem:[#allocation10 + $0xc8] ss:$16 sps:$4 sm:$0xff]  }
  0x88   : > { %v7825_v7 = vld [vmem:[#allocation10 + $0xe4] ss:$16 sps:$4 sm:$0xff]   ;;  %v7827_v8 = vld [vmem:[#allocation10 + $0xec] ss:$16 sps:$4 sm:$0xff]   ;;  %v7833_v9 = vld [vmem:[#allocation10 + $0xe0] ss:$16 sps:$4 sm:$0xff]  }
  0x89   : > { %v7835_v11 = vld [vmem:[#allocation10 + $0xe8] ss:$16 sps:$4 sm:$0xff]   ;;  %v172_v23 = vshrl.u32 %v171_v22, 7  ;;  %v169_v25 = vld [vmem:[#allocation11] sm:$0xf]  ;;  %p129_p6 = scmp.ge.s32.totalorder %s132_s5, 2  }
  0x8a   : > { %362 = vmatpush1.bf16.msra.mxu0 %v6789_v31  ;;  %403 = vmatpush1.bf16.msra.mxu1 %v6790_v32  ;;  %v433_v12 = vld [vmem:[#allocation2] sm:$0x1]  ;;  %s7612_s25 = smov (%p129_p6), [#allocation16]  }
  0x8b   : > { %363 = vmatprep.subr.bf16.mxu0 %v6791_v33  ;;  %404 = vmatprep.subr.bf16.mxu1 %v6793_v34  ;;  %v435_v13 = vpack.c.bf16 %v433_v12, %v433_v12  ;;  %v7879_v24 = vsub.s32 0, %v172_v23  ;;  %v7881_v26 = vsub.s32 1, %v172_v23  ;;  %v7885_v29 = vsub.s32 3, %v172_v23  ;;  %s6088_s26 = sshll.u32 (%p129_p6), %s7612_s25, 4  ;;  %s6089_s26 = int_to_ptr.vmem [resolvable:$true] %s6088_s26 }
  0x8c   :  { %s7559_s27 = scalar_lea.vmem (%p129_p6), %s6089_s26, 256  ;;  %p7564_p8 = scmp.lt.s32.totalorder (%p129_p6), %s6089_s26, %s6089_s26 }
  0x8d   : > { %v174_v27 = vrot.slane %v169_v25, %v7879_v24  ;;  %v178_v28 = vrot.slane %v169_v25, %v7881_v26  ;;  %v186_v32 = vrot.slane %v169_v25, %v7885_v29  ;;  %p7560_p7 = scmp.ne.s32.totalorder (%p129_p6), %s6089_s26, %s7559_s27  ;;  %p7565_p9 = scmp.lt.s32.totalorder (%p129_p6), %s7559_s27, %s7559_s27 }
  0x8e   : > { %364 = vmatpush1.bf16.msra.mxu0 %v6795_v35  ;;  %405 = vmatpush1.bf16.msra.mxu1 %v6796_v36 }
  0x8f   : > { %365 = vmatprep.subr.bf16.mxu0 %v6797_v37  ;;  %406 = vmatprep.subr.bf16.mxu1 %v6799_v38  ;;  %p7566_p10 = por (%p129_p6), %p7565_p9, %p7564_p8 }
  0x91   :  { %p7567_p11 = pnand (%p129_p6), %p7566_p10, %p7560_p7 }
  0x92   : > { %366 = vmatpush1.bf16.msra.mxu0 %v6801_v39  ;;  %407 = vmatpush1.bf16.msra.mxu1 %v6802_v40 }
  0x93   : > { %628 = vmatprep.subr.bf16.mxu0 %v7745_v42  ;;  %669 = vmatprep.subr.bf16.mxu1 %v7747_v43 }
  0x95   : > { %384 = vmatmul.mubr.bf16.vlgmr.msra.gmra.mrb[0].mxu0 %v136_v44  ;;  %425 = vmatmul.mubr.bf16.vlgmr.msra.gmra.mrb[0].mxu1 %v136_v44 }
  0x96   : > { %629 = vmatpush1.bf16.msra.mxu0 %v7749_v45  ;;  %670 = vmatpush1.bf16.msra.mxu1 %v7751_v46 }
  0x97   : > { %630 = vmatprep.subr.bf16.mxu0 %v7755_v47  ;;  %671 = vmatprep.subr.bf16.mxu1 %v7757_v48 }
  0x98   : > { %660 = vmatprep.mubr.bf16.mxu0 %v7611_v10  ;;  %701 = vmatprep.mubr.bf16.mxu1 %v7611_v10 }
  0x9a   : > { %631 = vmatpush1.bf16.msra.mxu0 %v7759_v49  ;;  %672 = vmatpush1.bf16.msra.mxu1 %v7763_v50 }
  0x9b   : > { %632 = vmatprep.subr.bf16.mxu0 %v7767_v51  ;;  %673 = vmatprep.subr.bf16.mxu1 %v7769_v52 }
  0x9e   : > { %633 = vmatpush1.bf16.msra.mxu0 %v7773_v53  ;;  %674 = vmatpush1.bf16.msra.mxu1 %v7777_v54 }
  0x9f   : > { %634 = vmatprep.subr.bf16.mxu0 %v7781_v55  ;;  %675 = vmatprep.subr.bf16.mxu1 %v7783_v56 }
  0xa2   : > { %635 = vmatpush1.bf16.msra.mxu0 %v7785_v57  ;;  %676 = vmatpush1.bf16.msra.mxu1 %v7787_v58 }
  0xa3   : > { %636 = vmatprep.subr.bf16.mxu0 %v7789_v59  ;;  %677 = vmatprep.subr.bf16.mxu1 %v7791_v60 }
  0xa6   : > { %637 = vmatpush1.bf16.msra.mxu0 %v7797_v61  ;;  %678 = vmatpush1.bf16.msra.mxu1 %v7799_v62 }
  0xa7   : > { %638 = vmatprep.subr.bf16.mxu0 %v7801_v63  ;;  %679 = vmatprep.subr.bf16.mxu1 %v7803_v0 }
  0xaa   : > { %639 = vmatpush1.bf16.msra.mxu0 %v7809_v1  ;;  %680 = vmatpush1.bf16.msra.mxu1 %v7811_v2 }
  0xab   : > { %640 = vmatprep.subr.bf16.mxu0 %v7813_v3  ;;  %681 = vmatprep.subr.bf16.mxu1 %v7815_v4 }
  0xae   : > { %641 = vmatpush1.bf16.msra.mxu0 %v7821_v5  ;;  %682 = vmatpush1.bf16.msra.mxu1 %v7823_v6 }
  0xaf   : > { %642 = vmatprep.subr.bf16.mxu0 %v7825_v7  ;;  %683 = vmatprep.subr.bf16.mxu1 %v7827_v8 }
  0xb2   : > { %643 = vmatpush1.bf16.msra.mxu0 %v7833_v9  ;;  %684 = vmatpush1.bf16.msra.mxu1 %v7835_v11 }
  0xb3   : > { %933 = vmatprep.subr.bf16.mxu0 %v7745_v42  ;;  %974 = vmatprep.subr.bf16.mxu1 %v7747_v43 }
  0xb5   : > { %661 = vmatmul.mubr.bf16.vlgmr.msra.gmra.mrb[4].mxu0 %v435_v13  ;;  %702 = vmatmul.mubr.bf16.vlgmr.msra.gmra.mrb[4].mxu1 %v435_v13 }
  0xb6   : > { %934 = vmatpush1.bf16.msra.mxu0 %v7749_v45  ;;  %975 = vmatpush1.bf16.msra.mxu1 %v7751_v46 }
  0xb7   : > { %935 = vmatprep.subr.bf16.mxu0 %v7755_v47  ;;  %976 = vmatprep.subr.bf16.mxu1 %v7757_v48 }
  0xb8   : > { %965 = vmatprep.mubr.bf16.mxu0 %v7611_v10  ;;  %1006 = vmatprep.mubr.bf16.mxu1 %v7611_v10 }
  0xba   : > { %936 = vmatpush1.bf16.msra.mxu0 %v7759_v49  ;;  %977 = vmatpush1.bf16.msra.mxu1 %v7763_v50 }
  0xbb   : > { %937 = vmatprep.subr.bf16.mxu0 %v7767_v51  ;;  %978 = vmatprep.subr.bf16.mxu1 %v7769_v52 }
  0xbe   : > { %938 = vmatpush1.bf16.msra.mxu0 %v7773_v53  ;;  %979 = vmatpush1.bf16.msra.mxu1 %v7777_v54 }
  0xbf   : > { %939 = vmatprep.subr.bf16.mxu0 %v7781_v55  ;;  %980 = vmatprep.subr.bf16.mxu1 %v7783_v56 }
  0xc2   : > { %940 = vmatpush1.bf16.msra.mxu0 %v7785_v57  ;;  %981 = vmatpush1.bf16.msra.mxu1 %v7787_v58 }
  0xc3   : > { %941 = vmatprep.subr.bf16.mxu0 %v7789_v59  ;;  %982 = vmatprep.subr.bf16.mxu1 %v7791_v60 }
  0xc6   : > { %942 = vmatpush1.bf16.msra.mxu0 %v7797_v61  ;;  %983 = vmatpush1.bf16.msra.mxu1 %v7799_v62 }
  0xc7   : > { %943 = vmatprep.subr.bf16.mxu0 %v7801_v63  ;;  %984 = vmatprep.subr.bf16.mxu1 %v7803_v0 }
  0xca   : > { %944 = vmatpush1.bf16.msra.mxu0 %v7809_v1  ;;  %985 = vmatpush1.bf16.msra.mxu1 %v7811_v2 }
  0xcb   : > { %945 = vmatprep.subr.bf16.mxu0 %v7813_v3  ;;  %986 = vmatprep.subr.bf16.mxu1 %v7815_v4 }
  0xce   : > { %946 = vmatpush1.bf16.msra.mxu0 %v7821_v5  ;;  %987 = vmatpush1.bf16.msra.mxu1 %v7823_v6 }
  0xcf   : > { %947 = vmatprep.subr.bf16.mxu0 %v7825_v7  ;;  %988 = vmatprep.subr.bf16.mxu1 %v7827_v8 }
  0xd2   : > { %948 = vmatpush1.bf16.msra.mxu0 %v7833_v9  ;;  %989 = vmatpush1.bf16.msra.mxu1 %v7835_v11 }
  0xd3   : > { %1253 = vmatprep.subr.bf16.mxu0 %v7745_v42  ;;  %1294 = vmatprep.subr.bf16.mxu1 %v7747_v43 }
 0x168   : > { %v385_v14 = vpop.f32.mrb[0].mxu0  ;;  %v426_v15 = vpop.f32.mrb[0].mxu1 }
 0x169   : > { %v387_v16 = vpop.f32.mrb[1].mxu0  ;;  %v428_v17 = vpop.f32.mrb[1].mxu1  ;;  %v7887_v30 = vadd.f32 %v385_v14, %v174_v27 }
 0x16a   : > { %v389_v18 = vpop.f32.mrb[2].mxu0  ;;  %v430_v19 = vpop.f32.mrb[2].mxu1  ;;  %v7889_v31 = vadd.f32 %v387_v16, %v178_v28  ;;  %v7894_v13 = vadd.f32 %v428_v17, %v186_v32  ;;  %v7896_v16 = vsub.s32 2, %v172_v23 }
 0x16b   : > { %v390_v20 = vpop.f32.mrb[3].mxu0  ;;  %v431_v21 = vpop.f32.mrb[3].mxu1 }
 0x16c   : > { %v182_v21 = vrot.slane %v169_v25, %v7896_v16 }
 0x16e   : > { %v7900_v27 = vadd.f32 %v426_v15, %v182_v21 }
 0x188   : > { %v662_v33 = vpop.f32.mrb[4].mxu0  ;;  %v703_v34 = vpop.f32.mrb[4].mxu1 }
 0x189   : > { %v710_v35 = vadd.f32 %v662_v33, %v7887_v30  ;;  %v664_v36 = vpop.f32.mrb[5].mxu0  ;;  %v705_v37 = vpop.f32.mrb[5].mxu1  ;;  %v712_v33 = vadd.f32 %v703_v34, %v7900_v27 }
 0x18a   : > { %v711_v38 = vadd.f32 %v664_v36, %v7889_v31  ;;  %v666_v39 = vpop.f32.mrb[6].mxu0  ;;  %v707_v40 = vpop.f32.mrb[6].mxu1  ;;  %v713_v20 = vadd.f32 %v705_v37, %v7894_v13 }
 0x18b   : > { %v714_v41 = vsub.f32 0.0, %v710_v35  ;;  %v667_v44 = vpop.f32.mrb[7].mxu0  ;;  %v708_v12 = vpop.f32.mrb[7].mxu1 }
 0x18c   : > { %v719_v14 = vsub.f32 0.0, %v711_v38  ;;  %v725_v22 = vsub.f32 0.0, %v713_v20  ;;  %v434_v38 = vld [vmem:[#allocation3] sm:$0x1] }
 0x18d   : > { %v715_v18 = vmul.f32 1.442695, %v714_v41 }
 0x18e   : > { %v720_v19 = vmul.f32 1.442695, %v719_v14  ;;  %v726_v28 = vmul.f32 1.442695, %v725_v22 }
 0x18f   : > { %7187 = vpow2.f32 %v715_v18 }
 0x190   : > { %7189 = vpow2.f32 %v720_v19 }
 0x191   : > { %7191 = vpow2.f32 %v726_v28 }
 0x192   : > { %7193 = vtanh.f32 %v712_v33 }
 0x199   : > { %v7188_v35 = vpop.eup %7187 }
 0x19a   : > { %v7190_v17 = vpop.eup %7189  ;;  %v717_v32 = vadd.f32 1.0, %v7188_v35 }
 0x19b   : > { %v722_v23 = vadd.f32 1.0, %v7190_v17  ;;  %v7192_v36 = vpop.eup %7191 }
 0x19c   : > { %7195 = vrcp.f32 %v717_v32  ;;  %v7194_v37 = vpop.eup %7193  ;;  %v728_v41 = vadd.f32 1.0, %v7192_v36 }
 0x19d   : > { %7197 = vrcp.f32 %v722_v23 }
 0x19e   : > { %7199 = vrcp.f32 %v728_v41 }
 0x1a6   : > { %v7196_v39 = vpop.eup %7195 }
 0x1a7   : > { %v7198_v40 = vpop.eup %7197  ;;  %v731_v25 = vmul.f32 %v7196_v39, %v7194_v37 }
 0x1a8   : > { %v730_v15 = vmul.f32 %v7198_v40, %v434_v38  ;;  %v7200_v34 = vpop.eup %7199 }
 0x1aa   : > { %v732_v44 = vadd.f32 %v731_v25, %v730_v15 }
 0x1ac   : > { %7201 = vtanh.f32 %v732_v44  ;;  %736 = vst [vmem:[#allocation3] sm:$0x1] %v732_v44 }
 0x1b6   : > { %v7202_v12 = vpop.eup %7201 }
 0x1b7   : > { %v734_v14 = vmul.f32 %v7202_v12, %v7200_v34 }
 0x1b9   : > { %735 = vst [vmem:[#allocation2] sm:$0x1] %v734_v14  ;;  %737 = vst [vmem:[#allocation4] sm:$0x1] %v734_v14 }
 0x1c0   : > { %v738_v18 = vld [vmem:[#allocation2] sm:$0x1] }
 0x1c1   : > { %v740_v19 = vpack.c.bf16 %v738_v18, %v738_v18 }
 0x1c3   : > { %966 = vmatmul.mubr.bf16.vlgmr.msra.gmra.mrb[8].mxu0 %v740_v19  ;;  %1007 = vmatmul.mubr.bf16.vlgmr.msra.gmra.mrb[8].mxu1 %v740_v19 }
 0x1c4   : > { %1254 = vmatpush1.bf16.msra.mxu0 %v7749_v45  ;;  %1295 = vmatpush1.bf16.msra.mxu1 %v7751_v46 }
 0x1c5   : > { %1255 = vmatprep.subr.bf16.mxu0 %v7755_v47  ;;  %1296 = vmatprep.subr.bf16.mxu1 %v7757_v48 }
 0x1c6   : > { %1285 = vmatprep.mubr.bf16.mxu0 %v7611_v10  ;;  %1326 = vmatprep.mubr.bf16.mxu1 %v7611_v10 }
 0x1c8   : > { %1256 = vmatpush1.bf16.msra.mxu0 %v7759_v49  ;;  %1297 = vmatpush1.bf16.msra.mxu1 %v7763_v50 }
 0x1c9   : > { %1257 = vmatprep.subr.bf16.mxu0 %v7767_v51  ;;  %1298 = vmatprep.subr.bf16.mxu1 %v7769_v52 }
 0x1cc   : > { %1258 = vmatpush1.bf16.msra.mxu0 %v7773_v53  ;;  %1299 = vmatpush1.bf16.msra.mxu1 %v7777_v54 }
 0x1cd   : > { %1259 = vmatprep.subr.bf16.mxu0 %v7781_v55  ;;  %1300 = vmatprep.subr.bf16.mxu1 %v7783_v56 }
 0x1d0   : > { %1260 = vmatpush1.bf16.msra.mxu0 %v7785_v57  ;;  %1301 = vmatpush1.bf16.msra.mxu1 %v7787_v58 }
 0x1d1   : > { %1261 = vmatprep.subr.bf16.mxu0 %v7789_v59  ;;  %1302 = vmatprep.subr.bf16.mxu1 %v7791_v60 }
 0x1d4   : > { %1262 = vmatpush1.bf16.msra.mxu0 %v7797_v61  ;;  %1303 = vmatpush1.bf16.msra.mxu1 %v7799_v62 }
 0x1d5   : > { %1263 = vmatprep.subr.bf16.mxu0 %v7801_v63  ;;  %1304 = vmatprep.subr.bf16.mxu1 %v7803_v0 }
 0x1d8   : > { %1264 = vmatpush1.bf16.msra.mxu0 %v7809_v1  ;;  %1305 = vmatpush1.bf16.msra.mxu1 %v7811_v2 }
 0x1d9   : > { %1265 = vmatprep.subr.bf16.mxu0 %v7813_v3  ;;  %1306 = vmatprep.subr.bf16.mxu1 %v7815_v4 }
 0x1dc   : > { %1266 = vmatpush1.bf16.msra.mxu0 %v7821_v5  ;;  %1307 = vmatpush1.bf16.msra.mxu1 %v7823_v6 }
 0x1dd   : > { %1267 = vmatprep.subr.bf16.mxu0 %v7825_v7  ;;  %1308 = vmatprep.subr.bf16.mxu1 %v7827_v8 }
 0x1e0   : > { %1268 = vmatpush1.bf16.msra.mxu0 %v7833_v9  ;;  %1309 = vmatpush1.bf16.msra.mxu1 %v7835_v11 }
 0x1e1   : > { %1573 = vmatprep.subr.bf16.mxu0 %v7745_v42  ;;  %1614 = vmatprep.subr.bf16.mxu1 %v7747_v43 }
 0x296   : > { %v967_v20 = vpop.f32.mrb[8].mxu0  ;;  %v1008_v21 = vpop.f32.mrb[8].mxu1 }
 0x297   : > { %v1019_v22 = vrot.slane %v967_v20, 7  ;;  %v969_v28 = vpop.f32.mrb[9].mxu0  ;;  %v1010_v33 = vpop.f32.mrb[9].mxu1  ;;  %v1021_v44 = vrot.slane %v1008_v21, 7 }
 0x298   : > { %v1020_v35 = vrot.slane %v969_v28, 7  ;;  %v971_v17 = vpop.f32.mrb[10].mxu0  ;;  %v1012_v32 = vpop.f32.mrb[10].mxu1  ;;  %v1022_v39 = vrot.slane %v1010_v33, 7 }
 0x299   : > { %v1027_v23 = vadd.f32 %v1019_v22, %v7887_v30  ;;  %v972_v36 = vpop.f32.mrb[11].mxu0  ;;  %v1013_v37 = vpop.f32.mrb[11].mxu1  ;;  %v1029_v12 = vadd.f32 %v1021_v44, %v7900_v27  ;;  %v739_v22 = vld [vmem:[#allocation3] sm:$0x1] }
 0x29a   : > { %v1028_v38 = vadd.f32 %v1020_v35, %v7889_v31  ;;  %v1030_v43 = vadd.f32 %v1022_v39, %v7894_v13  ;;  %v1048_v17 = vrot.slane %v739_v22, 7 }
 0x29b   : > { %v1031_v40 = vsub.f32 0.0, %v1027_v23 }
 0x29c   : > { %v1036_v25 = vsub.f32 0.0, %v1028_v38  ;;  %v1042_v15 = vsub.f32 0.0, %v1030_v43 }
 0x29d   : > { %v1032_v42 = vmul.f32 1.442695, %v1031_v40 }
 0x29e   : > { %v1037_v41 = vmul.f32 1.442695, %v1036_v25  ;;  %v1043_v34 = vmul.f32 1.442695, %v1042_v15 }
 0x29f   : > { %7203 = vpow2.f32 %v1032_v42 }
 0x2a0   : > { %7205 = vpow2.f32 %v1037_v41 }
 0x2a1   : > { %7207 = vpow2.f32 %v1043_v34 }
 0x2a2   : > { %7209 = vtanh.f32 %v1029_v12 }
 0x2a9   : > { %v7204_v14 = vpop.eup %7203 }
 0x2aa   : > { %v7206_v18 = vpop.eup %7205  ;;  %v1034_v19 = vadd.f32 1.0, %v7204_v14 }
 0x2ab   : > { %v1039_v20 = vadd.f32 1.0, %v7206_v18  ;;  %v7208_v28 = vpop.eup %7207 }
 0x2ac   : > { %7211 = vrcp.f32 %v1034_v19  ;;  %v7210_v33 = vpop.eup %7209  ;;  %v1045_v36 = vadd.f32 1.0, %v7208_v28  ;;  %v7979_v28 = vld [vmem:[#allocation10 + $0x4] ss:$16 sps:$4 sm:$0xff]  }
 0x2ad   : > { %7213 = vrcp.f32 %v1039_v20 }
 0x2ae   : > { %7215 = vrcp.f32 %v1045_v36  ;;  %v7995_v36 = vld [vmem:[#allocation10 + $0x20] ss:$16 sps:$4 sm:$0xff]  }
 0x2b6   : > { %v7212_v35 = vpop.eup %7211 }
 0x2b7   : > { %v7214_v32 = vpop.eup %7213  ;;  %v1051_v23 = vmul.f32 %v7212_v35, %v7210_v33  ;;  %v7981_v33 = vld [vmem:[#allocation10 + $0xc] ss:$16 sps:$4 sm:$0xff]   ;;  %v7983_v35 = vld [vmem:[#allocation10] ss:$16 sps:$4 sm:$0xff]  }
 0x2b8   : > { %v1050_v21 = vmul.f32 %v7214_v32, %v1048_v17  ;;  %v7216_v38 = vpop.eup %7215  ;;  %v7985_v17 = vld [vmem:[#allocation10 + $0x8] ss:$16 sps:$4 sm:$0xff]   ;;  %v7991_v32 = vld [vmem:[#allocation10 + $0x24] ss:$16 sps:$4 sm:$0xff]  }
 0x2ba   : > { %v1052_v37 = vadd.f32 %v1051_v23, %v1050_v21  ;;  %v7993_v23 = vld [vmem:[#allocation10 + $0x2c] ss:$16 sps:$4 sm:$0xff]   ;;  %v7997_v21 = vld [vmem:[#allocation10 + $0x28] ss:$16 sps:$4 sm:$0xff]  }
 0x2bc   : > { %7217 = vtanh.f32 %v1052_v37  ;;  %1056 = vst [vmem:[#allocation3 - $0x1] sm:$0x2] %v1052_v37  ;;  %v8003_v37 = vld [vmem:[#allocation10 + $0x44] ss:$16 sps:$4 sm:$0xff]  }
 0x2c6   : > { %v7218_v39 = vpop.eup %7217 }
 0x2c7   : > { %v1054_v40 = vmul.f32 %v7218_v39, %v7216_v38  ;;  %v8005_v38 = vld [vmem:[#allocation10 + $0x4c] ss:$16 sps:$4 sm:$0xff]   ;;  %v8007_v39 = vld [vmem:[#allocation10 + $0x40] ss:$16 sps:$4 sm:$0xff]  }
 0x2c9   : > { %1055 = vst [vmem:[#allocation2 - $0x1] sm:$0x2] %v1054_v40  ;;  %1057 = vst [vmem:[#allocation4] sm:$0x2] %v1054_v40  ;;  %v8009_v40 = vld [vmem:[#allocation10 + $0x48] ss:$16 sps:$4 sm:$0xff]  }
 0x2d0   : > { %v1058_v25 = vld [vmem:[#allocation2] sm:$0x1] }
 0x2d1   : > { %v1060_v42 = vpack.c.bf16 %v1058_v25, %v1058_v25  ;;  %v8015_v25 = vld [vmem:[#allocation10 + $0x64] ss:$16 sps:$4 sm:$0xff]  }
 0x2d3   : > { %1286 = vmatmul.mubr.bf16.vlgmr.msra.gmra.mrb[12].mxu0 %v1060_v42  ;;  %1327 = vmatmul.mubr.bf16.vlgmr.msra.gmra.mrb[12].mxu1 %v1060_v42  ;;  %v8017_v42 = vld [vmem:[#allocation10 + $0x6c] ss:$16 sps:$4 sm:$0xff]  }
 0x2d4   : > { %1574 = vmatpush1.bf16.msra.mxu0 %v7749_v45  ;;  %1615 = vmatpush1.bf16.msra.mxu1 %v7751_v46 }
 0x2d5   : > { %1575 = vmatprep.subr.bf16.mxu0 %v7755_v47  ;;  %1616 = vmatprep.subr.bf16.mxu1 %v7757_v48 }
 0x2d6   : > { %1605 = vmatprep.mubr.bf16.mxu0 %v7611_v10  ;;  %1646 = vmatprep.mubr.bf16.mxu1 %v7611_v10 }
 0x2d8   : > { %1576 = vmatpush1.bf16.msra.mxu0 %v7759_v49  ;;  %1617 = vmatpush1.bf16.msra.mxu1 %v7763_v50 }
 0x2d9   : > { %1577 = vmatprep.subr.bf16.mxu0 %v7767_v51  ;;  %1618 = vmatprep.subr.bf16.mxu1 %v7769_v52 }
 0x2dc   : > { %1578 = vmatpush1.bf16.msra.mxu0 %v7773_v53  ;;  %1619 = vmatpush1.bf16.msra.mxu1 %v7777_v54 }
 0x2dd   : > { %1579 = vmatprep.subr.bf16.mxu0 %v7781_v55  ;;  %1620 = vmatprep.subr.bf16.mxu1 %v7783_v56 }
 0x2e0   : > { %1580 = vmatpush1.bf16.msra.mxu0 %v7785_v57  ;;  %1621 = vmatpush1.bf16.msra.mxu1 %v7787_v58 }
 0x2e1   : > { %1581 = vmatprep.subr.bf16.mxu0 %v7789_v59  ;;  %1622 = vmatprep.subr.bf16.mxu1 %v7791_v60 }
 0x2e4   : > { %1582 = vmatpush1.bf16.msra.mxu0 %v7797_v61  ;;  %1623 = vmatpush1.bf16.msra.mxu1 %v7799_v62 }
 0x2e5   : > { %1583 = vmatprep.subr.bf16.mxu0 %v7801_v63  ;;  %1624 = vmatprep.subr.bf16.mxu1 %v7803_v0 }
 0x2e8   : > { %1584 = vmatpush1.bf16.msra.mxu0 %v7809_v1  ;;  %1625 = vmatpush1.bf16.msra.mxu1 %v7811_v2 }
 0x2e9   : > { %1585 = vmatprep.subr.bf16.mxu0 %v7813_v3  ;;  %1626 = vmatprep.subr.bf16.mxu1 %v7815_v4 }
 0x2ec   : > { %1586 = vmatpush1.bf16.msra.mxu0 %v7821_v5  ;;  %1627 = vmatpush1.bf16.msra.mxu1 %v7823_v6 }
 0x2ed   : > { %1587 = vmatprep.subr.bf16.mxu0 %v7825_v7  ;;  %1628 = vmatprep.subr.bf16.mxu1 %v7827_v8  ;;  %v1059_v7 = vld [vmem:[#allocation3] sm:$0x1] }
 0x2ee   : > { %v1368_v41 = vrot.slane %v1059_v7, 6 }
 0x2f0   : > { %1588 = vmatpush1.bf16.msra.mxu0 %v7833_v9  ;;  %1629 = vmatpush1.bf16.msra.mxu1 %v7835_v11 }
 0x2f1   : > { %1893 = vmatprep.subr.bf16.mxu0 %v7979_v28  ;;  %1934 = vmatprep.subr.bf16.mxu1 %v7981_v33 }
 0x3a6   : > { %v1287_v45 = vpop.f32.mrb[12].mxu0  ;;  %v1328_v46 = vpop.f32.mrb[12].mxu1 }
 0x3a7   : > { %v1339_v47 = vrot.slane %v1287_v45, 6  ;;  %v1289_v48 = vpop.f32.mrb[13].mxu0  ;;  %v1330_v49 = vpop.f32.mrb[13].mxu1  ;;  %v1341_v0 = vrot.slane %v1328_v46, 6  ;;  %v8019_v45 = vld [vmem:[#allocation10 + $0x60] ss:$16 sps:$4 sm:$0xff]  }
 0x3a8   : > { %v1340_v50 = vrot.slane %v1289_v48, 6  ;;  %v1291_v51 = vpop.f32.mrb[14].mxu0  ;;  %v1332_v52 = vpop.f32.mrb[14].mxu1  ;;  %v1342_v57 = vrot.slane %v1330_v49, 6  ;;  %v8021_v46 = vld [vmem:[#allocation10 + $0x68] ss:$16 sps:$4 sm:$0xff]  }
 0x3a9   : > { %v1347_v53 = vadd.f32 %v1339_v47, %v7887_v30  ;;  %v1292_v54 = vpop.f32.mrb[15].mxu0  ;;  %v1333_v55 = vpop.f32.mrb[15].mxu1  ;;  %v1349_v2 = vadd.f32 %v1341_v0, %v7900_v27  ;;  %v8027_v47 = vld [vmem:[#allocation10 + $0x84] ss:$16 sps:$4 sm:$0xff]   ;;  %v8029_v48 = vld [vmem:[#allocation10 + $0x8c] ss:$16 sps:$4 sm:$0xff]  }
 0x3aa   : > { %v1348_v56 = vadd.f32 %v1340_v50, %v7889_v31  ;;  %v1350_v62 = vadd.f32 %v1342_v57, %v7894_v13  ;;  %v8031_v49 = vld [vmem:[#allocation10 + $0x80] ss:$16 sps:$4 sm:$0xff]   ;;  %v8033_v50 = vld [vmem:[#allocation10 + $0x88] ss:$16 sps:$4 sm:$0xff]   ;;  %v8039_v51 = vld [vmem:[#allocation10 + $0xa4] ss:$16 sps:$4 sm:$0xff]  }
 0x3ab   : > { %v1351_v58 = vsub.f32 0.0, %v1347_v53  ;;  %v8041_v52 = vld [vmem:[#allocation10 + $0xac] ss:$16 sps:$4 sm:$0xff]   ;;  %v8043_v53 = vld [vmem:[#allocation10 + $0xa0] ss:$16 sps:$4 sm:$0xff]  }
 0x3ac   : > { %v1356_v59 = vsub.f32 0.0, %v1348_v56  ;;  %v1362_v63 = vsub.f32 0.0, %v1350_v62  ;;  %v8045_v54 = vld [vmem:[#allocation10 + $0xa8] ss:$16 sps:$4 sm:$0xff]   ;;  %v8051_v55 = vld [vmem:[#allocation10 + $0xc0] ss:$16 sps:$4 sm:$0xff]  }
 0x3ad   : > { %v1352_v60 = vmul.f32 1.442695, %v1351_v58  ;;  %v8053_v56 = vld [vmem:[#allocation10 + $0xc4] ss:$16 sps:$4 sm:$0xff]   ;;  %v8055_v57 = vld [vmem:[#allocation10 + $0xc8] ss:$16 sps:$4 sm:$0xff]  }
 0x3ae   : > { %v1357_v61 = vmul.f32 1.442695, %v1356_v59  ;;  %v1363_v1 = vmul.f32 1.442695, %v1362_v63  ;;  %v8057_v58 = vld [vmem:[#allocation10 + $0xcc] ss:$16 sps:$4 sm:$0xff]  }
 0x3af   : > { %7219 = vpow2.f32 %v1352_v60  ;;  %v8059_v59 = vld [vmem:[#allocation10 + $0xe4] ss:$16 sps:$4 sm:$0xff]   ;;  %v8062_v60 = vld [vmem:[#allocation10 + $0xec] ss:$16 sps:$4 sm:$0xff]   ;;  %v8069_v62 = vld [vmem:[#allocation10 + $0xe8] ss:$16 sps:$4 sm:$0xff]  }
 0x3b0   : > { %7221 = vpow2.f32 %v1357_v61  ;;  %v8067_v61 = vld [vmem:[#allocation10 + $0xe0] ss:$16 sps:$4 sm:$0xff]  }
 0x3b1   : > { %7223 = vpow2.f32 %v1363_v1 }
 0x3b2   : > { %7225 = vtanh.f32 %v1349_v2 }
 0x3b9   : > { %v7220_v3 = vpop.eup %7219 }
 0x3ba   : > { %v7222_v4 = vpop.eup %7221  ;;  %v1354_v5 = vadd.f32 1.0, %v7220_v3 }
 0x3bb   : > { %v1359_v6 = vadd.f32 1.0, %v7222_v4  ;;  %v7224_v8 = vpop.eup %7223 }
 0x3bc   : > { %7227 = vrcp.f32 %v1354_v5  ;;  %v7226_v9 = vpop.eup %7225  ;;  %v1365_v44 = vadd.f32 1.0, %v7224_v8 }
 0x3bd   : > { %7229 = vrcp.f32 %v1359_v6 }
 0x3be   : > { %7231 = vrcp.f32 %v1365_v44 }
 0x3c6   : > { %v7228_v11 = vpop.eup %7227 }
 0x3c7   : > { %v7230_v43 = vpop.eup %7229  ;;  %v1371_v15 = vmul.f32 %v7228_v11, %v7226_v9 }
 0x3c8   : > { %v1370_v34 = vmul.f32 %v7230_v43, %v1368_v41  ;;  %v7232_v14 = vpop.eup %7231 }
 0x3ca   : > { %v1372_v12 = vadd.f32 %v1371_v15, %v1370_v34 }
 0x3cc   : > { %7233 = vtanh.f32 %v1372_v12  ;;  %1376 = vst [vmem:[#allocation3 - $0x2] sm:$0x4] %v1372_v12 }
 0x3d6   : > { %v7234_v18 = vpop.eup %7233 }
 0x3d7   : > { %v1374_v19 = vmul.f32 %v7234_v18, %v7232_v14 }
 0x3d9   : > { %1375 = vst [vmem:[#allocation2 - $0x2] sm:$0x4] %v1374_v19  ;;  %1377 = vst [vmem:[#allocation4] sm:$0x4] %v1374_v19 }
 0x3e0   : > { %v1378_v20 = vld [vmem:[#allocation2] sm:$0x1] }
 0x3e1   : > { %v1380_v22 = vpack.c.bf16 %v1378_v20, %v1378_v20 }
 0x3e3   : > { %1606 = vmatmul.mubr.bf16.vlgmr.msra.gmra.mrb[16].mxu0 %v1380_v22  ;;  %1647 = vmatmul.mubr.bf16.vlgmr.msra.gmra.mrb[16].mxu1 %v1380_v22 }
 0x3e4   : > { %1925 = vmatprep.mubr.bf16.mxu0 %v7611_v10  ;;  %1966 = vmatprep.mubr.bf16.mxu1 %v7611_v10 }
 0x3e5   : > { %1894 = vmatpush1.bf16.msra.mxu0 %v7983_v35  ;;  %1935 = vmatpush1.bf16.msra.mxu1 %v7985_v17 }
 0x3e6   : > { %1895 = vmatprep.subr.bf16.mxu0 %v7991_v32  ;;  %1936 = vmatprep.subr.bf16.mxu1 %v7993_v23 }
 0x3e9   : > { %1896 = vmatpush1.bf16.msra.mxu0 %v7995_v36  ;;  %1937 = vmatpush1.bf16.msra.mxu1 %v7997_v21 }
 0x3ea   : > { %1897 = vmatprep.subr.bf16.mxu0 %v8003_v37  ;;  %1938 = vmatprep.subr.bf16.mxu1 %v8005_v38 }
 0x3ed   : > { %1898 = vmatpush1.bf16.msra.mxu0 %v8007_v39  ;;  %1939 = vmatpush1.bf16.msra.mxu1 %v8009_v40 }
 0x3ee   : > { %1899 = vmatprep.subr.bf16.mxu0 %v8015_v25  ;;  %1940 = vmatprep.subr.bf16.mxu1 %v8017_v42 }
 0x3f1   : > { %1900 = vmatpush1.bf16.msra.mxu0 %v8019_v45  ;;  %1941 = vmatpush1.bf16.msra.mxu1 %v8021_v46 }
 0x3f2   : > { %1901 = vmatprep.subr.bf16.mxu0 %v8027_v47  ;;  %1942 = vmatprep.subr.bf16.mxu1 %v8029_v48 }
 0x3f5   : > { %1902 = vmatpush1.bf16.msra.mxu0 %v8031_v49  ;;  %1943 = vmatpush1.bf16.msra.mxu1 %v8033_v50 }
 0x3f6   : > { %1903 = vmatprep.subr.bf16.mxu0 %v8039_v51  ;;  %1944 = vmatprep.subr.bf16.mxu1 %v8041_v52 }
 0x3f9   : > { %1904 = vmatpush1.bf16.msra.mxu0 %v8043_v53  ;;  %1945 = vmatpush1.bf16.msra.mxu1 %v8045_v54 }
 0x3fa   : > { %1905 = vmatprep.subr.bf16.mxu0 %v8053_v56  ;;  %1946 = vmatprep.subr.bf16.mxu1 %v8057_v58 }
 0x3fd   : > { %1906 = vmatpush1.bf16.msra.mxu0 %v8051_v55  ;;  %1947 = vmatpush1.bf16.msra.mxu1 %v8055_v57 }
 0x3fe   : > { %1907 = vmatprep.subr.bf16.mxu0 %v8059_v59  ;;  %1948 = vmatprep.subr.bf16.mxu1 %v8062_v60 }
 0x401   : > { %1908 = vmatpush1.bf16.msra.mxu0 %v8067_v61  ;;  %1949 = vmatpush1.bf16.msra.mxu1 %v8069_v62 }
 0x402   : > { %2213 = vmatprep.subr.bf16.mxu0 %v7979_v28  ;;  %2254 = vmatprep.subr.bf16.mxu1 %v7981_v33 }
 0x4b6   : > { %v1607_v63 = vpop.f32.mrb[16].mxu0  ;;  %v1648_v0 = vpop.f32.mrb[16].mxu1 }
 0x4b7   : > { %v1659_v1 = vrot.slane %v1607_v63, 5  ;;  %v1609_v2 = vpop.f32.mrb[17].mxu0  ;;  %v1650_v3 = vpop.f32.mrb[17].mxu1  ;;  %v1661_v18 = vrot.slane %v1648_v0, 5 }
 0x4b8   : > { %v1660_v4 = vrot.slane %v1609_v2, 5  ;;  %v1611_v5 = vpop.f32.mrb[18].mxu0  ;;  %v1652_v6 = vpop.f32.mrb[18].mxu1  ;;  %v1662_v41 = vrot.slane %v1650_v3, 5  ;;  %v1379_v3 = vld [vmem:[#allocation3] sm:$0x1] }
 0x4b9   : > { %v1667_v7 = vadd.f32 %v1659_v1, %v7887_v30  ;;  %v1612_v8 = vpop.f32.mrb[19].mxu0  ;;  %v1653_v9 = vpop.f32.mrb[19].mxu1  ;;  %v1669_v20 = vadd.f32 %v1661_v18, %v7900_v27 }
 0x4ba   : > { %v1668_v11 = vadd.f32 %v1660_v4, %v7889_v31  ;;  %v1670_v12 = vadd.f32 %v1662_v41, %v7894_v13 }
 0x4bb   : > { %v1671_v43 = vsub.f32 0.0, %v1667_v7  ;;  %v1688_v7 = vrot.slane %v1379_v3, 5 }
 0x4bc   : > { %v1676_v15 = vsub.f32 0.0, %v1668_v11  ;;  %v1682_v14 = vsub.f32 0.0, %v1670_v12 }
 0x4bd   : > { %v1672_v44 = vmul.f32 1.442695, %v1671_v43 }
 0x4be   : > { %v1677_v34 = vmul.f32 1.442695, %v1676_v15  ;;  %v1683_v19 = vmul.f32 1.442695, %v1682_v14 }
 0x4bf   : > { %7235 = vpow2.f32 %v1672_v44 }
 0x4c0   : > { %7237 = vpow2.f32 %v1677_v34 }
 0x4c1   : > { %7239 = vpow2.f32 %v1683_v19 }
 0x4c2   : > { %7241 = vtanh.f32 %v1669_v20 }
 0x4c9   : > { %v7236_v22 = vpop.eup %7235 }
 0x4ca   : > { %v7238_v63 = vpop.eup %7237  ;;  %v1674_v1 = vadd.f32 1.0, %v7236_v22 }
 0x4cb   : > { %v1679_v2 = vadd.f32 1.0, %v7238_v63  ;;  %v7240_v4 = vpop.eup %7239 }
 0x4cc   : > { %7243 = vrcp.f32 %v1674_v1  ;;  %v7242_v5 = vpop.eup %7241  ;;  %v1685_v11 = vadd.f32 1.0, %v7240_v4 }
 0x4cd   : > { %7245 = vrcp.f32 %v1679_v2 }
 0x4ce   : > { %7247 = vrcp.f32 %v1685_v11 }
 0x4d6   : > { %v7244_v6 = vpop.eup %7243 }
 0x4d7   : > { %v7246_v8 = vpop.eup %7245  ;;  %v1691_v9 = vmul.f32 %v7244_v6, %v7242_v5 }
 0x4d8   : > { %v1690_v0 = vmul.f32 %v7246_v8, %v1688_v7  ;;  %v7248_v43 = vpop.eup %7247 }
 0x4da   : > { %v1692_v41 = vadd.f32 %v1691_v9, %v1690_v0 }
 0x4dc   : > { %7249 = vtanh.f32 %v1692_v41  ;;  %1696 = vst [vmem:[#allocation3 - $0x3] sm:$0x8] %v1692_v41 }
 0x4e6   : > { %v7250_v15 = vpop.eup %7249 }
 0x4e7   : > { %v1694_v44 = vmul.f32 %v7250_v15, %v7248_v43 }
 0x4e9   : > { %1695 = vst [vmem:[#allocation2 - $0x3] sm:$0x8] %v1694_v44  ;;  %1697 = vst [vmem:[#allocation4] sm:$0x8] %v1694_v44 }
 0x4f0   : > { %v1698_v34 = vld [vmem:[#allocation2] sm:$0x1] }
 0x4f1   : > { %v1700_v12 = vpack.c.bf16 %v1698_v34, %v1698_v34 }
 0x4f3   : > { %1926 = vmatmul.mubr.bf16.vlgmr.msra.gmra.mrb[20].mxu0 %v1700_v12  ;;  %1967 = vmatmul.mubr.bf16.vlgmr.msra.gmra.mrb[20].mxu1 %v1700_v12 }
 0x4f4   : > { %2214 = vmatpush1.bf16.msra.mxu0 %v7983_v35  ;;  %2255 = vmatpush1.bf16.msra.mxu1 %v7985_v17 }
 0x4f5   : > { %2215 = vmatprep.subr.bf16.mxu0 %v7991_v32  ;;  %2256 = vmatprep.subr.bf16.mxu1 %v7993_v23 }
 0x4f6   : > { %2245 = vmatprep.mubr.bf16.mxu0 %v7611_v10  ;;  %2286 = vmatprep.mubr.bf16.mxu1 %v7611_v10 }
 0x4f8   : > { %2216 = vmatpush1.bf16.msra.mxu0 %v7995_v36  ;;  %2257 = vmatpush1.bf16.msra.mxu1 %v7997_v21 }
 0x4f9   : > { %2217 = vmatprep.subr.bf16.mxu0 %v8003_v37  ;;  %2258 = vmatprep.subr.bf16.mxu1 %v8005_v38 }
 0x4fc   : > { %2218 = vmatpush1.bf16.msra.mxu0 %v8007_v39  ;;  %2259 = vmatpush1.bf16.msra.mxu1 %v8009_v40 }
 0x4fd   : > { %2219 = vmatprep.subr.bf16.mxu0 %v8015_v25  ;;  %2260 = vmatprep.subr.bf16.mxu1 %v8017_v42 }
 0x500   : > { %2220 = vmatpush1.bf16.msra.mxu0 %v8019_v45  ;;  %2261 = vmatpush1.bf16.msra.mxu1 %v8021_v46 }
 0x501   : > { %2221 = vmatprep.subr.bf16.mxu0 %v8027_v47  ;;  %2262 = vmatprep.subr.bf16.mxu1 %v8029_v48 }
 0x504   : > { %2222 = vmatpush1.bf16.msra.mxu0 %v8031_v49  ;;  %2263 = vmatpush1.bf16.msra.mxu1 %v8033_v50 }
 0x505   : > { %2223 = vmatprep.subr.bf16.mxu0 %v8039_v51  ;;  %2264 = vmatprep.subr.bf16.mxu1 %v8041_v52 }
 0x508   : > { %2224 = vmatpush1.bf16.msra.mxu0 %v8043_v53  ;;  %2265 = vmatpush1.bf16.msra.mxu1 %v8045_v54 }
 0x509   : > { %2225 = vmatprep.subr.bf16.mxu0 %v8053_v56  ;;  %2266 = vmatprep.subr.bf16.mxu1 %v8057_v58 }
 0x50c   : > { %2226 = vmatpush1.bf16.msra.mxu0 %v8051_v55  ;;  %2267 = vmatpush1.bf16.msra.mxu1 %v8055_v57 }
 0x50d   : > { %2227 = vmatprep.subr.bf16.mxu0 %v8059_v59  ;;  %2268 = vmatprep.subr.bf16.mxu1 %v8062_v60 }
 0x510   : > { %2228 = vmatpush1.bf16.msra.mxu0 %v8067_v61  ;;  %2269 = vmatpush1.bf16.msra.mxu1 %v8069_v62 }
 0x511   : > { %2533 = vmatprep.subr.bf16.mxu0 %v7979_v28  ;;  %2574 = vmatprep.subr.bf16.mxu1 %v7981_v33 }
 0x5c6   : > { %v1927_v14 = vpop.f32.mrb[20].mxu0  ;;  %v1968_v18 = vpop.f32.mrb[20].mxu1 }
 0x5c7   : > { %v1979_v19 = vrot.slane %v1927_v14, 4  ;;  %v1929_v20 = vpop.f32.mrb[21].mxu0  ;;  %v1970_v22 = vpop.f32.mrb[21].mxu1  ;;  %v1981_v15 = vrot.slane %v1968_v18, 4 }
 0x5c8   : > { %v1980_v63 = vrot.slane %v1929_v20, 4  ;;  %v1931_v1 = vpop.f32.mrb[22].mxu0  ;;  %v1972_v2 = vpop.f32.mrb[22].mxu1  ;;  %v1982_v7 = vrot.slane %v1970_v22, 4  ;;  %v1699_v22 = vld [vmem:[#allocation3] sm:$0x1] }
 0x5c9   : > { %v1987_v3 = vadd.f32 %v1979_v19, %v7887_v30  ;;  %v1932_v4 = vpop.f32.mrb[23].mxu0  ;;  %v1973_v5 = vpop.f32.mrb[23].mxu1  ;;  %v1989_v34 = vadd.f32 %v1981_v15, %v7900_v27 }
 0x5ca   : > { %v1988_v6 = vadd.f32 %v1980_v63, %v7889_v31  ;;  %v1990_v41 = vadd.f32 %v1982_v7, %v7894_v13 }
 0x5cb   : > { %v1991_v8 = vsub.f32 0.0, %v1987_v3  ;;  %v2008_v3 = vrot.slane %v1699_v22, 4 }
 0x5cc   : > { %v1996_v9 = vsub.f32 0.0, %v1988_v6  ;;  %v2002_v43 = vsub.f32 0.0, %v1990_v41 }
 0x5cd   : > { %v1992_v11 = vmul.f32 1.442695, %v1991_v8 }
 0x5ce   : > { %v1997_v0 = vmul.f32 1.442695, %v1996_v9  ;;  %v2003_v44 = vmul.f32 1.442695, %v2002_v43 }
 0x5cf   : > { %7251 = vpow2.f32 %v1992_v11 }
 0x5d0   : > { %7253 = vpow2.f32 %v1997_v0 }
 0x5d1   : > { %7255 = vpow2.f32 %v2003_v44 }
 0x5d2   : > { %7257 = vtanh.f32 %v1989_v34 }
 0x5d9   : > { %v7252_v12 = vpop.eup %7251 }
 0x5da   : > { %v7254_v14 = vpop.eup %7253  ;;  %v1994_v19 = vadd.f32 1.0, %v7252_v12 }
 0x5db   : > { %v1999_v20 = vadd.f32 1.0, %v7254_v14  ;;  %v7256_v63 = vpop.eup %7255 }
 0x5dc   : > { %7259 = vrcp.f32 %v1994_v19  ;;  %v7258_v1 = vpop.eup %7257  ;;  %v2005_v6 = vadd.f32 1.0, %v7256_v63 }
 0x5dd   : > { %7261 = vrcp.f32 %v1999_v20 }
 0x5de   : > { %7263 = vrcp.f32 %v2005_v6 }
 0x5e6   : > { %v7260_v2 = vpop.eup %7259 }
 0x5e7   : > { %v7262_v4 = vpop.eup %7261  ;;  %v2011_v5 = vmul.f32 %v7260_v2, %v7258_v1 }
 0x5e8   : > { %v2010_v18 = vmul.f32 %v7262_v4, %v2008_v3  ;;  %v7264_v8 = vpop.eup %7263 }
 0x5ea   : > { %v2012_v7 = vadd.f32 %v2011_v5, %v2010_v18 }
 0x5ec   : > { %7265 = vtanh.f32 %v2012_v7  ;;  %2016 = vst [vmem:[#allocation3 - $0x4] sm:$0x10] %v2012_v7 }
 0x5f6   : > { %v7266_v9 = vpop.eup %7265 }
 0x5f7   : > { %v2014_v11 = vmul.f32 %v7266_v9, %v7264_v8 }
 0x5f9   : > { %2015 = vst [vmem:[#allocation2 - $0x4] sm:$0x10] %v2014_v11  ;;  %2017 = vst [vmem:[#allocation4] sm:$0x10] %v2014_v11 }
 0x600   : > { %v2018_v0 = vld [vmem:[#allocation2] sm:$0x1] }
 0x601   : > { %v2020_v41 = vpack.c.bf16 %v2018_v0, %v2018_v0 }
 0x603   : > { %2246 = vmatmul.mubr.bf16.vlgmr.msra.gmra.mrb[24].mxu0 %v2020_v41  ;;  %2287 = vmatmul.mubr.bf16.vlgmr.msra.gmra.mrb[24].mxu1 %v2020_v41 }
 0x604   : > { %2534 = vmatpush1.bf16.msra.mxu0 %v7983_v35  ;;  %2575 = vmatpush1.bf16.msra.mxu1 %v7985_v17 }
 0x605   : > { %2535 = vmatprep.subr.bf16.mxu0 %v7991_v32  ;;  %2576 = vmatprep.subr.bf16.mxu1 %v7993_v23 }
 0x606   : > { %2565 = vmatprep.mubr.bf16.mxu0 %v7611_v10  ;;  %2606 = vmatprep.mubr.bf16.mxu1 %v7611_v10 }
 0x608   : > { %2536 = vmatpush1.bf16.msra.mxu0 %v7995_v36  ;;  %2577 = vmatpush1.bf16.msra.mxu1 %v7997_v21 }
 0x609   : > { %2537 = vmatprep.subr.bf16.mxu0 %v8003_v37  ;;  %2578 = vmatprep.subr.bf16.mxu1 %v8005_v38 }
 0x60c   : > { %2538 = vmatpush1.bf16.msra.mxu0 %v8007_v39  ;;  %2579 = vmatpush1.bf16.msra.mxu1 %v8009_v40 }
 0x60d   : > { %2539 = vmatprep.subr.bf16.mxu0 %v8015_v25  ;;  %2580 = vmatprep.subr.bf16.mxu1 %v8017_v42 }
 0x610   : > { %2540 = vmatpush1.bf16.msra.mxu0 %v8019_v45  ;;  %2581 = vmatpush1.bf16.msra.mxu1 %v8021_v46 }
 0x611   : > { %2541 = vmatprep.subr.bf16.mxu0 %v8027_v47  ;;  %2582 = vmatprep.subr.bf16.mxu1 %v8029_v48 }
 0x614   : > { %2542 = vmatpush1.bf16.msra.mxu0 %v8031_v49  ;;  %2583 = vmatpush1.bf16.msra.mxu1 %v8033_v50 }
 0x615   : > { %2543 = vmatprep.subr.bf16.mxu0 %v8039_v51  ;;  %2584 = vmatprep.subr.bf16.mxu1 %v8041_v52 }
 0x618   : > { %2544 = vmatpush1.bf16.msra.mxu0 %v8043_v53  ;;  %2585 = vmatpush1.bf16.msra.mxu1 %v8045_v54 }
 0x619   : > { %2545 = vmatprep.subr.bf16.mxu0 %v8053_v56  ;;  %2586 = vmatprep.subr.bf16.mxu1 %v8057_v58 }
 0x61c   : > { %2546 = vmatpush1.bf16.msra.mxu0 %v8051_v55  ;;  %2587 = vmatpush1.bf16.msra.mxu1 %v8055_v57 }
 0x61d   : > { %2547 = vmatprep.subr.bf16.mxu0 %v8059_v59  ;;  %2588 = vmatprep.subr.bf16.mxu1 %v8062_v60 }
 0x620   : > { %2548 = vmatpush1.bf16.msra.mxu0 %v8067_v61  ;;  %2589 = vmatpush1.bf16.msra.mxu1 %v8069_v62 }
 0x621   : > { %2853 = vmatprep.subr.bf16.mxu0 %v7979_v28  ;;  %2894 = vmatprep.subr.bf16.mxu1 %v7981_v33 }
 0x6d6   : > { %v2247_v43 = vpop.f32.mrb[24].mxu0  ;;  %v2288_v15 = vpop.f32.mrb[24].mxu1 }
 0x6d7   : > { %v2299_v44 = vrot.slane %v2247_v43, 3  ;;  %v2249_v34 = vpop.f32.mrb[25].mxu0  ;;  %v2290_v12 = vpop.f32.mrb[25].mxu1  ;;  %v2301_v7 = vrot.slane %v2288_v15, 3 }
 0x6d8   : > { %v2300_v14 = vrot.slane %v2249_v34, 3  ;;  %v2251_v19 = vpop.f32.mrb[26].mxu0  ;;  %v2292_v20 = vpop.f32.mrb[26].mxu1  ;;  %v2302_v3 = vrot.slane %v2290_v12, 3 }
 0x6d9   : > { %v2307_v22 = vadd.f32 %v2299_v44, %v7887_v30  ;;  %v2252_v63 = vpop.f32.mrb[27].mxu0  ;;  %v2293_v1 = vpop.f32.mrb[27].mxu1  ;;  %v2309_v9 = vadd.f32 %v2301_v7, %v7900_v27  ;;  %v2019_v44 = vld [vmem:[#allocation3] sm:$0x1] }
 0x6da   : > { %v2308_v2 = vadd.f32 %v2300_v14, %v7889_v31  ;;  %v2310_v33 = vadd.f32 %v2302_v3, %v7894_v13  ;;  %v2328_v19 = vrot.slane %v2019_v44, 3 }
 0x6db   : > { %v2311_v4 = vsub.f32 0.0, %v2307_v22 }
 0x6dc   : > { %v2316_v5 = vsub.f32 0.0, %v2308_v2  ;;  %v2322_v18 = vsub.f32 0.0, %v2310_v33 }
 0x6dd   : > { %v2312_v28 = vmul.f32 1.442695, %v2311_v4 }
 0x6de   : > { %v2317_v6 = vmul.f32 1.442695, %v2316_v5  ;;  %v2323_v8 = vmul.f32 1.442695, %v2322_v18 }
 0x6df   : > { %7267 = vpow2.f32 %v2312_v28 }
 0x6e0   : > { %7269 = vpow2.f32 %v2317_v6 }
 0x6e1   : > { %7271 = vpow2.f32 %v2323_v8 }
 0x6e2   : > { %7273 = vtanh.f32 %v2309_v9 }
 0x6e9   : > { %v7268_v11 = vpop.eup %7267 }
 0x6ea   : > { %v7270_v0 = vpop.eup %7269  ;;  %v2314_v41 = vadd.f32 1.0, %v7268_v11 }
 0x6eb   : > { %v2319_v43 = vadd.f32 1.0, %v7270_v0  ;;  %v7272_v34 = vpop.eup %7271 }
 0x6ec   : > { %7275 = vrcp.f32 %v2314_v41  ;;  %v7274_v12 = vpop.eup %7273  ;;  %v2325_v63 = vadd.f32 1.0, %v7272_v34  ;;  %v6901_v34 = vld [vmem:[#allocation8 + $0x104] ss:$16 sps:$4 sm:$0xff]  }
 0x6ed   : > { %7277 = vrcp.f32 %v2319_v43 }
 0x6ee   : > { %7279 = vrcp.f32 %v2325_v63  ;;  %v6905_v63 = vld [vmem:[#allocation8 + $0x120] ss:$16 sps:$4 sm:$0xff]  }
 0x6f6   : > { %v7276_v14 = vpop.eup %7275 }
 0x6f7   : > { %v7278_v20 = vpop.eup %7277  ;;  %v2331_v22 = vmul.f32 %v7276_v14, %v7274_v12  ;;  %v6904_v12 = vld [vmem:[#allocation8 + $0x10c] ss:$16 sps:$4 sm:$0xff]   ;;  %v6899_v14 = vld [vmem:[#allocation8 + $0x100] ss:$16 sps:$4 sm:$0xff]  }
 0x6f8   : > { %v2330_v15 = vmul.f32 %v7278_v20, %v2328_v19  ;;  %v7280_v2 = vpop.eup %7279  ;;  %v6902_v19 = vld [vmem:[#allocation8 + $0x108] ss:$16 sps:$4 sm:$0xff]   ;;  %v6907_v20 = vld [vmem:[#allocation8 + $0x124] ss:$16 sps:$4 sm:$0xff]  }
 0x6fa   : > { %v2332_v1 = vadd.f32 %v2331_v22, %v2330_v15  ;;  %v6910_v22 = vld [vmem:[#allocation8 + $0x12c] ss:$16 sps:$4 sm:$0xff]   ;;  %v6908_v15 = vld [vmem:[#allocation8 + $0x128] ss:$16 sps:$4 sm:$0xff]  }
 0x6fc   : > { %7281 = vtanh.f32 %v2332_v1  ;;  %2336 = vst [vmem:[#allocation3 - $0x5] sm:$0x20] %v2332_v1  ;;  %v6913_v1 = vld [vmem:[#allocation8 + $0x144] ss:$16 sps:$4 sm:$0xff]  }
 0x706   : > { %v7282_v3 = vpop.eup %7281 }
 0x707   : > { %v2334_v4 = vmul.f32 %v7282_v3, %v7280_v2  ;;  %v6916_v2 = vld [vmem:[#allocation8 + $0x14c] ss:$16 sps:$4 sm:$0xff]   ;;  %v6911_v3 = vld [vmem:[#allocation8 + $0x140] ss:$16 sps:$4 sm:$0xff]  }
 0x709   : > { %2337 = vst [vmem:[#allocation4] sm:$0x20] %v2334_v4  ;;  %2335 = vst [vmem:[#allocation2 - $0x5] sm:$0x20] %v2334_v4  ;;  %v6914_v4 = vld [vmem:[#allocation8 + $0x148] ss:$16 sps:$4 sm:$0xff]  }
 0x710   : > { %v2338_v5 = vld [vmem:[#allocation2] sm:$0x1] }
 0x711   : > { %v2340_v28 = vpack.c.bf16 %v2338_v5, %v2338_v5  ;;  %v6919_v5 = vld [vmem:[#allocation8 + $0x164] ss:$16 sps:$4 sm:$0xff]  }
 0x713   : > { %2566 = vmatmul.mubr.bf16.vlgmr.msra.gmra.mrb[28].mxu0 %v2340_v28  ;;  %2607 = vmatmul.mubr.bf16.vlgmr.msra.gmra.mrb[28].mxu1 %v2340_v28  ;;  %v6922_v28 = vld [vmem:[#allocation8 + $0x16c] ss:$16 sps:$4 sm:$0xff]  }
 0x714   : > { %2854 = vmatpush1.bf16.msra.mxu0 %v7983_v35  ;;  %2895 = vmatpush1.bf16.msra.mxu1 %v7985_v17 }
 0x715   : > { %2855 = vmatprep.subr.bf16.mxu0 %v7991_v32  ;;  %2896 = vmatprep.subr.bf16.mxu1 %v7993_v23 }
 0x716   : > { %2885 = vmatprep.mubr.bf16.mxu0 %v7611_v10  ;;  %2926 = vmatprep.mubr.bf16.mxu1 %v7611_v10 }
 0x718   : > { %2856 = vmatpush1.bf16.msra.mxu0 %v7995_v36  ;;  %2897 = vmatpush1.bf16.msra.mxu1 %v7997_v21 }
 0x719   : > { %2857 = vmatprep.subr.bf16.mxu0 %v8003_v37  ;;  %2898 = vmatprep.subr.bf16.mxu1 %v8005_v38 }
 0x71c   : > { %2858 = vmatpush1.bf16.msra.mxu0 %v8007_v39  ;;  %2899 = vmatpush1.bf16.msra.mxu1 %v8009_v40 }
 0x71d   : > { %2859 = vmatprep.subr.bf16.mxu0 %v8015_v25  ;;  %2900 = vmatprep.subr.bf16.mxu1 %v8017_v42 }
 0x720   : > { %2860 = vmatpush1.bf16.msra.mxu0 %v8019_v45  ;;  %2901 = vmatpush1.bf16.msra.mxu1 %v8021_v46 }
 0x721   : > { %2861 = vmatprep.subr.bf16.mxu0 %v8027_v47  ;;  %2902 = vmatprep.subr.bf16.mxu1 %v8029_v48 }
 0x724   : > { %2862 = vmatpush1.bf16.msra.mxu0 %v8031_v49  ;;  %2903 = vmatpush1.bf16.msra.mxu1 %v8033_v50 }
 0x725   : > { %2863 = vmatprep.subr.bf16.mxu0 %v8039_v51  ;;  %2904 = vmatprep.subr.bf16.mxu1 %v8041_v52 }
 0x728   : > { %2864 = vmatpush1.bf16.msra.mxu0 %v8043_v53  ;;  %2905 = vmatpush1.bf16.msra.mxu1 %v8045_v54 }
 0x729   : > { %2865 = vmatprep.subr.bf16.mxu0 %v8053_v56  ;;  %2906 = vmatprep.subr.bf16.mxu1 %v8057_v58 }
 0x72c   : > { %2866 = vmatpush1.bf16.msra.mxu0 %v8051_v55  ;;  %2907 = vmatpush1.bf16.msra.mxu1 %v8055_v57 }
 0x72d   : > { %2867 = vmatprep.subr.bf16.mxu0 %v8059_v59  ;;  %2908 = vmatprep.subr.bf16.mxu1 %v8062_v60  ;;  %v2339_v59 = vld [vmem:[#allocation3] sm:$0x1] }
 0x72e   : > { %v2648_v6 = vrot.slane %v2339_v59, 2 }
 0x730   : > { %2868 = vmatpush1.bf16.msra.mxu0 %v8067_v61  ;;  %2909 = vmatpush1.bf16.msra.mxu1 %v8069_v62 }
 0x731   : > { %3196 = vmatprep.subr.bf16.mxu0 %v6901_v34  ;;  %3237 = vmatprep.subr.bf16.mxu1 %v6904_v12 }
 0x7e6   : > { %v2567_v35 = vpop.f32.mrb[28].mxu0  ;;  %v2608_v17 = vpop.f32.mrb[28].mxu1 }
 0x7e7   : > { %v2619_v32 = vrot.slane %v2567_v35, 2  ;;  %v2569_v23 = vpop.f32.mrb[29].mxu0  ;;  %v2610_v36 = vpop.f32.mrb[29].mxu1  ;;  %v2621_v52 = vrot.slane %v2608_v17, 2  ;;  %v6917_v35 = vld [vmem:[#allocation8 + $0x160] ss:$16 sps:$4 sm:$0xff]  }
 0x7e8   : > { %v2620_v21 = vrot.slane %v2569_v23, 2  ;;  %v2571_v37 = vpop.f32.mrb[30].mxu0  ;;  %v2612_v38 = vpop.f32.mrb[30].mxu1  ;;  %v2622_v45 = vrot.slane %v2610_v36, 2  ;;  %v6920_v17 = vld [vmem:[#allocation8 + $0x168] ss:$16 sps:$4 sm:$0xff]  }
 0x7e9   : > { %v2627_v39 = vadd.f32 %v2619_v32, %v7887_v30  ;;  %v2572_v40 = vpop.f32.mrb[31].mxu0  ;;  %v2613_v25 = vpop.f32.mrb[31].mxu1  ;;  %v2629_v54 = vadd.f32 %v2621_v52, %v7900_v27  ;;  %v6925_v32 = vld [vmem:[#allocation8 + $0x184] ss:$16 sps:$4 sm:$0xff]   ;;  %v6928_v23 = vld [vmem:[#allocation8 + $0x18c] ss:$16 sps:$4 sm:$0xff]  }
 0x7ea   : > { %v2628_v42 = vadd.f32 %v2620_v21, %v7889_v31  ;;  %v2630_v50 = vadd.f32 %v2622_v45, %v7894_v13  ;;  %v6923_v36 = vld [vmem:[#allocation8 + $0x180] ss:$16 sps:$4 sm:$0xff]   ;;  %v6926_v21 = vld [vmem:[#allocation8 + $0x188] ss:$16 sps:$4 sm:$0xff]   ;;  %v6931_v37 = vld [vmem:[#allocation8 + $0x1a4] ss:$16 sps:$4 sm:$0xff]  }
 0x7eb   : > { %v2631_v46 = vsub.f32 0.0, %v2627_v39  ;;  %v6934_v38 = vld [vmem:[#allocation8 + $0x1ac] ss:$16 sps:$4 sm:$0xff]   ;;  %v6929_v39 = vld [vmem:[#allocation8 + $0x1a0] ss:$16 sps:$4 sm:$0xff]  }
 0x7ec   : > { %v2636_v47 = vsub.f32 0.0, %v2628_v42  ;;  %v2642_v51 = vsub.f32 0.0, %v2630_v50  ;;  %v6932_v40 = vld [vmem:[#allocation8 + $0x1a8] ss:$16 sps:$4 sm:$0xff]   ;;  %v6935_v25 = vld [vmem:[#allocation8 + $0x1c0] ss:$16 sps:$4 sm:$0xff]  }
 0x7ed   : > { %v2632_v48 = vmul.f32 1.442695, %v2631_v46  ;;  %v6937_v42 = vld [vmem:[#allocation8 + $0x1c4] ss:$16 sps:$4 sm:$0xff]   ;;  %v6938_v45 = vld [vmem:[#allocation8 + $0x1c8] ss:$16 sps:$4 sm:$0xff]  }
 0x7ee   : > { %v2637_v49 = vmul.f32 1.442695, %v2636_v47  ;;  %v2643_v53 = vmul.f32 1.442695, %v2642_v51  ;;  %v6940_v46 = vld [vmem:[#allocation8 + $0x1cc] ss:$16 sps:$4 sm:$0xff]  }
 0x7ef   : > { %7283 = vpow2.f32 %v2632_v48  ;;  %v6943_v47 = vld [vmem:[#allocation8 + $0x1e4] ss:$16 sps:$4 sm:$0xff]   ;;  %v6946_v48 = vld [vmem:[#allocation8 + $0x1ec] ss:$16 sps:$4 sm:$0xff]   ;;  %v6944_v50 = vld [vmem:[#allocation8 + $0x1e8] ss:$16 sps:$4 sm:$0xff]  }
 0x7f0   : > { %7285 = vpow2.f32 %v2637_v49  ;;  %v6941_v49 = vld [vmem:[#allocation8 + $0x1e0] ss:$16 sps:$4 sm:$0xff]   ;;  %v8195_v51 = vld [vmem:[#allocation10 + $0x104] ss:$16 sps:$4 sm:$0xff]   ;;  %v8197_v52 = vld [vmem:[#allocation10 + $0x10c] ss:$16 sps:$4 sm:$0xff]  }
 0x7f1   : > { %7287 = vpow2.f32 %v2643_v53 }
 0x7f2   : > { %7289 = vtanh.f32 %v2629_v54 }
 0x7f9   : > { %v7284_v55 = vpop.eup %7283 }
 0x7fa   : > { %v7286_v56 = vpop.eup %7285  ;;  %v2634_v57 = vadd.f32 1.0, %v7284_v55 }
 0x7fb   : > { %v2639_v58 = vadd.f32 1.0, %v7286_v56  ;;  %v7288_v60 = vpop.eup %7287 }
 0x7fc   : > { %7291 = vrcp.f32 %v2634_v57  ;;  %v7290_v61 = vpop.eup %7289  ;;  %v2645_v7 = vadd.f32 1.0, %v7288_v60 }
 0x7fd   : > { %7293 = vrcp.f32 %v2639_v58 }
 0x7fe   : > { %7295 = vrcp.f32 %v2645_v7 }
 0x806   : > { %v7292_v62 = vpop.eup %7291 }
 0x807   : > { %v7294_v33 = vpop.eup %7293  ;;  %v2651_v18 = vmul.f32 %v7292_v62, %v7290_v61 }
 0x808   : > { %v2650_v8 = vmul.f32 %v7294_v33, %v2648_v6  ;;  %v7296_v11 = vpop.eup %7295 }
 0x80a   : > { %v2652_v9 = vadd.f32 %v2651_v18, %v2650_v8 }
 0x80c   : > { %7297 = vtanh.f32 %v2652_v9  ;;  %2656 = vst [vmem:[#allocation3 - $0x6] sm:$0x40] %v2652_v9 }
 0x816   : > { %v7298_v0 = vpop.eup %7297 }
 0x817   : > { %v2654_v41 = vmul.f32 %v7298_v0, %v7296_v11 }
 0x819   : > { %2657 = vst [vmem:[#allocation4] sm:$0x40] %v2654_v41  ;;  %2655 = vst [vmem:[#allocation2 - $0x6] sm:$0x40] %v2654_v41 }
 0x820   : > { %v2658_v43 = vld [vmem:[#allocation2] sm:$0x1] }
 0x821   : > { %v2660_v44 = vpack.c.bf16 %v2658_v43, %v2658_v43 }
 0x823   : > { %2886 = vmatmul.mubr.bf16.vlgmr.msra.gmra.mrb[32].mxu0 %v2660_v44  ;;  %2927 = vmatmul.mubr.bf16.vlgmr.msra.gmra.mrb[32].mxu1 %v2660_v44 }
 0x824   : > { %3228 = vmatprep.mubr.bf16.mxu0 %v7611_v10  ;;  %3269 = vmatprep.mubr.bf16.mxu1 %v7611_v10 }
 0x825   : > { %3197 = vmatpush1.bf16.msra.mxu0 %v6899_v14  ;;  %3238 = vmatpush1.bf16.msra.mxu1 %v6902_v19  ;;  %v2659_v19 = vld [vmem:[#allocation3] sm:$0x1] }
 0x826   : > { %3198 = vmatprep.subr.bf16.mxu0 %v6907_v20  ;;  %3239 = vmatprep.subr.bf16.mxu1 %v6910_v22 }
 0x829   : > { %3199 = vmatpush1.bf16.msra.mxu0 %v6905_v63  ;;  %3240 = vmatpush1.bf16.msra.mxu1 %v6908_v15 }
 0x82a   : > { %3200 = vmatprep.subr.bf16.mxu0 %v6913_v1  ;;  %3241 = vmatprep.subr.bf16.mxu1 %v6916_v2 }
 0x82d   : > { %3201 = vmatpush1.bf16.msra.mxu0 %v6911_v3  ;;  %3242 = vmatpush1.bf16.msra.mxu1 %v6914_v4 }
 0x82e   : > { %3202 = vmatprep.subr.bf16.mxu0 %v6919_v5  ;;  %3243 = vmatprep.subr.bf16.mxu1 %v6922_v28 }
 0x831   : > { %3203 = vmatpush1.bf16.msra.mxu0 %v6917_v35  ;;  %3244 = vmatpush1.bf16.msra.mxu1 %v6920_v17  ;;  %v8205_v35 = vld [vmem:[#allocation10 + $0x100] ss:$16 sps:$4 sm:$0xff]   ;;  %v8207_v17 = vld [vmem:[#allocation10 + $0x108] ss:$16 sps:$4 sm:$0xff]  }
 0x832   : > { %3204 = vmatprep.subr.bf16.mxu0 %v6925_v32  ;;  %3245 = vmatprep.subr.bf16.mxu1 %v6928_v23 }
 0x835   : > { %3205 = vmatpush1.bf16.msra.mxu0 %v6923_v36  ;;  %3246 = vmatpush1.bf16.msra.mxu1 %v6926_v21  ;;  %v8209_v36 = vld [vmem:[#allocation10 + $0x124] ss:$16 sps:$4 sm:$0xff]   ;;  %v8211_v21 = vld [vmem:[#allocation10 + $0x12c] ss:$16 sps:$4 sm:$0xff]  }
 0x836   : > { %3206 = vmatprep.subr.bf16.mxu0 %v6931_v37  ;;  %3247 = vmatprep.subr.bf16.mxu1 %v6934_v38  ;;  %v8215_v37 = vld [vmem:[#allocation10 + $0x120] ss:$16 sps:$4 sm:$0xff]   ;;  %v8217_v38 = vld [vmem:[#allocation10 + $0x128] ss:$16 sps:$4 sm:$0xff]  }
 0x839   : > { %3207 = vmatpush1.bf16.msra.mxu0 %v6929_v39  ;;  %3248 = vmatpush1.bf16.msra.mxu1 %v6932_v40  ;;  %v8221_v39 = vld [vmem:[#allocation10 + $0x144] ss:$16 sps:$4 sm:$0xff]   ;;  %v8223_v40 = vld [vmem:[#allocation10 + $0x14c] ss:$16 sps:$4 sm:$0xff]  }
 0x83a   : > { %3208 = vmatprep.subr.bf16.mxu0 %v6937_v42  ;;  %3249 = vmatprep.subr.bf16.mxu1 %v6940_v46  ;;  %v8231_v42 = vld [vmem:[#allocation10 + $0x148] ss:$16 sps:$4 sm:$0xff]   ;;  %v8237_v46 = vld [vmem:[#allocation10 + $0x16c] ss:$16 sps:$4 sm:$0xff]  }
 0x83d   : > { %3209 = vmatpush1.bf16.msra.mxu0 %v6935_v25  ;;  %3250 = vmatpush1.bf16.msra.mxu1 %v6938_v45  ;;  %v8229_v25 = vld [vmem:[#allocation10 + $0x140] ss:$16 sps:$4 sm:$0xff]   ;;  %v8235_v45 = vld [vmem:[#allocation10 + $0x164] ss:$16 sps:$4 sm:$0xff]  }
 0x83e   : > { %3210 = vmatprep.subr.bf16.mxu0 %v6943_v47  ;;  %3251 = vmatprep.subr.bf16.mxu1 %v6946_v48  ;;  %v8241_v47 = vld [vmem:[#allocation10 + $0x160] ss:$16 sps:$4 sm:$0xff]   ;;  %v8243_v48 = vld [vmem:[#allocation10 + $0x168] ss:$16 sps:$4 sm:$0xff]  }
 0x841   : > { %3211 = vmatpush1.bf16.msra.mxu0 %v6941_v49  ;;  %3252 = vmatpush1.bf16.msra.mxu1 %v6944_v50  ;;  %v8247_v49 = vld [vmem:[#allocation10 + $0x184] ss:$16 sps:$4 sm:$0xff]   ;;  %v8249_v50 = vld [vmem:[#allocation10 + $0x18c] ss:$16 sps:$4 sm:$0xff]  }
 0x842   : > { %3476 = vmatprep.subr.bf16.mxu0 %v8195_v51  ;;  %3517 = vmatprep.subr.bf16.mxu1 %v8197_v52 }
 0x8f6   : > { %v2887_v53 = vpop.f32.mrb[32].mxu0  ;;  %v2928_v54 = vpop.f32.mrb[32].mxu1 }
 0x8f7   : > { %v2939_v55 = vrot.slane %v2887_v53, 1  ;;  %v2889_v56 = vpop.f32.mrb[33].mxu0  ;;  %v2930_v57 = vpop.f32.mrb[33].mxu1  ;;  %v2941_v43 = vrot.slane %v2928_v54, 1  ;;  %v8253_v53 = vld [vmem:[#allocation10 + $0x180] ss:$16 sps:$4 sm:$0xff]  }
 0x8f8   : > { %v2940_v58 = vrot.slane %v2889_v56, 1  ;;  %v2891_v59 = vpop.f32.mrb[34].mxu0  ;;  %v2932_v60 = vpop.f32.mrb[34].mxu1  ;;  %v2942_v18 = vrot.slane %v2930_v57, 1  ;;  %v8255_v54 = vld [vmem:[#allocation10 + $0x188] ss:$16 sps:$4 sm:$0xff]  }
 0x8f9   : > { %v2947_v61 = vadd.f32 %v2939_v55, %v7887_v30  ;;  %v2892_v62 = vpop.f32.mrb[35].mxu0  ;;  %v2933_v6 = vpop.f32.mrb[35].mxu1  ;;  %v2949_v34 = vadd.f32 %v2941_v43, %v7900_v27  ;;  %v8259_v55 = vld [vmem:[#allocation10 + $0x1a4] ss:$16 sps:$4 sm:$0xff]   ;;  %v8261_v56 = vld [vmem:[#allocation10 + $0x1ac] ss:$16 sps:$4 sm:$0xff]  }
 0x8fa   : > { %v2948_v33 = vadd.f32 %v2940_v58, %v7889_v31  ;;  %v2950_v0 = vadd.f32 %v2942_v18, %v7894_v13  ;;  %v2968_v13 = vrot.slane %v2659_v19, 1  ;;  %v8265_v57 = vld [vmem:[#allocation10 + $0x1a0] ss:$16 sps:$4 sm:$0xff]   ;;  %v8267_v58 = vld [vmem:[#allocation10 + $0x1a8] ss:$16 sps:$4 sm:$0xff]  }
 0x8fb   : > { %v2951_v7 = vsub.f32 0.0, %v2947_v61  ;;  %v8271_v59 = vld [vmem:[#allocation10 + $0x1c4] ss:$16 sps:$4 sm:$0xff]   ;;  %v8273_v60 = vld [vmem:[#allocation10 + $0x1cc] ss:$16 sps:$4 sm:$0xff]  }
 0x8fc   : > { %v2956_v8 = vsub.f32 0.0, %v2948_v33  ;;  %v2962_v41 = vsub.f32 0.0, %v2950_v0  ;;  %v8277_v61 = vld [vmem:[#allocation10 + $0x1c0] ss:$16 sps:$4 sm:$0xff]   ;;  %v8279_v62 = vld [vmem:[#allocation10 + $0x1c8] ss:$16 sps:$4 sm:$0xff]  }
 0x8fd   : > { %v2952_v9 = vmul.f32 1.442695, %v2951_v7  ;;  %v8283_v6 = vld [vmem:[#allocation10 + $0x1e4] ss:$16 sps:$4 sm:$0xff]   ;;  %v8285_v33 = vld [vmem:[#allocation10 + $0x1ec] ss:$16 sps:$4 sm:$0xff]  }
 0x8fe   : > { %v2957_v11 = vmul.f32 1.442695, %v2956_v8  ;;  %v2963_v44 = vmul.f32 1.442695, %v2962_v41  ;;  %v8289_v18 = vld [vmem:[#allocation10 + $0x1e0] ss:$16 sps:$4 sm:$0xff]  }
 0x8ff   : > { %7299 = vpow2.f32 %v2952_v9  ;;  %v8291_v7 = vld [vmem:[#allocation10 + $0x1e8] ss:$16 sps:$4 sm:$0xff]   ;;  %v3279_v8 = vld [vmem:[#allocation2 + $0x8] sm:$0x3] }
 0x900   : > { %7301 = vpow2.f32 %v2957_v11  ;;  %v3282_v9 = vpack.c.bf16 %v3279_v8, %v3279_v8 }
 0x901   : > { %7303 = vpow2.f32 %v2963_v44 }
 0x902   : > { %7305 = vtanh.f32 %v2949_v34 }
 0x909   : > { %v7300_v12 = vpop.eup %7299 }
 0x90a   : > { %v7302_v30 = vpop.eup %7301  ;;  %v2954_v14 = vadd.f32 1.0, %v7300_v12 }
 0x90b   : > { %v2959_v31 = vadd.f32 1.0, %v7302_v30  ;;  %v7304_v20 = vpop.eup %7303 }
 0x90c   : > { %7307 = vrcp.f32 %v2954_v14  ;;  %v7306_v22 = vpop.eup %7305  ;;  %v2965_v2 = vadd.f32 1.0, %v7304_v20  ;;  %v3014_v14 = vld [vmem:[#allocation11 + $0x4] sm:$0xf] }
 0x90d   : > { %7309 = vrcp.f32 %v2959_v31  ;;  %v3019_v31 = vrot.slane %v3014_v14, %v7879_v24  ;;  %v3023_v19 = vrot.slane %v3014_v14, %v7881_v26 }
 0x90e   : > { %7311 = vrcp.f32 %v2965_v2 }
 0x916   : > { %v7308_v63 = vpop.eup %7307 }
 0x917   : > { %v7310_v15 = vpop.eup %7309  ;;  %v2971_v1 = vmul.f32 %v7308_v63, %v7306_v22  ;;  %v3031_v63 = vrot.slane %v3014_v14, %v7885_v29 }
 0x918   : > { %v2970_v3 = vmul.f32 %v7310_v15, %v2968_v13  ;;  %v7312_v27 = vpop.eup %7311 }
 0x91a   : > { %v2972_v4 = vadd.f32 %v2971_v1, %v2970_v3 }
 0x91c   : > { %7313 = vtanh.f32 %v2972_v4  ;;  %2976 = vst [vmem:[#allocation3 - $0x7] sm:$0x80] %v2972_v4 }
 0x926   : > { %v7314_v5 = vpop.eup %7313 }
 0x927   : > { %v2974_v28 = vmul.f32 %v7314_v5, %v7312_v27 }
 0x929   : > { %2975 = vst [vmem:[#allocation2 - $0x7] sm:$0x80] %v2974_v28  ;;  %2977 = vst [vmem:[#allocation4] sm:$0x80] %v2974_v28 }
 0x930   : > { %v2978_v32 = vld [vmem:[#allocation4] sm:$0xff] }
 0x931   : > { %v2979_v23 = vpack.c.bf16 %v2978_v32, %v2978_v32 }
 0x933   : > { %3229 = vmatmul.mubr.bf16.vlgmr.msra.gmra.mrb[36].mxu0 %v2979_v23  ;;  %3270 = vmatmul.mubr.bf16.vlgmr.msra.gmra.mrb[36].mxu1 %v2979_v23 }
 0x934   : > { %3477 = vmatpush1.bf16.msra.mxu0 %v8205_v35  ;;  %3518 = vmatpush1.bf16.msra.mxu1 %v8207_v17 }
 0x935   : > { %3478 = vmatprep.subr.bf16.mxu0 %v8209_v36  ;;  %3519 = vmatprep.subr.bf16.mxu1 %v8211_v21 }
 0x936   : > { %3508 = vmatprep.mubr.bf16.mxu0 %v7611_v10  ;;  %3549 = vmatprep.mubr.bf16.mxu1 %v7611_v10 }
 0x938   : > { %3479 = vmatpush1.bf16.msra.mxu0 %v8215_v37  ;;  %3520 = vmatpush1.bf16.msra.mxu1 %v8217_v38 }
 0x939   : > { %3480 = vmatprep.subr.bf16.mxu0 %v8221_v39  ;;  %3521 = vmatprep.subr.bf16.mxu1 %v8223_v40 }
 0x93c   : > { %3481 = vmatpush1.bf16.msra.mxu0 %v8229_v25  ;;  %3522 = vmatpush1.bf16.msra.mxu1 %v8231_v42 }
 0x93d   : > { %3482 = vmatprep.subr.bf16.mxu0 %v8235_v45  ;;  %3523 = vmatprep.subr.bf16.mxu1 %v8237_v46 }
 0x940   : > { %3483 = vmatpush1.bf16.msra.mxu0 %v8241_v47  ;;  %3524 = vmatpush1.bf16.msra.mxu1 %v8243_v48 }
 0x941   : > { %3484 = vmatprep.subr.bf16.mxu0 %v8247_v49  ;;  %3525 = vmatprep.subr.bf16.mxu1 %v8249_v50 }
 0x944   : > { %3485 = vmatpush1.bf16.msra.mxu0 %v8253_v53  ;;  %3526 = vmatpush1.bf16.msra.mxu1 %v8255_v54 }
 0x945   : > { %3486 = vmatprep.subr.bf16.mxu0 %v8259_v55  ;;  %3527 = vmatprep.subr.bf16.mxu1 %v8261_v56 }
 0x948   : > { %3487 = vmatpush1.bf16.msra.mxu0 %v8265_v57  ;;  %3528 = vmatpush1.bf16.msra.mxu1 %v8267_v58 }
 0x949   : > { %3488 = vmatprep.subr.bf16.mxu0 %v8271_v59  ;;  %3529 = vmatprep.subr.bf16.mxu1 %v8273_v60 }
 0x94c   : > { %3489 = vmatpush1.bf16.msra.mxu0 %v8277_v61  ;;  %3530 = vmatpush1.bf16.msra.mxu1 %v8279_v62 }
 0x94d   : > { %3490 = vmatprep.subr.bf16.mxu0 %v8283_v6  ;;  %3531 = vmatprep.subr.bf16.mxu1 %v8285_v33 }
 0x950   : > { %3491 = vmatpush1.bf16.msra.mxu0 %v8289_v18  ;;  %3532 = vmatpush1.bf16.msra.mxu1 %v8291_v7 }
 0x951   : > { %3781 = vmatprep.subr.bf16.mxu0 %v8195_v51  ;;  %3822 = vmatprep.subr.bf16.mxu1 %v8197_v52 }
 0x953   : > { %3509 = vmatmul.mubr.bf16.vlgmr.msra.gmra.mrb[40].mxu0 %v3282_v9  ;;  %3550 = vmatmul.mubr.bf16.vlgmr.msra.gmra.mrb[40].mxu1 %v3282_v9 }
 0x954   : > { %3782 = vmatpush1.bf16.msra.mxu0 %v8205_v35  ;;  %3823 = vmatpush1.bf16.msra.mxu1 %v8207_v17 }
 0x955   : > { %3783 = vmatprep.subr.bf16.mxu0 %v8209_v36  ;;  %3824 = vmatprep.subr.bf16.mxu1 %v8211_v21 }
 0x956   : > { %3813 = vmatprep.mubr.bf16.mxu0 %v7611_v10  ;;  %3854 = vmatprep.mubr.bf16.mxu1 %v7611_v10 }
 0x958   : > { %3784 = vmatpush1.bf16.msra.mxu0 %v8215_v37  ;;  %3825 = vmatpush1.bf16.msra.mxu1 %v8217_v38 }
 0x959   : > { %3785 = vmatprep.subr.bf16.mxu0 %v8221_v39  ;;  %3826 = vmatprep.subr.bf16.mxu1 %v8223_v40 }
 0x95c   : > { %3786 = vmatpush1.bf16.msra.mxu0 %v8229_v25  ;;  %3827 = vmatpush1.bf16.msra.mxu1 %v8231_v42 }
 0x95d   : > { %3787 = vmatprep.subr.bf16.mxu0 %v8235_v45  ;;  %3828 = vmatprep.subr.bf16.mxu1 %v8237_v46 }
 0x960   : > { %3788 = vmatpush1.bf16.msra.mxu0 %v8241_v47  ;;  %3829 = vmatpush1.bf16.msra.mxu1 %v8243_v48 }
 0x961   : > { %3789 = vmatprep.subr.bf16.mxu0 %v8247_v49  ;;  %3830 = vmatprep.subr.bf16.mxu1 %v8249_v50 }
 0x964   : > { %3790 = vmatpush1.bf16.msra.mxu0 %v8253_v53  ;;  %3831 = vmatpush1.bf16.msra.mxu1 %v8255_v54 }
 0x965   : > { %3791 = vmatprep.subr.bf16.mxu0 %v8259_v55  ;;  %3832 = vmatprep.subr.bf16.mxu1 %v8261_v56 }
 0x968   : > { %3792 = vmatpush1.bf16.msra.mxu0 %v8265_v57  ;;  %3833 = vmatpush1.bf16.msra.mxu1 %v8267_v58 }
 0x969   : > { %3793 = vmatprep.subr.bf16.mxu0 %v8271_v59  ;;  %3834 = vmatprep.subr.bf16.mxu1 %v8273_v60 }
 0x96c   : > { %3794 = vmatpush1.bf16.msra.mxu0 %v8277_v61  ;;  %3835 = vmatpush1.bf16.msra.mxu1 %v8279_v62 }
 0x96d   : > { %3795 = vmatprep.subr.bf16.mxu0 %v8283_v6  ;;  %3836 = vmatprep.subr.bf16.mxu1 %v8285_v33 }
 0x970   : > { %3796 = vmatpush1.bf16.msra.mxu0 %v8289_v18  ;;  %3837 = vmatpush1.bf16.msra.mxu1 %v8291_v7 }
 0x971   : > { %4101 = vmatprep.subr.bf16.mxu0 %v8195_v51  ;;  %4142 = vmatprep.subr.bf16.mxu1 %v8197_v52 }
 0xa06   : > { %v3230_v11 = vpop.f32.mrb[36].mxu0  ;;  %v3271_v0 = vpop.f32.mrb[36].mxu1 }
 0xa07   : > { %v3232_v41 = vpop.f32.mrb[37].mxu0  ;;  %v3273_v43 = vpop.f32.mrb[37].mxu1  ;;  %v8335_v20 = vadd.f32 %v3230_v11, %v3019_v31 }
 0xa08   : > { %v3234_v44 = vpop.f32.mrb[38].mxu0  ;;  %v3275_v34 = vpop.f32.mrb[38].mxu1  ;;  %v8337_v22 = vadd.f32 %v3232_v41, %v3023_v19  ;;  %v8342_v8 = vadd.f32 %v3273_v43, %v3031_v63 }
 0xa09   : > { %v3235_v12 = vpop.f32.mrb[39].mxu0  ;;  %v3276_v30 = vpop.f32.mrb[39].mxu1  ;;  %v3027_v34 = vrot.slane %v3014_v14, %v7896_v16 }
 0xa0b   : > { %v8346_v30 = vadd.f32 %v3271_v0, %v3027_v34 }
 0xa26   : > { %v3510_v13 = vpop.f32.mrb[40].mxu0  ;;  %v3551_v15 = vpop.f32.mrb[40].mxu1 }
 0xa27   : > { %v3558_v1 = vadd.f32 %v3510_v13, %v8335_v20  ;;  %v3512_v2 = vpop.f32.mrb[41].mxu0  ;;  %v3553_v3 = vpop.f32.mrb[41].mxu1  ;;  %v3560_v19 = vadd.f32 %v3551_v15, %v8346_v30 }
 0xa28   : > { %v3559_v4 = vadd.f32 %v3512_v2, %v8337_v22  ;;  %v3514_v27 = vpop.f32.mrb[42].mxu0  ;;  %v3555_v5 = vpop.f32.mrb[42].mxu1  ;;  %v3561_v44 = vadd.f32 %v3553_v3, %v8342_v8 }
 0xa29   : > { %v3562_v28 = vsub.f32 0.0, %v3558_v1  ;;  %v3515_v32 = vpop.f32.mrb[43].mxu0  ;;  %v3556_v23 = vpop.f32.mrb[43].mxu1 }
 0xa2a   : > { %v3567_v9 = vsub.f32 0.0, %v3559_v4  ;;  %v3573_v12 = vsub.f32 0.0, %v3561_v44  ;;  %v3281_v4 = vld [vmem:[#allocation3 + $0x8] sm:$0x3] }
 0xa2b   : > { %v3563_v11 = vmul.f32 1.442695, %v3562_v28 }
 0xa2c   : > { %v3568_v41 = vmul.f32 1.442695, %v3567_v9  ;;  %v3574_v31 = vmul.f32 1.442695, %v3573_v12 }
 0xa2d   : > { %7315 = vpow2.f32 %v3563_v11 }
 0xa2e   : > { %7317 = vpow2.f32 %v3568_v41 }
 0xa2f   : > { %7319 = vpow2.f32 %v3574_v31 }
 0xa30   : > { %7321 = vtanh.f32 %v3560_v19 }
 0xa37   : > { %v7316_v13 = vpop.eup %7315 }
 0xa38   : > { %v7318_v1 = vpop.eup %7317  ;;  %v3565_v2 = vadd.f32 1.0, %v7316_v13 }
 0xa39   : > { %v3570_v43 = vadd.f32 1.0, %v7318_v1  ;;  %v7320_v63 = vpop.eup %7319 }
 0xa3a   : > { %7323 = vrcp.f32 %v3565_v2  ;;  %v7322_v3 = vpop.eup %7321  ;;  %v3576_v28 = vadd.f32 1.0, %v7320_v63 }
 0xa3b   : > { %7325 = vrcp.f32 %v3570_v43 }
 0xa3c   : > { %7327 = vrcp.f32 %v3576_v28 }
 0xa44   : > { %v7324_v27 = vpop.eup %7323 }
 0xa45   : > { %v7326_v5 = vpop.eup %7325  ;;  %v3579_v14 = vmul.f32 %v7324_v27, %v7322_v3 }
 0xa46   : > { %v3578_v0 = vmul.f32 %v7326_v5, %v3281_v4  ;;  %v7328_v15 = vpop.eup %7327 }
 0xa48   : > { %v3580_v32 = vadd.f32 %v3579_v14, %v3578_v0 }
 0xa4a   : > { %7329 = vtanh.f32 %v3580_v32  ;;  %3584 = vst [vmem:[#allocation3 + $0x8] sm:$0x3] %v3580_v32 }
 0xa54   : > { %v7330_v23 = vpop.eup %7329 }
 0xa55   : > { %v3582_v9 = vmul.f32 %v7330_v23, %v7328_v15 }
 0xa57   : > { %3583 = vst [vmem:[#allocation2 + $0x8] sm:$0x3] %v3582_v9  ;;  %3585 = vst [vmem:[#allocation4] sm:$0x3] %v3582_v9 }
 0xa5e   : > { %v3586_v11 = vld [vmem:[#allocation2 + $0x8] sm:$0x3] }
 0xa5f   : > { %v3588_v41 = vpack.c.bf16 %v3586_v11, %v3586_v11 }
 0xa61   : > { %3814 = vmatmul.mubr.bf16.vlgmr.msra.gmra.mrb[44].mxu0 %v3588_v41  ;;  %3855 = vmatmul.mubr.bf16.vlgmr.msra.gmra.mrb[44].mxu1 %v3588_v41 }
 0xa62   : > { %4102 = vmatpush1.bf16.msra.mxu0 %v8205_v35  ;;  %4143 = vmatpush1.bf16.msra.mxu1 %v8207_v17 }
 0xa63   : > { %4103 = vmatprep.subr.bf16.mxu0 %v8209_v36  ;;  %4144 = vmatprep.subr.bf16.mxu1 %v8211_v21 }
 0xa64   : > { %4133 = vmatprep.mubr.bf16.mxu0 %v7611_v10  ;;  %4174 = vmatprep.mubr.bf16.mxu1 %v7611_v10 }
 0xa66   : > { %4104 = vmatpush1.bf16.msra.mxu0 %v8215_v37  ;;  %4145 = vmatpush1.bf16.msra.mxu1 %v8217_v38 }
 0xa67   : > { %4105 = vmatprep.subr.bf16.mxu0 %v8221_v39  ;;  %4146 = vmatprep.subr.bf16.mxu1 %v8223_v40 }
 0xa6a   : > { %4106 = vmatpush1.bf16.msra.mxu0 %v8229_v25  ;;  %4147 = vmatpush1.bf16.msra.mxu1 %v8231_v42 }
 0xa6b   : > { %4107 = vmatprep.subr.bf16.mxu0 %v8235_v45  ;;  %4148 = vmatprep.subr.bf16.mxu1 %v8237_v46 }
 0xa6e   : > { %4108 = vmatpush1.bf16.msra.mxu0 %v8241_v47  ;;  %4149 = vmatpush1.bf16.msra.mxu1 %v8243_v48 }
 0xa6f   : > { %4109 = vmatprep.subr.bf16.mxu0 %v8247_v49  ;;  %4150 = vmatprep.subr.bf16.mxu1 %v8249_v50 }
 0xa72   : > { %4110 = vmatpush1.bf16.msra.mxu0 %v8253_v53  ;;  %4151 = vmatpush1.bf16.msra.mxu1 %v8255_v54 }
 0xa73   : > { %4111 = vmatprep.subr.bf16.mxu0 %v8259_v55  ;;  %4152 = vmatprep.subr.bf16.mxu1 %v8261_v56 }
 0xa76   : > { %4112 = vmatpush1.bf16.msra.mxu0 %v8265_v57  ;;  %4153 = vmatpush1.bf16.msra.mxu1 %v8267_v58 }
 0xa77   : > { %4113 = vmatprep.subr.bf16.mxu0 %v8271_v59  ;;  %4154 = vmatprep.subr.bf16.mxu1 %v8273_v60 }
 0xa7a   : > { %4114 = vmatpush1.bf16.msra.mxu0 %v8277_v61  ;;  %4155 = vmatpush1.bf16.msra.mxu1 %v8279_v62 }
 0xa7b   : > { %4115 = vmatprep.subr.bf16.mxu0 %v8283_v6  ;;  %4156 = vmatprep.subr.bf16.mxu1 %v8285_v33 }
 0xa7e   : > { %4116 = vmatpush1.bf16.msra.mxu0 %v8289_v18  ;;  %4157 = vmatpush1.bf16.msra.mxu1 %v8291_v7 }
 0xa7f   : > { %4421 = vmatprep.subr.bf16.mxu0 %v8195_v51  ;;  %4462 = vmatprep.subr.bf16.mxu1 %v8197_v52 }
 0xb34   : > { %v3815_v44 = vpop.f32.mrb[44].mxu0  ;;  %v3856_v34 = vpop.f32.mrb[44].mxu1 }
 0xb35   : > { %v3867_v12 = vrot.slane %v3815_v44, 6  ;;  %v3817_v31 = vpop.f32.mrb[45].mxu0  ;;  %v3858_v19 = vpop.f32.mrb[45].mxu1  ;;  %v3869_v32 = vrot.slane %v3856_v34, 6 }
 0xb36   : > { %v3868_v13 = vrot.slane %v3817_v31, 6  ;;  %v3819_v1 = vpop.f32.mrb[46].mxu0  ;;  %v3860_v2 = vpop.f32.mrb[46].mxu1  ;;  %v3870_v27 = vrot.slane %v3858_v19, 6 }
 0xb37   : > { %v3875_v43 = vadd.f32 %v3867_v12, %v8335_v20  ;;  %v3820_v63 = vpop.f32.mrb[47].mxu0  ;;  %v3861_v3 = vpop.f32.mrb[47].mxu1  ;;  %v3877_v23 = vadd.f32 %v3869_v32, %v8346_v30  ;;  %v3587_v12 = vld [vmem:[#allocation3 + $0x8] sm:$0x3] }
 0xb38   : > { %v3876_v4 = vadd.f32 %v3868_v13, %v8337_v22  ;;  %v3878_v52 = vadd.f32 %v3870_v27, %v8342_v8  ;;  %v3896_v1 = vrot.slane %v3587_v12, 6 }
 0xb39   : > { %v3879_v5 = vsub.f32 0.0, %v3875_v43 }
 0xb3a   : > { %v3884_v14 = vsub.f32 0.0, %v3876_v4  ;;  %v3890_v0 = vsub.f32 0.0, %v3878_v52 }
 0xb3b   : > { %v3880_v51 = vmul.f32 1.442695, %v3879_v5 }
 0xb3c   : > { %v3885_v28 = vmul.f32 1.442695, %v3884_v14  ;;  %v3891_v15 = vmul.f32 1.442695, %v3890_v0 }
 0xb3d   : > { %7331 = vpow2.f32 %v3880_v51 }
 0xb3e   : > { %7333 = vpow2.f32 %v3885_v28 }
 0xb3f   : > { %7335 = vpow2.f32 %v3891_v15 }
 0xb40   : > { %7337 = vtanh.f32 %v3877_v23 }
 0xb47   : > { %v7332_v9 = vpop.eup %7331 }
 0xb48   : > { %v7334_v11 = vpop.eup %7333  ;;  %v3882_v41 = vadd.f32 1.0, %v7332_v9 }
 0xb49   : > { %v3887_v44 = vadd.f32 1.0, %v7334_v11  ;;  %v7336_v31 = vpop.eup %7335 }
 0xb4a   : > { %7339 = vrcp.f32 %v3882_v41  ;;  %v7338_v19 = vpop.eup %7337  ;;  %v3893_v63 = vadd.f32 1.0, %v7336_v31  ;;  %v6997_v31 = vld [vmem:[#allocation8 + $0x204] ss:$16 sps:$4 sm:$0xff]  }
 0xb4b   : > { %7341 = vrcp.f32 %v3887_v44 }
 0xb4c   : > { %7343 = vrcp.f32 %v3893_v63  ;;  %v7001_v63 = vld [vmem:[#allocation8 + $0x220] ss:$16 sps:$4 sm:$0xff]  }
 0xb54   : > { %v7340_v13 = vpop.eup %7339 }
 0xb55   : > { %v7342_v2 = vpop.eup %7341  ;;  %v3899_v43 = vmul.f32 %v7340_v13, %v7338_v19  ;;  %v7000_v19 = vld [vmem:[#allocation8 + $0x20c] ss:$16 sps:$4 sm:$0xff]   ;;  %v6995_v13 = vld [vmem:[#allocation8 + $0x200] ss:$16 sps:$4 sm:$0xff]  }
 0xb56   : > { %v3898_v34 = vmul.f32 %v7342_v2, %v3896_v1  ;;  %v7344_v4 = vpop.eup %7343  ;;  %v6998_v1 = vld [vmem:[#allocation8 + $0x208] ss:$16 sps:$4 sm:$0xff]   ;;  %v7003_v2 = vld [vmem:[#allocation8 + $0x224] ss:$16 sps:$4 sm:$0xff]  }
 0xb58   : > { %v3900_v3 = vadd.f32 %v3899_v43, %v3898_v34  ;;  %v7006_v43 = vld [vmem:[#allocation8 + $0x22c] ss:$16 sps:$4 sm:$0xff]   ;;  %v7004_v34 = vld [vmem:[#allocation8 + $0x228] ss:$16 sps:$4 sm:$0xff]  }
 0xb5a   : > { %7345 = vtanh.f32 %v3900_v3  ;;  %3904 = vst [vmem:[#allocation3 + $0x6] sm:$0xc] %v3900_v3  ;;  %v7009_v3 = vld [vmem:[#allocation8 + $0x244] ss:$16 sps:$4 sm:$0xff]  }
 0xb64   : > { %v7346_v27 = vpop.eup %7345 }
 0xb65   : > { %v3902_v5 = vmul.f32 %v7346_v27, %v7344_v4  ;;  %v7012_v4 = vld [vmem:[#allocation8 + $0x24c] ss:$16 sps:$4 sm:$0xff]   ;;  %v7007_v27 = vld [vmem:[#allocation8 + $0x240] ss:$16 sps:$4 sm:$0xff]  }
 0xb67   : > { %3903 = vst [vmem:[#allocation2 + $0x6] sm:$0xc] %v3902_v5  ;;  %3905 = vst [vmem:[#allocation4] sm:$0xc] %v3902_v5  ;;  %v7010_v5 = vld [vmem:[#allocation8 + $0x248] ss:$16 sps:$4 sm:$0xff]  }
 0xb6e   : > { %v3906_v14 = vld [vmem:[#allocation2 + $0x8] sm:$0x3] }
 0xb6f   : > { %v3908_v51 = vpack.c.bf16 %v3906_v14, %v3906_v14  ;;  %v7015_v14 = vld [vmem:[#allocation8 + $0x264] ss:$16 sps:$4 sm:$0xff]  }
 0xb71   : > { %4134 = vmatmul.mubr.bf16.vlgmr.msra.gmra.mrb[48].mxu0 %v3908_v51  ;;  %4175 = vmatmul.mubr.bf16.vlgmr.msra.gmra.mrb[48].mxu1 %v3908_v51  ;;  %v7018_v51 = vld [vmem:[#allocation8 + $0x26c] ss:$16 sps:$4 sm:$0xff]  }
 0xb72   : > { %4422 = vmatpush1.bf16.msra.mxu0 %v8205_v35  ;;  %4463 = vmatpush1.bf16.msra.mxu1 %v8207_v17 }
 0xb73   : > { %4423 = vmatprep.subr.bf16.mxu0 %v8209_v36  ;;  %4464 = vmatprep.subr.bf16.mxu1 %v8211_v21 }
 0xb74   : > { %4453 = vmatprep.mubr.bf16.mxu0 %v7611_v10  ;;  %4494 = vmatprep.mubr.bf16.mxu1 %v7611_v10 }
 0xb76   : > { %4424 = vmatpush1.bf16.msra.mxu0 %v8215_v37  ;;  %4465 = vmatpush1.bf16.msra.mxu1 %v8217_v38 }
 0xb77   : > { %4425 = vmatprep.subr.bf16.mxu0 %v8221_v39  ;;  %4466 = vmatprep.subr.bf16.mxu1 %v8223_v40 }
 0xb7a   : > { %4426 = vmatpush1.bf16.msra.mxu0 %v8229_v25  ;;  %4467 = vmatpush1.bf16.msra.mxu1 %v8231_v42 }
 0xb7b   : > { %4427 = vmatprep.subr.bf16.mxu0 %v8235_v45  ;;  %4468 = vmatprep.subr.bf16.mxu1 %v8237_v46 }
 0xb7e   : > { %4428 = vmatpush1.bf16.msra.mxu0 %v8241_v47  ;;  %4469 = vmatpush1.bf16.msra.mxu1 %v8243_v48 }
 0xb7f   : > { %4429 = vmatprep.subr.bf16.mxu0 %v8247_v49  ;;  %4470 = vmatprep.subr.bf16.mxu1 %v8249_v50 }
 0xb82   : > { %4430 = vmatpush1.bf16.msra.mxu0 %v8253_v53  ;;  %4471 = vmatpush1.bf16.msra.mxu1 %v8255_v54 }
 0xb83   : > { %4431 = vmatprep.subr.bf16.mxu0 %v8259_v55  ;;  %4472 = vmatprep.subr.bf16.mxu1 %v8261_v56 }
 0xb86   : > { %4432 = vmatpush1.bf16.msra.mxu0 %v8265_v57  ;;  %4473 = vmatpush1.bf16.msra.mxu1 %v8267_v58 }
 0xb87   : > { %4433 = vmatprep.subr.bf16.mxu0 %v8271_v59  ;;  %4474 = vmatprep.subr.bf16.mxu1 %v8273_v60 }
 0xb8a   : > { %4434 = vmatpush1.bf16.msra.mxu0 %v8277_v61  ;;  %4475 = vmatpush1.bf16.msra.mxu1 %v8279_v62 }
 0xb8b   : > { %4435 = vmatprep.subr.bf16.mxu0 %v8283_v6  ;;  %4476 = vmatprep.subr.bf16.mxu1 %v8285_v33  ;;  %v3907_v6 = vld [vmem:[#allocation3 + $0x8] sm:$0x3] }
 0xb8c   : > { %v4216_v28 = vrot.slane %v3907_v6, 4 }
 0xb8e   : > { %4436 = vmatpush1.bf16.msra.mxu0 %v8289_v18  ;;  %4477 = vmatpush1.bf16.msra.mxu1 %v8291_v7 }
 0xb8f   : > { %4764 = vmatprep.subr.bf16.mxu0 %v6997_v31  ;;  %4805 = vmatprep.subr.bf16.mxu1 %v7000_v19 }
 0xc44   : > { %v4135_v35 = vpop.f32.mrb[48].mxu0  ;;  %v4176_v17 = vpop.f32.mrb[48].mxu1 }
 0xc45   : > { %v4187_v36 = vrot.slane %v4135_v35, 4  ;;  %v4137_v21 = vpop.f32.mrb[49].mxu0  ;;  %v4178_v37 = vpop.f32.mrb[49].mxu1  ;;  %v4189_v56 = vrot.slane %v4176_v17, 4  ;;  %v7013_v35 = vld [vmem:[#allocation8 + $0x260] ss:$16 sps:$4 sm:$0xff]  }
 0xc46   : > { %v4188_v38 = vrot.slane %v4137_v21, 4  ;;  %v4139_v39 = vpop.f32.mrb[50].mxu0  ;;  %v4180_v40 = vpop.f32.mrb[50].mxu1  ;;  %v4190_v47 = vrot.slane %v4178_v37, 4  ;;  %v7016_v17 = vld [vmem:[#allocation8 + $0x268] ss:$16 sps:$4 sm:$0xff]  }
 0xc47   : > { %v4195_v25 = vadd.f32 %v4187_v36, %v8335_v20  ;;  %v4140_v42 = vpop.f32.mrb[51].mxu0  ;;  %v4181_v45 = vpop.f32.mrb[51].mxu1  ;;  %v4197_v58 = vadd.f32 %v4189_v56, %v8346_v30  ;;  %v7021_v36 = vld [vmem:[#allocation8 + $0x284] ss:$16 sps:$4 sm:$0xff]   ;;  %v7024_v21 = vld [vmem:[#allocation8 + $0x28c] ss:$16 sps:$4 sm:$0xff]  }
 0xc48   : > { %v4196_v46 = vadd.f32 %v4188_v38, %v8337_v22  ;;  %v4198_v54 = vadd.f32 %v4190_v47, %v8342_v8  ;;  %v7019_v37 = vld [vmem:[#allocation8 + $0x280] ss:$16 sps:$4 sm:$0xff]   ;;  %v7022_v38 = vld [vmem:[#allocation8 + $0x288] ss:$16 sps:$4 sm:$0xff]   ;;  %v7027_v39 = vld [vmem:[#allocation8 + $0x2a4] ss:$16 sps:$4 sm:$0xff]  }
 0xc49   : > { %v4199_v48 = vsub.f32 0.0, %v4195_v25  ;;  %v7030_v40 = vld [vmem:[#allocation8 + $0x2ac] ss:$16 sps:$4 sm:$0xff]   ;;  %v7025_v25 = vld [vmem:[#allocation8 + $0x2a0] ss:$16 sps:$4 sm:$0xff]  }
 0xc4a   : > { %v4204_v49 = vsub.f32 0.0, %v4196_v46  ;;  %v4210_v55 = vsub.f32 0.0, %v4198_v54  ;;  %v7028_v42 = vld [vmem:[#allocation8 + $0x2a8] ss:$16 sps:$4 sm:$0xff]   ;;  %v7031_v45 = vld [vmem:[#allocation8 + $0x2c0] ss:$16 sps:$4 sm:$0xff]  }
 0xc4b   : > { %v4200_v50 = vmul.f32 1.442695, %v4199_v48  ;;  %v7033_v46 = vld [vmem:[#allocation8 + $0x2c4] ss:$16 sps:$4 sm:$0xff]   ;;  %v7034_v47 = vld [vmem:[#allocation8 + $0x2c8] ss:$16 sps:$4 sm:$0xff]  }
 0xc4c   : > { %v4205_v53 = vmul.f32 1.442695, %v4204_v49  ;;  %v4211_v57 = vmul.f32 1.442695, %v4210_v55  ;;  %v7036_v48 = vld [vmem:[#allocation8 + $0x2cc] ss:$16 sps:$4 sm:$0xff]  }
 0xc4d   : > { %7347 = vpow2.f32 %v4200_v50  ;;  %v7039_v49 = vld [vmem:[#allocation8 + $0x2e4] ss:$16 sps:$4 sm:$0xff]   ;;  %v7042_v50 = vld [vmem:[#allocation8 + $0x2ec] ss:$16 sps:$4 sm:$0xff]   ;;  %v7040_v54 = vld [vmem:[#allocation8 + $0x2e8] ss:$16 sps:$4 sm:$0xff]  }
 0xc4e   : > { %7349 = vpow2.f32 %v4205_v53  ;;  %v7037_v53 = vld [vmem:[#allocation8 + $0x2e0] ss:$16 sps:$4 sm:$0xff]   ;;  %v8425_v55 = vld [vmem:[#allocation10 + $0x204] ss:$16 sps:$4 sm:$0xff]   ;;  %v8427_v56 = vld [vmem:[#allocation10 + $0x20c] ss:$16 sps:$4 sm:$0xff]  }
 0xc4f   : > { %7351 = vpow2.f32 %v4211_v57 }
 0xc50   : > { %7353 = vtanh.f32 %v4197_v58 }
 0xc57   : > { %v7348_v59 = vpop.eup %7347 }
 0xc58   : > { %v7350_v60 = vpop.eup %7349  ;;  %v4202_v61 = vadd.f32 1.0, %v7348_v59 }
 0xc59   : > { %v4207_v62 = vadd.f32 1.0, %v7350_v60  ;;  %v7352_v33 = vpop.eup %7351 }
 0xc5a   : > { %7355 = vrcp.f32 %v4202_v61  ;;  %v7354_v18 = vpop.eup %7353  ;;  %v4213_v32 = vadd.f32 1.0, %v7352_v33 }
 0xc5b   : > { %7357 = vrcp.f32 %v4207_v62 }
 0xc5c   : > { %7359 = vrcp.f32 %v4213_v32 }
 0xc64   : > { %v7356_v7 = vpop.eup %7355 }
 0xc65   : > { %v7358_v52 = vpop.eup %7357  ;;  %v4219_v0 = vmul.f32 %v7356_v7, %v7354_v18 }
 0xc66   : > { %v4218_v15 = vmul.f32 %v7358_v52, %v4216_v28  ;;  %v7360_v9 = vpop.eup %7359 }
 0xc68   : > { %v4220_v23 = vadd.f32 %v4219_v0, %v4218_v15 }
 0xc6a   : > { %7361 = vtanh.f32 %v4220_v23  ;;  %4224 = vst [vmem:[#allocation3 + $0x4] sm:$0x30] %v4220_v23 }
 0xc74   : > { %v7362_v11 = vpop.eup %7361 }
 0xc75   : > { %v4222_v41 = vmul.f32 %v7362_v11, %v7360_v9 }
 0xc77   : > { %4223 = vst [vmem:[#allocation2 + $0x4] sm:$0x30] %v4222_v41  ;;  %4225 = vst [vmem:[#allocation4] sm:$0x30] %v4222_v41 }
 0xc7e   : > { %v4226_v44 = vld [vmem:[#allocation2 + $0x8] sm:$0x3] }
 0xc7f   : > { %v4228_v12 = vpack.c.bf16 %v4226_v44, %v4226_v44 }
 0xc81   : > { %4454 = vmatmul.mubr.bf16.vlgmr.msra.gmra.mrb[52].mxu0 %v4228_v12  ;;  %4495 = vmatmul.mubr.bf16.vlgmr.msra.gmra.mrb[52].mxu1 %v4228_v12 }
 0xc82   : > { %4796 = vmatprep.mubr.bf16.mxu0 %v7611_v10  ;;  %4837 = vmatprep.mubr.bf16.mxu1 %v7611_v10 }
 0xc83   : > { %4765 = vmatpush1.bf16.msra.mxu0 %v6995_v13  ;;  %4806 = vmatpush1.bf16.msra.mxu1 %v6998_v1  ;;  %v4227_v1 = vld [vmem:[#allocation3 + $0x8] sm:$0x3] }
 0xc84   : > { %4766 = vmatprep.subr.bf16.mxu0 %v7003_v2  ;;  %4807 = vmatprep.subr.bf16.mxu1 %v7006_v43 }
 0xc87   : > { %4767 = vmatpush1.bf16.msra.mxu0 %v7001_v63  ;;  %4808 = vmatpush1.bf16.msra.mxu1 %v7004_v34 }
 0xc88   : > { %4768 = vmatprep.subr.bf16.mxu0 %v7009_v3  ;;  %4809 = vmatprep.subr.bf16.mxu1 %v7012_v4 }
 0xc8b   : > { %4769 = vmatpush1.bf16.msra.mxu0 %v7007_v27  ;;  %4810 = vmatpush1.bf16.msra.mxu1 %v7010_v5 }
 0xc8c   : > { %4770 = vmatprep.subr.bf16.mxu0 %v7015_v14  ;;  %4811 = vmatprep.subr.bf16.mxu1 %v7018_v51 }
 0xc8f   : > { %4771 = vmatpush1.bf16.msra.mxu0 %v7013_v35  ;;  %4812 = vmatpush1.bf16.msra.mxu1 %v7016_v17  ;;  %v8435_v35 = vld [vmem:[#allocation10 + $0x200] ss:$16 sps:$4 sm:$0xff]   ;;  %v8437_v17 = vld [vmem:[#allocation10 + $0x208] ss:$16 sps:$4 sm:$0xff]  }
 0xc90   : > { %4772 = vmatprep.subr.bf16.mxu0 %v7021_v36  ;;  %4813 = vmatprep.subr.bf16.mxu1 %v7024_v21 }
 0xc93   : > { %4773 = vmatpush1.bf16.msra.mxu0 %v7019_v37  ;;  %4814 = vmatpush1.bf16.msra.mxu1 %v7022_v38  ;;  %v8439_v37 = vld [vmem:[#allocation10 + $0x224] ss:$16 sps:$4 sm:$0xff]   ;;  %v8441_v38 = vld [vmem:[#allocation10 + $0x22c] ss:$16 sps:$4 sm:$0xff]  }
 0xc94   : > { %4774 = vmatprep.subr.bf16.mxu0 %v7027_v39  ;;  %4815 = vmatprep.subr.bf16.mxu1 %v7030_v40  ;;  %v8445_v39 = vld [vmem:[#allocation10 + $0x220] ss:$16 sps:$4 sm:$0xff]   ;;  %v8447_v40 = vld [vmem:[#allocation10 + $0x228] ss:$16 sps:$4 sm:$0xff]  }
 0xc97   : > { %4775 = vmatpush1.bf16.msra.mxu0 %v7025_v25  ;;  %4816 = vmatpush1.bf16.msra.mxu1 %v7028_v42  ;;  %v8451_v25 = vld [vmem:[#allocation10 + $0x244] ss:$16 sps:$4 sm:$0xff]   ;;  %v8453_v42 = vld [vmem:[#allocation10 + $0x24c] ss:$16 sps:$4 sm:$0xff]  }
 0xc98   : > { %4776 = vmatprep.subr.bf16.mxu0 %v7033_v46  ;;  %4817 = vmatprep.subr.bf16.mxu1 %v7036_v48  ;;  %v7058_v46 = vld [vmem:[#allocation10 + $0x248] ss:$16 sps:$4 sm:$0xff]   ;;  %v7066_v48 = vld [vmem:[#allocation10 + $0x26c] ss:$16 sps:$4 sm:$0xff]  }
 0xc9b   : > { %4777 = vmatpush1.bf16.msra.mxu0 %v7031_v45  ;;  %4818 = vmatpush1.bf16.msra.mxu1 %v7034_v47  ;;  %v7055_v45 = vld [vmem:[#allocation10 + $0x240] ss:$16 sps:$4 sm:$0xff]   ;;  %v7063_v47 = vld [vmem:[#allocation10 + $0x264] ss:$16 sps:$4 sm:$0xff]  }
 0xc9c   : > { %4778 = vmatprep.subr.bf16.mxu0 %v7039_v49  ;;  %4819 = vmatprep.subr.bf16.mxu1 %v7042_v50  ;;  %v7061_v49 = vld [vmem:[#allocation10 + $0x260] ss:$16 sps:$4 sm:$0xff]   ;;  %v7064_v50 = vld [vmem:[#allocation10 + $0x268] ss:$16 sps:$4 sm:$0xff]  }
 0xc9f   : > { %4779 = vmatpush1.bf16.msra.mxu0 %v7037_v53  ;;  %4820 = vmatpush1.bf16.msra.mxu1 %v7040_v54  ;;  %v7069_v53 = vld [vmem:[#allocation10 + $0x284] ss:$16 sps:$4 sm:$0xff]   ;;  %v7072_v54 = vld [vmem:[#allocation10 + $0x28c] ss:$16 sps:$4 sm:$0xff]  }
 0xca0   : > { %5044 = vmatprep.subr.bf16.mxu0 %v8425_v55  ;;  %5085 = vmatprep.subr.bf16.mxu1 %v8427_v56 }
 0xd54   : > { %v4455_v57 = vpop.f32.mrb[52].mxu0  ;;  %v4496_v58 = vpop.f32.mrb[52].mxu1 }
 0xd55   : > { %v4507_v59 = vrot.slane %v4455_v57, 2  ;;  %v4457_v60 = vpop.f32.mrb[53].mxu0  ;;  %v4498_v61 = vpop.f32.mrb[53].mxu1  ;;  %v4509_v44 = vrot.slane %v4496_v58, 2  ;;  %v7067_v57 = vld [vmem:[#allocation10 + $0x280] ss:$16 sps:$4 sm:$0xff]  }
 0xd56   : > { %v4508_v62 = vrot.slane %v4457_v60, 2  ;;  %v4459_v6 = vpop.f32.mrb[54].mxu0  ;;  %v4500_v33 = vpop.f32.mrb[54].mxu1  ;;  %v4510_v0 = vrot.slane %v4498_v61, 2  ;;  %v7070_v58 = vld [vmem:[#allocation10 + $0x288] ss:$16 sps:$4 sm:$0xff]  }
 0xd57   : > { %v4515_v18 = vadd.f32 %v4507_v59, %v8335_v20  ;;  %v4460_v7 = vpop.f32.mrb[55].mxu0  ;;  %v4501_v28 = vpop.f32.mrb[55].mxu1  ;;  %v4517_v31 = vadd.f32 %v4509_v44, %v8346_v30  ;;  %v7075_v59 = vld [vmem:[#allocation10 + $0x2a4] ss:$16 sps:$4 sm:$0xff]   ;;  %v7078_v60 = vld [vmem:[#allocation10 + $0x2ac] ss:$16 sps:$4 sm:$0xff]  }
 0xd58   : > { %v4516_v52 = vadd.f32 %v4508_v62, %v8337_v22  ;;  %v4518_v11 = vadd.f32 %v4510_v0, %v8342_v8  ;;  %v4536_v8 = vrot.slane %v4227_v1, 2  ;;  %v7073_v61 = vld [vmem:[#allocation10 + $0x2a0] ss:$16 sps:$4 sm:$0xff]   ;;  %v7076_v62 = vld [vmem:[#allocation10 + $0x2a8] ss:$16 sps:$4 sm:$0xff]  }
 0xd59   : > { %v4519_v32 = vsub.f32 0.0, %v4515_v18  ;;  %v7081_v6 = vld [vmem:[#allocation10 + $0x2c4] ss:$16 sps:$4 sm:$0xff]   ;;  %v7084_v33 = vld [vmem:[#allocation10 + $0x2cc] ss:$16 sps:$4 sm:$0xff]  }
 0xd5a   : > { %v4524_v15 = vsub.f32 0.0, %v4516_v52  ;;  %v4530_v41 = vsub.f32 0.0, %v4518_v11  ;;  %v7079_v18 = vld [vmem:[#allocation10 + $0x2c0] ss:$16 sps:$4 sm:$0xff]   ;;  %v7082_v7 = vld [vmem:[#allocation10 + $0x2c8] ss:$16 sps:$4 sm:$0xff]  }
 0xd5b   : > { %v4520_v23 = vmul.f32 1.442695, %v4519_v32  ;;  %v7087_v28 = vld [vmem:[#allocation10 + $0x2e4] ss:$16 sps:$4 sm:$0xff]   ;;  %v7090_v52 = vld [vmem:[#allocation10 + $0x2ec] ss:$16 sps:$4 sm:$0xff]  }
 0xd5c   : > { %v4525_v9 = vmul.f32 1.442695, %v4524_v15  ;;  %v4531_v12 = vmul.f32 1.442695, %v4530_v41  ;;  %v7085_v0 = vld [vmem:[#allocation10 + $0x2e0] ss:$16 sps:$4 sm:$0xff]  }
 0xd5d   : > { %7363 = vpow2.f32 %v4520_v23  ;;  %v7088_v32 = vld [vmem:[#allocation10 + $0x2e8] ss:$16 sps:$4 sm:$0xff]  }
 0xd5e   : > { %7365 = vpow2.f32 %v4525_v9  ;;  %v4847_v15 = vld [vmem:[#allocation2 + $0x10] sm:$0xf] }
 0xd5f   : > { %7367 = vpow2.f32 %v4531_v12  ;;  %v4850_v23 = vpack.c.bf16 %v4847_v15, %v4847_v15  ;;  %v7099_v15 = vld [vmem:[#allocation8 + $0x324] ss:$16 sps:$4 sm:$0xff]  }
 0xd60   : > { %7369 = vtanh.f32 %v4517_v31 }
 0xd67   : > { %v7364_v19 = vpop.eup %7363 }
 0xd68   : > { %v7366_v20 = vpop.eup %7365  ;;  %v4522_v13 = vadd.f32 1.0, %v7364_v19  ;;  %v4582_v19 = vld [vmem:[#allocation11 + $0x8] sm:$0xf] }
 0xd69   : > { %v4527_v22 = vadd.f32 1.0, %v7366_v20  ;;  %v7368_v2 = vpop.eup %7367  ;;  %v4587_v20 = vrot.slane %v4582_v19, %v7879_v24 }
 0xd6a   : > { %7371 = vrcp.f32 %v4522_v13  ;;  %v7370_v43 = vpop.eup %7369  ;;  %v4533_v4 = vadd.f32 1.0, %v7368_v2  ;;  %v4591_v13 = vrot.slane %v4582_v19, %v7881_v26  ;;  %v4599_v2 = vrot.slane %v4582_v19, %v7885_v29 }
 0xd6b   : > { %7373 = vrcp.f32 %v4527_v22 }
 0xd6c   : > { %7375 = vrcp.f32 %v4533_v4 }
 0xd74   : > { %v7372_v63 = vpop.eup %7371 }
 0xd75   : > { %v7374_v34 = vpop.eup %7373  ;;  %v4539_v3 = vmul.f32 %v7372_v63, %v7370_v43 }
 0xd76   : > { %v4538_v27 = vmul.f32 %v7374_v34, %v4536_v8  ;;  %v7376_v30 = vpop.eup %7375 }
 0xd78   : > { %v4540_v5 = vadd.f32 %v4539_v3, %v4538_v27 }
 0xd7a   : > { %7377 = vtanh.f32 %v4540_v5  ;;  %4544 = vst [vmem:[#allocation3 + $0x2] sm:$0xc0] %v4540_v5 }
 0xd84   : > { %v7378_v14 = vpop.eup %7377 }
 0xd85   : > { %v4542_v51 = vmul.f32 %v7378_v14, %v7376_v30 }
 0xd87   : > { %4543 = vst [vmem:[#allocation2 + $0x2] sm:$0xc0] %v4542_v51  ;;  %4545 = vst [vmem:[#allocation4] sm:$0xc0] %v4542_v51 }
 0xd8e   : > { %v4546_v36 = vld [vmem:[#allocation4] sm:$0xff] }
 0xd8f   : > { %v4547_v21 = vpack.c.bf16 %v4546_v36, %v4546_v36 }
 0xd91   : > { %4797 = vmatmul.mubr.bf16.vlgmr.msra.gmra.mrb[56].mxu0 %v4547_v21  ;;  %4838 = vmatmul.mubr.bf16.vlgmr.msra.gmra.mrb[56].mxu1 %v4547_v21 }
 0xd92   : > { %5045 = vmatpush1.bf16.msra.mxu0 %v8435_v35  ;;  %5086 = vmatpush1.bf16.msra.mxu1 %v8437_v17 }
 0xd93   : > { %5046 = vmatprep.subr.bf16.mxu0 %v8439_v37  ;;  %5087 = vmatprep.subr.bf16.mxu1 %v8441_v38 }
 0xd94   : > { %5076 = vmatprep.mubr.bf16.mxu0 %v7611_v10  ;;  %5117 = vmatprep.mubr.bf16.mxu1 %v7611_v10 }
 0xd96   : > { %5047 = vmatpush1.bf16.msra.mxu0 %v8445_v39  ;;  %5088 = vmatpush1.bf16.msra.mxu1 %v8447_v40 }
 0xd97   : > { %5048 = vmatprep.subr.bf16.mxu0 %v8451_v25  ;;  %5089 = vmatprep.subr.bf16.mxu1 %v8453_v42 }
 0xd9a   : > { %5049 = vmatpush1.bf16.msra.mxu0 %v7055_v45  ;;  %5090 = vmatpush1.bf16.msra.mxu1 %v7058_v46 }
 0xd9b   : > { %5050 = vmatprep.subr.bf16.mxu0 %v7063_v47  ;;  %5091 = vmatprep.subr.bf16.mxu1 %v7066_v48 }
 0xd9e   : > { %5051 = vmatpush1.bf16.msra.mxu0 %v7061_v49  ;;  %5092 = vmatpush1.bf16.msra.mxu1 %v7064_v50 }
 0xd9f   : > { %5052 = vmatprep.subr.bf16.mxu0 %v7069_v53  ;;  %5093 = vmatprep.subr.bf16.mxu1 %v7072_v54 }
 0xda2   : > { %5053 = vmatpush1.bf16.msra.mxu0 %v7067_v57  ;;  %5094 = vmatpush1.bf16.msra.mxu1 %v7070_v58 }
 0xda3   : > { %5054 = vmatprep.subr.bf16.mxu0 %v7075_v59  ;;  %5095 = vmatprep.subr.bf16.mxu1 %v7078_v60 }
 0xda6   : > { %5055 = vmatpush1.bf16.msra.mxu0 %v7073_v61  ;;  %5096 = vmatpush1.bf16.msra.mxu1 %v7076_v62 }
 0xda7   : > { %5056 = vmatprep.subr.bf16.mxu0 %v7081_v6  ;;  %5097 = vmatprep.subr.bf16.mxu1 %v7084_v33 }
 0xdaa   : > { %5057 = vmatpush1.bf16.msra.mxu0 %v7079_v18  ;;  %5098 = vmatpush1.bf16.msra.mxu1 %v7082_v7 }
 0xdab   : > { %5058 = vmatprep.subr.bf16.mxu0 %v7087_v28  ;;  %5099 = vmatprep.subr.bf16.mxu1 %v7090_v52 }
 0xdae   : > { %5059 = vmatpush1.bf16.msra.mxu0 %v7085_v0  ;;  %5100 = vmatpush1.bf16.msra.mxu1 %v7088_v32 }
 0xdaf   : > { %5349 = vmatprep.subr.bf16.mxu0 %v8425_v55  ;;  %5390 = vmatprep.subr.bf16.mxu1 %v8427_v56 }
 0xdb1   : > { %5077 = vmatmul.mubr.bf16.vlgmr.msra.gmra.mrb[60].mxu0 %v4850_v23  ;;  %5118 = vmatmul.mubr.bf16.vlgmr.msra.gmra.mrb[60].mxu1 %v4850_v23  ;;  %v7102_v23 = vld [vmem:[#allocation8 + $0x32c] ss:$16 sps:$4 sm:$0xff]  }
 0xdb2   : > { %5350 = vmatpush1.bf16.msra.mxu0 %v8435_v35  ;;  %5391 = vmatpush1.bf16.msra.mxu1 %v8437_v17 }
 0xdb3   : > { %5351 = vmatprep.subr.bf16.mxu0 %v8439_v37  ;;  %5392 = vmatprep.subr.bf16.mxu1 %v8441_v38  ;;  %v4595_v38 = vrot.slane %v4582_v19, %v7896_v16  ;;  %v7109_v19 = vld [vmem:[#allocation8 + $0x360] ss:$16 sps:$4 sm:$0xff]  }
 0xdb4   : > { %5381 = vmatprep.mubr.bf16.mxu0 %v7611_v10  ;;  %5422 = vmatprep.mubr.bf16.mxu1 %v7611_v10 }
 0xdb6   : > { %5352 = vmatpush1.bf16.msra.mxu0 %v8445_v39  ;;  %5393 = vmatpush1.bf16.msra.mxu1 %v8447_v40 }
 0xdb7   : > { %5353 = vmatprep.subr.bf16.mxu0 %v8451_v25  ;;  %5394 = vmatprep.subr.bf16.mxu1 %v8453_v42 }
 0xdba   : > { %5354 = vmatpush1.bf16.msra.mxu0 %v7055_v45  ;;  %5395 = vmatpush1.bf16.msra.mxu1 %v7058_v46 }
 0xdbb   : > { %5355 = vmatprep.subr.bf16.mxu0 %v7063_v47  ;;  %5396 = vmatprep.subr.bf16.mxu1 %v7066_v48 }
 0xdbe   : > { %5356 = vmatpush1.bf16.msra.mxu0 %v7061_v49  ;;  %5397 = vmatpush1.bf16.msra.mxu1 %v7064_v50 }
 0xdbf   : > { %5357 = vmatprep.subr.bf16.mxu0 %v7069_v53  ;;  %5398 = vmatprep.subr.bf16.mxu1 %v7072_v54  ;;  %v4849_v53 = vld [vmem:[#allocation3 + $0x10] sm:$0xf] }
 0xdc2   : > { %5358 = vmatpush1.bf16.msra.mxu0 %v7067_v57  ;;  %5399 = vmatpush1.bf16.msra.mxu1 %v7070_v58 }
 0xdc3   : > { %5359 = vmatprep.subr.bf16.mxu0 %v7075_v59  ;;  %5400 = vmatprep.subr.bf16.mxu1 %v7078_v60 }
 0xdc6   : > { %5360 = vmatpush1.bf16.msra.mxu0 %v7073_v61  ;;  %5401 = vmatpush1.bf16.msra.mxu1 %v7076_v62 }
 0xdc7   : > { %5361 = vmatprep.subr.bf16.mxu0 %v7081_v6  ;;  %5402 = vmatprep.subr.bf16.mxu1 %v7084_v33 }
 0xdca   : > { %5362 = vmatpush1.bf16.msra.mxu0 %v7079_v18  ;;  %5403 = vmatpush1.bf16.msra.mxu1 %v7082_v7 }
 0xdcb   : > { %5363 = vmatprep.subr.bf16.mxu0 %v7087_v28  ;;  %5404 = vmatprep.subr.bf16.mxu1 %v7090_v52  ;;  %v7093_v28 = vld [vmem:[#allocation8 + $0x304] ss:$16 sps:$4 sm:$0xff]   ;;  %v7096_v52 = vld [vmem:[#allocation8 + $0x30c] ss:$16 sps:$4 sm:$0xff]  }
 0xdce   : > { %5364 = vmatpush1.bf16.msra.mxu0 %v7085_v0  ;;  %5405 = vmatpush1.bf16.msra.mxu1 %v7088_v32  ;;  %v7091_v0 = vld [vmem:[#allocation8 + $0x300] ss:$16 sps:$4 sm:$0xff]   ;;  %v7094_v32 = vld [vmem:[#allocation8 + $0x308] ss:$16 sps:$4 sm:$0xff]  }
 0xdcf   : > { %5692 = vmatprep.subr.bf16.mxu0 %v7093_v28  ;;  %5733 = vmatprep.subr.bf16.mxu1 %v7096_v52 }
 0xe64   : > { %v4798_v55 = vpop.f32.mrb[56].mxu0  ;;  %v4839_v56 = vpop.f32.mrb[56].mxu1 }
 0xe65   : > { %v4800_v9 = vpop.f32.mrb[57].mxu0  ;;  %v4841_v11 = vpop.f32.mrb[57].mxu1  ;;  %v8475_v22 = vadd.f32 %v4798_v55, %v4587_v20  ;;  %v8486_v40 = vadd.f32 %v4839_v56, %v4595_v38  ;;  %v7097_v55 = vld [vmem:[#allocation8 + $0x320] ss:$16 sps:$4 sm:$0xff]   ;;  %v7100_v56 = vld [vmem:[#allocation8 + $0x328] ss:$16 sps:$4 sm:$0xff]  }
 0xe66   : > { %v4802_v41 = vpop.f32.mrb[58].mxu0  ;;  %v4843_v44 = vpop.f32.mrb[58].mxu1  ;;  %v8477_v1 = vadd.f32 %v4800_v9, %v4591_v13  ;;  %v8482_v35 = vadd.f32 %v4841_v11, %v4599_v2  ;;  %v7105_v9 = vld [vmem:[#allocation8 + $0x344] ss:$16 sps:$4 sm:$0xff]   ;;  %v7108_v11 = vld [vmem:[#allocation8 + $0x34c] ss:$16 sps:$4 sm:$0xff]  }
 0xe67   : > { %v4803_v12 = vpop.f32.mrb[59].mxu0  ;;  %v4844_v31 = vpop.f32.mrb[59].mxu1  ;;  %v7103_v41 = vld [vmem:[#allocation8 + $0x340] ss:$16 sps:$4 sm:$0xff]   ;;  %v7106_v44 = vld [vmem:[#allocation8 + $0x348] ss:$16 sps:$4 sm:$0xff]  }
 0xe68   : > { %v7111_v12 = vld [vmem:[#allocation8 + $0x364] ss:$16 sps:$4 sm:$0xff]   ;;  %v7114_v31 = vld [vmem:[#allocation8 + $0x36c] ss:$16 sps:$4 sm:$0xff]   ;;  %v7112_v20 = vld [vmem:[#allocation8 + $0x368] ss:$16 sps:$4 sm:$0xff]  }
 0xe69   : > { %v7117_v13 = vld [vmem:[#allocation8 + $0x384] ss:$16 sps:$4 sm:$0xff]   ;;  %v7120_v2 = vld [vmem:[#allocation8 + $0x38c] ss:$16 sps:$4 sm:$0xff]  }
 0xe6a   : > { %v7144_v38 = vld [vmem:[#allocation10 + $0x30c] ss:$16 sps:$4 sm:$0xff]  }
 0xe84   : > { %v5078_v43 = vpop.f32.mrb[60].mxu0  ;;  %v5119_v63 = vpop.f32.mrb[60].mxu1 }
 0xe85   : > { %v5126_v8 = vadd.f32 %v5078_v43, %v8475_v22  ;;  %v5080_v34 = vpop.f32.mrb[61].mxu0  ;;  %v5121_v3 = vpop.f32.mrb[61].mxu1  ;;  %v5128_v42 = vadd.f32 %v5119_v63, %v8486_v40  ;;  %v7115_v43 = vld [vmem:[#allocation8 + $0x380] ss:$16 sps:$4 sm:$0xff]   ;;  %v7118_v63 = vld [vmem:[#allocation8 + $0x388] ss:$16 sps:$4 sm:$0xff]  }
 0xe86   : > { %v5127_v4 = vadd.f32 %v5080_v34, %v8477_v1  ;;  %v5082_v27 = vpop.f32.mrb[62].mxu0  ;;  %v5123_v5 = vpop.f32.mrb[62].mxu1  ;;  %v5129_v37 = vadd.f32 %v5121_v3, %v8482_v35  ;;  %v7126_v34 = vld [vmem:[#allocation8 + $0x3ac] ss:$16 sps:$4 sm:$0xff]   ;;  %v7121_v3 = vld [vmem:[#allocation8 + $0x3a0] ss:$16 sps:$4 sm:$0xff]  }
 0xe87   : > { %v5130_v30 = vsub.f32 0.0, %v5126_v8  ;;  %v5083_v14 = vpop.f32.mrb[63].mxu0  ;;  %v5124_v51 = vpop.f32.mrb[63].mxu1  ;;  %v7123_v8 = vld [vmem:[#allocation8 + $0x3a4] ss:$16 sps:$4 sm:$0xff]  }
 0xe88   : > { %v5135_v17 = vsub.f32 0.0, %v5127_v4  ;;  %v5141_v39 = vsub.f32 0.0, %v5129_v37  ;;  %v7124_v4 = vld [vmem:[#allocation8 + $0x3a8] ss:$16 sps:$4 sm:$0xff]   ;;  %v7127_v27 = vld [vmem:[#allocation8 + $0x3c0] ss:$16 sps:$4 sm:$0xff]  }
 0xe89   : > { %v5131_v36 = vmul.f32 1.442695, %v5130_v30  ;;  %v7129_v5 = vld [vmem:[#allocation8 + $0x3c4] ss:$16 sps:$4 sm:$0xff]   ;;  %v7130_v30 = vld [vmem:[#allocation8 + $0x3c8] ss:$16 sps:$4 sm:$0xff]  }
 0xe8a   : > { %v5136_v21 = vmul.f32 1.442695, %v5135_v17  ;;  %v5142_v25 = vmul.f32 1.442695, %v5141_v39  ;;  %v7132_v14 = vld [vmem:[#allocation8 + $0x3cc] ss:$16 sps:$4 sm:$0xff]  }
 0xe8b   : > { %7379 = vpow2.f32 %v5131_v36  ;;  %v7135_v51 = vld [vmem:[#allocation8 + $0x3e4] ss:$16 sps:$4 sm:$0xff]   ;;  %v7138_v17 = vld [vmem:[#allocation8 + $0x3ec] ss:$16 sps:$4 sm:$0xff]   ;;  %v7133_v36 = vld [vmem:[#allocation8 + $0x3e0] ss:$16 sps:$4 sm:$0xff]  }
 0xe8c   : > { %7381 = vpow2.f32 %v5136_v21  ;;  %v7136_v21 = vld [vmem:[#allocation8 + $0x3e8] ss:$16 sps:$4 sm:$0xff]   ;;  %v7141_v37 = vld [vmem:[#allocation10 + $0x304] ss:$16 sps:$4 sm:$0xff]  }
 0xe8d   : > { %7383 = vpow2.f32 %v5142_v25 }
 0xe8e   : > { %7385 = vtanh.f32 %v5128_v42 }
 0xe95   : > { %v7380_v45 = vpop.eup %7379 }
 0xe96   : > { %v7382_v46 = vpop.eup %7381  ;;  %v5133_v47 = vadd.f32 1.0, %v7380_v45 }
 0xe97   : > { %v5138_v48 = vadd.f32 1.0, %v7382_v46  ;;  %v7384_v49 = vpop.eup %7383 }
 0xe98   : > { %7387 = vrcp.f32 %v5133_v47  ;;  %v7386_v50 = vpop.eup %7385  ;;  %v5144_v59 = vadd.f32 1.0, %v7384_v49 }
 0xe99   : > { %7389 = vrcp.f32 %v5138_v48 }
 0xe9a   : > { %7391 = vrcp.f32 %v5144_v59 }
 0xea2   : > { %v7388_v54 = vpop.eup %7387 }
 0xea3   : > { %v7390_v57 = vpop.eup %7389  ;;  %v5147_v58 = vmul.f32 %v7388_v54, %v7386_v50 }
 0xea4   : > { %v5146_v60 = vmul.f32 %v7390_v57, %v4849_v53  ;;  %v7392_v62 = vpop.eup %7391 }
 0xea6   : > { %v5148_v61 = vadd.f32 %v5147_v58, %v5146_v60 }
 0xea8   : > { %7393 = vtanh.f32 %v5148_v61  ;;  %5152 = vst [vmem:[#allocation3 + $0x10] sm:$0xf] %v5148_v61 }
 0xeb2   : > { %v7394_v6 = vpop.eup %7393 }
 0xeb3   : > { %v5150_v33 = vmul.f32 %v7394_v6, %v7392_v62 }
 0xeb5   : > { %5151 = vst [vmem:[#allocation2 + $0x10] sm:$0xf] %v5150_v33  ;;  %5153 = vst [vmem:[#allocation4] sm:$0xf] %v5150_v33 }
 0xebc   : > { %v5154_v18 = vld [vmem:[#allocation2 + $0x10] sm:$0xf] }
 0xebd   : > { %v5156_v7 = vpack.c.bf16 %v5154_v18, %v5154_v18 }
 0xebf   : > { %5382 = vmatmul.mubr.bf16.vlgmr.msra.gmra.mrb[64].mxu0 %v5156_v7  ;;  %5423 = vmatmul.mubr.bf16.vlgmr.msra.gmra.mrb[64].mxu1 %v5156_v7 }
 0xec0   : > { %5724 = vmatprep.mubr.bf16.mxu0 %v7611_v10  ;;  %5765 = vmatprep.mubr.bf16.mxu1 %v7611_v10 }
 0xec1   : > { %5693 = vmatpush1.bf16.msra.mxu0 %v7091_v0  ;;  %5734 = vmatpush1.bf16.msra.mxu1 %v7094_v32  ;;  %v5155_v32 = vld [vmem:[#allocation3 + $0x10] sm:$0xf] }
 0xec2   : > { %5694 = vmatprep.subr.bf16.mxu0 %v7099_v15  ;;  %5735 = vmatprep.subr.bf16.mxu1 %v7102_v23 }
 0xec5   : > { %5695 = vmatpush1.bf16.msra.mxu0 %v7097_v55  ;;  %5736 = vmatpush1.bf16.msra.mxu1 %v7100_v56 }
 0xec6   : > { %5696 = vmatprep.subr.bf16.mxu0 %v7105_v9  ;;  %5737 = vmatprep.subr.bf16.mxu1 %v7108_v11 }
 0xec9   : > { %5697 = vmatpush1.bf16.msra.mxu0 %v7103_v41  ;;  %5738 = vmatpush1.bf16.msra.mxu1 %v7106_v44 }
 0xeca   : > { %5698 = vmatprep.subr.bf16.mxu0 %v7111_v12  ;;  %5739 = vmatprep.subr.bf16.mxu1 %v7114_v31 }
 0xecd   : > { %5699 = vmatpush1.bf16.msra.mxu0 %v7109_v19  ;;  %5740 = vmatpush1.bf16.msra.mxu1 %v7112_v20  ;;  %v7139_v19 = vld [vmem:[#allocation10 + $0x300] ss:$16 sps:$4 sm:$0xff]   ;;  %v7142_v20 = vld [vmem:[#allocation10 + $0x308] ss:$16 sps:$4 sm:$0xff]  }
 0xece   : > { %5700 = vmatprep.subr.bf16.mxu0 %v7117_v13  ;;  %5741 = vmatprep.subr.bf16.mxu1 %v7120_v2 }
 0xed1   : > { %5701 = vmatpush1.bf16.msra.mxu0 %v7115_v43  ;;  %5742 = vmatpush1.bf16.msra.mxu1 %v7118_v63  ;;  %v7147_v43 = vld [vmem:[#allocation10 + $0x324] ss:$16 sps:$4 sm:$0xff]   ;;  %v7150_v63 = vld [vmem:[#allocation10 + $0x32c] ss:$16 sps:$4 sm:$0xff]  }
 0xed2   : > { %5702 = vmatprep.subr.bf16.mxu0 %v7123_v8  ;;  %5743 = vmatprep.subr.bf16.mxu1 %v7126_v34  ;;  %v7145_v8 = vld [vmem:[#allocation10 + $0x320] ss:$16 sps:$4 sm:$0xff]   ;;  %v7148_v34 = vld [vmem:[#allocation10 + $0x328] ss:$16 sps:$4 sm:$0xff]  }
 0xed5   : > { %5703 = vmatpush1.bf16.msra.mxu0 %v7121_v3  ;;  %5744 = vmatpush1.bf16.msra.mxu1 %v7124_v4  ;;  %v7153_v3 = vld [vmem:[#allocation10 + $0x344] ss:$16 sps:$4 sm:$0xff]   ;;  %v7156_v4 = vld [vmem:[#allocation10 + $0x34c] ss:$16 sps:$4 sm:$0xff]  }
 0xed6   : > { %5704 = vmatprep.subr.bf16.mxu0 %v7129_v5  ;;  %5745 = vmatprep.subr.bf16.mxu1 %v7132_v14  ;;  %v7154_v5 = vld [vmem:[#allocation10 + $0x348] ss:$16 sps:$4 sm:$0xff]   ;;  %v7162_v14 = vld [vmem:[#allocation10 + $0x36c] ss:$16 sps:$4 sm:$0xff]  }
 0xed9   : > { %5705 = vmatpush1.bf16.msra.mxu0 %v7127_v27  ;;  %5746 = vmatpush1.bf16.msra.mxu1 %v7130_v30  ;;  %v7151_v27 = vld [vmem:[#allocation10 + $0x340] ss:$16 sps:$4 sm:$0xff]   ;;  %v7159_v30 = vld [vmem:[#allocation10 + $0x364] ss:$16 sps:$4 sm:$0xff]  }
 0xeda   : > { %5706 = vmatprep.subr.bf16.mxu0 %v7135_v51  ;;  %5747 = vmatprep.subr.bf16.mxu1 %v7138_v17  ;;  %v7157_v51 = vld [vmem:[#allocation10 + $0x360] ss:$16 sps:$4 sm:$0xff]   ;;  %v7160_v17 = vld [vmem:[#allocation10 + $0x368] ss:$16 sps:$4 sm:$0xff]  }
 0xedd   : > { %5707 = vmatpush1.bf16.msra.mxu0 %v7133_v36  ;;  %5748 = vmatpush1.bf16.msra.mxu1 %v7136_v21  ;;  %v7165_v36 = vld [vmem:[#allocation10 + $0x384] ss:$16 sps:$4 sm:$0xff]   ;;  %v7168_v21 = vld [vmem:[#allocation10 + $0x38c] ss:$16 sps:$4 sm:$0xff]  }
 0xede   : > { %5972 = vmatprep.subr.bf16.mxu0 %v7141_v37  ;;  %6013 = vmatprep.subr.bf16.mxu1 %v7144_v38  ;;  %v7163_v37 = vld [vmem:[#allocation10 + $0x380] ss:$16 sps:$4 sm:$0xff]   ;;  %v7171_v38 = vld [vmem:[#allocation10 + $0x3a4] ss:$16 sps:$4 sm:$0xff]  }
 0xf92   : > { %v5383_v39 = vpop.f32.mrb[64].mxu0  ;;  %v5424_v25 = vpop.f32.mrb[64].mxu1 }
 0xf93   : > { %v5435_v42 = vrot.slane %v5383_v39, 4  ;;  %v5385_v45 = vpop.f32.mrb[65].mxu0  ;;  %v5426_v46 = vpop.f32.mrb[65].mxu1  ;;  %v5437_v18 = vrot.slane %v5424_v25, 4  ;;  %v7174_v39 = vld [vmem:[#allocation10 + $0x3ac] ss:$16 sps:$4 sm:$0xff]  }
 0xf94   : > { %v5436_v47 = vrot.slane %v5385_v45, 4  ;;  %v5387_v48 = vpop.f32.mrb[66].mxu0  ;;  %v5428_v49 = vpop.f32.mrb[66].mxu1  ;;  %v5438_v58 = vrot.slane %v5426_v46, 4  ;;  %v7169_v25 = vld [vmem:[#allocation10 + $0x3a0] ss:$16 sps:$4 sm:$0xff]  }
 0xf95   : > { %v5443_v50 = vadd.f32 %v5435_v42, %v8475_v22  ;;  %v5388_v53 = vpop.f32.mrb[67].mxu0  ;;  %v5429_v54 = vpop.f32.mrb[67].mxu1  ;;  %v5445_v28 = vadd.f32 %v5437_v18, %v8486_v40  ;;  %v7172_v42 = vld [vmem:[#allocation10 + $0x3a8] ss:$16 sps:$4 sm:$0xff]   ;;  %v7177_v45 = vld [vmem:[#allocation10 + $0x3c4] ss:$16 sps:$4 sm:$0xff]  }
 0xf96   : > { %v5444_v57 = vadd.f32 %v5436_v47, %v8477_v1  ;;  %v5446_v6 = vadd.f32 %v5438_v58, %v8482_v35  ;;  %v5464_v35 = vrot.slane %v5155_v32, 4  ;;  %v7180_v46 = vld [vmem:[#allocation10 + $0x3cc] ss:$16 sps:$4 sm:$0xff]   ;;  %v7175_v47 = vld [vmem:[#allocation10 + $0x3c0] ss:$16 sps:$4 sm:$0xff]  }
 0xf97   : > { %v5447_v59 = vsub.f32 0.0, %v5443_v50  ;;  %v7178_v48 = vld [vmem:[#allocation10 + $0x3c8] ss:$16 sps:$4 sm:$0xff]   ;;  %v7183_v49 = vld [vmem:[#allocation10 + $0x3e4] ss:$16 sps:$4 sm:$0xff]  }
 0xf98   : > { %v5452_v60 = vsub.f32 0.0, %v5444_v57  ;;  %v5458_v33 = vsub.f32 0.0, %v5446_v6  ;;  %v7186_v50 = vld [vmem:[#allocation10 + $0x3ec] ss:$16 sps:$4 sm:$0xff]   ;;  %v7181_v53 = vld [vmem:[#allocation10 + $0x3e0] ss:$16 sps:$4 sm:$0xff]  }
 0xf99   : > { %v5448_v61 = vmul.f32 1.442695, %v5447_v59  ;;  %v7184_v54 = vld [vmem:[#allocation10 + $0x3e8] ss:$16 sps:$4 sm:$0xff]   ;;  %v5775_v57 = vld [vmem:[#allocation2 + $0x18] sm:$0xff] }
 0xf9a   : > { %v5453_v62 = vmul.f32 1.442695, %v5452_v60  ;;  %v5459_v7 = vmul.f32 1.442695, %v5458_v33  ;;  %v5778_v58 = vpack.c.bf16 %v5775_v57, %v5775_v57  ;;  %v5510_v59 = vld [vmem:[#allocation11 + $0xc] sm:$0xf] }
 0xf9b   : > { %7395 = vpow2.f32 %v5448_v61  ;;  %v5515_v60 = vrot.slane %v5510_v59, %v7879_v24  ;;  %v5519_v61 = vrot.slane %v5510_v59, %v7881_v26  ;;  %v5523_v26 = vrot.slane %v5510_v59, %v7896_v16 }
 0xf9c   : > { %7397 = vpow2.f32 %v5453_v62 }
 0xf9d   : > { %7399 = vpow2.f32 %v5459_v7 }
 0xf9e   : > { %7401 = vtanh.f32 %v5445_v28 }
 0xfa5   : > { %v7396_v52 = vpop.eup %7395 }
 0xfa6   : > { %v7398_v22 = vpop.eup %7397  ;;  %v5450_v0 = vadd.f32 1.0, %v7396_v52  ;;  %v5527_v52 = vrot.slane %v5510_v59, %v7885_v29 }
 0xfa7   : > { %v5455_v1 = vadd.f32 1.0, %v7398_v22  ;;  %v7400_v15 = vpop.eup %7399 }
 0xfa8   : > { %7403 = vrcp.f32 %v5450_v0  ;;  %v7402_v23 = vpop.eup %7401  ;;  %v5461_v11 = vadd.f32 1.0, %v7400_v15 }
 0xfa9   : > { %7405 = vrcp.f32 %v5455_v1 }
 0xfaa   : > { %7407 = vrcp.f32 %v5461_v11 }
 0xfb2   : > { %v7404_v55 = vpop.eup %7403 }
 0xfb3   : > { %v7406_v56 = vpop.eup %7405  ;;  %v5467_v9 = vmul.f32 %v7404_v55, %v7402_v23 }
 0xfb4   : > { %v5466_v41 = vmul.f32 %v7406_v56, %v5464_v35  ;;  %v7408_v40 = vpop.eup %7407 }
 0xfb6   : > { %v5468_v44 = vadd.f32 %v5467_v9, %v5466_v41 }
 0xfb8   : > { %7409 = vtanh.f32 %v5468_v44  ;;  %5472 = vst [vmem:[#allocation3 + $0xc] sm:$0xf0] %v5468_v44 }
 0xfc2   : > { %v7410_v12 = vpop.eup %7409 }
 0xfc3   : > { %v5470_v31 = vmul.f32 %v7410_v12, %v7408_v40 }
 0xfc5   : > { %5471 = vst [vmem:[#allocation2 + $0xc] sm:$0xf0] %v5470_v31  ;;  %5473 = vst [vmem:[#allocation4] sm:$0xf0] %v5470_v31 }
 0xfcc   : > { %v5474_v13 = vld [vmem:[#allocation4] sm:$0xff] }
 0xfcd   : > { %v5475_v2 = vpack.c.bf16 %v5474_v13, %v5474_v13 }
 0xfcf   : > { %5725 = vmatmul.mubr.bf16.vlgmr.msra.gmra.mrb[68].mxu0 %v5475_v2  ;;  %5766 = vmatmul.mubr.bf16.vlgmr.msra.gmra.mrb[68].mxu1 %v5475_v2 }
 0xfd0   : > { %5973 = vmatpush1.bf16.msra.mxu0 %v7139_v19  ;;  %6014 = vmatpush1.bf16.msra.mxu1 %v7142_v20  ;;  %v5777_v19 = vld [vmem:[#allocation3 + $0x18] sm:$0xff] }
 0xfd1   : > { %5974 = vmatprep.subr.bf16.mxu0 %v7147_v43  ;;  %6015 = vmatprep.subr.bf16.mxu1 %v7150_v63 }
 0xfd2   : > { %6004 = vmatprep.mubr.bf16.mxu0 %v7611_v10  ;;  %6045 = vmatprep.mubr.bf16.mxu1 %v7611_v10  ;;  %v7166_v10 = vld [vmem:[#allocation10 + $0x388] ss:$16 sps:$4 sm:$0xff]  }
 0xfd4   : > { %5975 = vmatpush1.bf16.msra.mxu0 %v7145_v8  ;;  %6016 = vmatpush1.bf16.msra.mxu1 %v7148_v34 }
 0xfd5   : > { %5976 = vmatprep.subr.bf16.mxu0 %v7153_v3  ;;  %6017 = vmatprep.subr.bf16.mxu1 %v7156_v4 }
 0xfd8   : > { %5977 = vmatpush1.bf16.msra.mxu0 %v7151_v27  ;;  %6018 = vmatpush1.bf16.msra.mxu1 %v7154_v5 }
 0xfd9   : > { %5978 = vmatprep.subr.bf16.mxu0 %v7159_v30  ;;  %6019 = vmatprep.subr.bf16.mxu1 %v7162_v14 }
 0xfdc   : > { %5979 = vmatpush1.bf16.msra.mxu0 %v7157_v51  ;;  %6020 = vmatpush1.bf16.msra.mxu1 %v7160_v17 }
 0xfdd   : > { %5980 = vmatprep.subr.bf16.mxu0 %v7165_v36  ;;  %6021 = vmatprep.subr.bf16.mxu1 %v7168_v21 }
 0xfe0   : > { %5981 = vmatpush1.bf16.msra.mxu0 %v7163_v37  ;;  %6022 = vmatpush1.bf16.msra.mxu1 %v7166_v10 }
 0xfe1   : > { %5982 = vmatprep.subr.bf16.mxu0 %v7171_v38  ;;  %6023 = vmatprep.subr.bf16.mxu1 %v7174_v39 }
 0xfe4   : > { %5983 = vmatpush1.bf16.msra.mxu0 %v7169_v25  ;;  %6024 = vmatpush1.bf16.msra.mxu1 %v7172_v42 }
 0xfe5   : > { %5984 = vmatprep.subr.bf16.mxu0 %v7177_v45  ;;  %6025 = vmatprep.subr.bf16.mxu1 %v7180_v46 }
 0xfe8   : > { %5985 = vmatpush1.bf16.msra.mxu0 %v7175_v47  ;;  %6026 = vmatpush1.bf16.msra.mxu1 %v7178_v48 }
 0xfe9   : > { %5986 = vmatprep.subr.bf16.mxu0 %v7183_v49  ;;  %6027 = vmatprep.subr.bf16.mxu1 %v7186_v50 }
 0xfec   : > { %5987 = vmatpush1.bf16.msra.mxu0 %v7181_v53  ;;  %6028 = vmatpush1.bf16.msra.mxu1 %v7184_v54 }
 0xfef   : > { %6005 = vmatmul.mubr.bf16.vlgmr.msra.gmra.mrb[68].mxu0 %v5778_v58  ;;  %6046 = vmatmul.mubr.bf16.vlgmr.msra.gmra.mrb[68].mxu1 %v5778_v58 }
0x10c2   : > { %v6006_v62 = vpop.f32.mrb[68].mxu0  ;;  %v6047_v6 = vpop.f32.mrb[68].mxu1 }
0x10c3   : > { %v6721_v33 = vadd.f32 %v6006_v62, %v5515_v60  ;;  %v6008_v18 = vpop.f32.mrb[69].mxu0  ;;  %v6049_v7 = vpop.f32.mrb[69].mxu1  ;;  %v6723_v11 = vadd.f32 %v6047_v6, %v5523_v26 }
0x10c4   : > { %v6722_v28 = vadd.f32 %v6008_v18, %v5519_v61  ;;  %v6010_v22 = vpop.f32.mrb[70].mxu0  ;;  %v6051_v0 = vpop.f32.mrb[70].mxu1  ;;  %v6724_v56 = vadd.f32 %v6049_v7, %v5527_v52 }
0x10c5   : > { %v6058_v1 = vsub.f32 0.0, %v6721_v33  ;;  %v6011_v32 = vpop.f32.mrb[71].mxu0  ;;  %v6052_v15 = vpop.f32.mrb[71].mxu1 }
0x10c6   : > { %v6063_v23 = vsub.f32 0.0, %v6722_v28  ;;  %v6069_v24 = vsub.f32 0.0, %v6724_v56 }
0x10c7   : > { %v6059_v55 = vmul.f32 1.442695, %v6058_v1 }
0x10c8   : > { %v6064_v35 = vmul.f32 1.442695, %v6063_v23  ;;  %v6070_v9 = vmul.f32 1.442695, %v6069_v24 }
0x10c9   : > { %7411 = vpow2.f32 %v6059_v55 }
0x10ca   : > { %7413 = vpow2.f32 %v6064_v35 }
0x10cb   : > { %7415 = vpow2.f32 %v6070_v9 }
0x10cc   : > { %7417 = vtanh.f32 %v6723_v11 }
0x10d3   : > { %v7412_v41 = vpop.eup %7411 }
0x10d4   : > { %v7414_v44 = vpop.eup %7413  ;;  %v6061_v40 = vadd.f32 1.0, %v7412_v41 }
0x10d5   : > { %v6066_v29 = vadd.f32 1.0, %v7414_v44  ;;  %v7416_v12 = vpop.eup %7415 }
0x10d6   : > { %7419 = vrcp.f32 %v6061_v40  ;;  %v7418_v31 = vpop.eup %7417  ;;  %v6072_v43 = vadd.f32 1.0, %v7416_v12 }
0x10d7   : > { %7421 = vrcp.f32 %v6066_v29 }
0x10d8   : > { %7423 = vrcp.f32 %v6072_v43 }
0x10e0   : > { %v7420_v20 = vpop.eup %7419 }
0x10e1   : > { %v7422_v13 = vpop.eup %7421  ;;  %v6075_v2 = vmul.f32 %v7420_v20, %v7418_v31 }
0x10e2   : > { %v6074_v63 = vmul.f32 %v7422_v13, %v5777_v19  ;;  %v7424_v8 = vpop.eup %7423 }
0x10e4   : > { %v6076_v16 = vadd.f32 %v6075_v2, %v6074_v63 }
0x10e6   : > { %7425 = vtanh.f32 %v6076_v16  ;;  %6080 = vst [vmem:[#allocation3 + $0x18] sm:$0xff] %v6076_v16 }
0x10ed   :  { %131 = sbr.rel (!%p129_p6) target bundleno = 115 (0x73), region = 96 }
0x10f0   : > { %v7426_v34 = vpop.eup %7425 }
0x10f1   : > { %v6078_v3 = vmul.f32 %v7426_v34, %v7424_v8 }
0x10f3   : > { %6079 = vst [vmem:[#allocation2 + $0x18] sm:$0xff] %v6078_v3  ;;  %6082 = vst [vmem:[%s6081_s0] sm:$0xff] %v6078_v3 }
0x10f4   :  { %7570 = shalt.err (!%p7567_p11)
}
0x10f5   :  { %s7571_s30 = scalar_lea.hbm %s8527_s6, 256 }
0x10f6   :  { %p7572_p12 = scmp.ne.s32.totalorder %s8527_s6, %s7571_s30  ;;  %p7575_p13 = scmp.lt.u32.totalorder %s7571_s30, %s8527_s6 }
0x10f8   :  { %p7577_p0 = pnand %p7575_p13, %p7572_p12 }
0x10fa   :  { %7580 = shalt.err (!%p7577_p0)
}
0x10fb   :  { %6094 = dma.vmem_to_hbm [thread:$0]  %s6089_s26, 256, %s8527_s6, [#allocation7], %s7606_s3, %s7606_s3, %s7607_s12  }
0x10fc   :  { %7593 = dma.done.wait [#allocation7], 256  }
0x10fd   :  { %7594 = vsyncadd [#allocation7], 4294967040 }
0x10fe   :  { %6098 = vsyncpa [#allocation6], 1 }
0x10ff   :  { %6099 = vsyncpa [#allocation9], 1 }
0x1100   :  { %6100 = vsyncpa [#allocation12], 1 }
0x1101   :  { %6101 = vsyncpa [#allocation15], 1 }
0x1102   :  { %6102 = vsyncpa [#allocation7], 1 }

</bundles_post_ra>
